<compile_context>
chip_gen: v6e
topology: v6e:2x2x1
jax: 0.10.0
libtpu: 0.0.40
codegen_flags: <defaults>
</compile_context>

<pallas_src>
import functools

import jax
import jax.numpy as jnp
from jax import lax
from jax.experimental import pallas as pl
from jax.experimental.pallas import tpu as pltpu


def _round_up(x, m):
    return ((x + m - 1) // m) * m


def _pad2(a, rows, cols, dtype=None):
    out = jnp.pad(a, ((0, rows - a.shape[0]), (0, cols - a.shape[1])))
    return out if dtype is None else out.astype(dtype)


def _vmem_limit_bytes():
    # Generation-aware scoped-VMEM budget: ~3/4 of physical VMEM, capped.
    try:
        cap = getattr(pltpu.get_tpu_info(), "vmem_capacity_bytes",
                      64 * 1024 * 1024)
    except Exception:  # interpret mode / unknown chip
        cap = 64 * 1024 * 1024
    return int(min(cap * 3 // 4, 100 * 1024 * 1024))


# --------------------------------------------------------------------------
# Fused two-layer GCN kernel.
#   grid = (layer phase l in {0,1}, A row tile i, reduction tile k)
#   scratch: XW1 [Np,Hp] bf16, H [Np,Hp] bf16, HW2 [Np,Op] bf16,
#            acc1 [tile_i,Hp] f32 (layer-1 accumulates directly into o_ref).
# --------------------------------------------------------------------------
def fused_gcn_kernel(a_ref, x_ref, w1_ref, b1_ref, w2_ref, b2_ref, o_ref,
                     xw_ref, h_ref, hw2_ref, acc1_ref, *, tile_i, tile_k):
    l = pl.program_id(0)          # 0 -> conv1 (+ReLU), 1 -> conv2
    i = pl.program_id(1)          # A row tile
    k = pl.program_id(2)          # A column (reduction) tile
    nk = pl.num_programs(2)

    ks = pl.multiple_of(k * tile_k, tile_k)

    # ---- layer 0: H[i] = relu(sum_k A[i,k] @ (X @ W1)[k] + b1) -------------
    @pl.when(l == 0)
    def _():
        # Stream the k-th row tile of XW1 = X @ W1 once (while i == 0),
        # overlapping with the A stream instead of one monolithic up-front dot.
        @pl.when(i == 0)
        def _():
            xw_ref[pl.ds(ks, tile_k), :] = jnp.dot(
                x_ref[...], w1_ref[...],
                preferred_element_type=jnp.float32).astype(xw_ref.dtype)

        @pl.when(k == 0)
        def _():
            acc1_ref[...] = jnp.zeros_like(acc1_ref)

        acc1_ref[...] += jnp.dot(a_ref[...], xw_ref[pl.ds(ks, tile_k), :],
                                 preferred_element_type=jnp.float32)

        @pl.when(k == nk - 1)
        def _():
            rs = pl.multiple_of(i * tile_i, tile_i)
            h_ref[pl.ds(rs, tile_i), :] = jnp.maximum(
                acc1_ref[...] + b1_ref[...], 0.0).astype(h_ref.dtype)

    # ---- layer 1: out[i] = sum_k A[i,k] @ (H @ W2)[k] + b2 -----------------
    @pl.when(l == 1)
    def _():
        # Stream the k-th row tile of HW2 = H @ W2 once (while i == 0).
        @pl.when(i == 0)
        def _():
            hw2_ref[pl.ds(ks, tile_k), :] = jnp.dot(
                h_ref[pl.ds(ks, tile_k), :], w2_ref[...],
                preferred_element_type=jnp.float32).astype(hw2_ref.dtype)

        @pl.when(k == 0)
        def _():
            o_ref[...] = jnp.zeros_like(o_ref)

        o_ref[...] += jnp.dot(a_ref[...], hw2_ref[pl.ds(ks, tile_k), :],
                              preferred_element_type=jnp.float32)

        @pl.when(k == nk - 1)
        def _():
            o_ref[...] += b2_ref[...]


# --------------------------------------------------------------------------
# Dense symmetric-normalized adjacency with self-loops from edge_index [2, E].
# Duplicate edges scatter-add (PyG-style); self-loops added only where missing.
# For a static graph, call this once and pass the result via a_norm=.
# --------------------------------------------------------------------------
def normalized_adjacency(edge_index, num_nodes):
    src = edge_index[0]
    dst = edge_index[1]
    a = jnp.zeros((num_nodes, num_nodes), jnp.float32).at[dst, src].add(1.0)
    diag = jnp.diagonal(a)
    a = a + jnp.diag(jnp.where(diag == 0.0, 1.0, 0.0))   # remaining self-loops
    deg = jnp.sum(a, axis=1)
    d_inv_sqrt = jnp.where(deg > 0.0, lax.rsqrt(deg), 0.0)
    return d_inv_sqrt[:, None] * a * d_inv_sqrt[None, :]


# --------------------------------------------------------------------------
# GCNModel forward (conv1 -> ReLU -> conv2) via one fused pallas_call.
# --------------------------------------------------------------------------
def gcn_model_forward(params, x, edge_index=None, *, a_norm=None,
                      tile_i=256, tile_k=512):
    n, f_in = x.shape
    hidden = params["w1"].shape[1]
    out_dim = params["w2"].shape[1]

    if a_norm is None:
        a_norm = normalized_adjacency(edge_index, n)

    # Clamp tiles for small graphs; keep tile_i | tile_k so one padded N works
    # for both the row-tile and reduction-tile axes.
    np128 = _round_up(n, 128)
    tile_k = min(tile_k, np128)
    tile_i = min(tile_i, tile_k)
    if tile_k % tile_i != 0:
        tile_i = tile_k

    np_ = _round_up(n, tile_k)
    fp = _round_up(f_in, 128)
    hp = _round_up(hidden, 128)
    op = _round_up(out_dim, 128)

    # bf16 streamed operands; biases stay f32 (f32 accumulation in-kernel).
    # Zero padding is numerically exact: padded A columns are zero, so the
    # relu(b1) rows that appear in padded H never contribute.
    a_p = _pad2(a_norm, np_, np_, jnp.bfloat16)
    x_p = _pad2(x, np_, fp, jnp.bfloat16)
    w1_p = _pad2(params["w1"], fp, hp, jnp.bfloat16)
    w2_p = _pad2(params["w2"], hp, op, jnp.bfloat16)
    b1_p = _pad2(params["b1"].reshape(1, -1), 1, hp)
    b2_p = _pad2(params["b2"].reshape(1, -1), 1, op)

    ni = np_ // tile_i
    nk = np_ // tile_k
    grid = (2, ni, nk)

    # X is only consumed while (l == 0, i == 0); park on its last block
    # otherwise so it is streamed from HBM exactly once.
    def x_map(l, i, k):
        return (jnp.where(jnp.logical_and(l == 0, i == 0), k, nk - 1), 0)

    # The output is only produced during the l == 1 phase; park on block 0
    # during l == 0 so no uninitialized block is ever written back to HBM.
    def out_map(l, i, k):
        return (jnp.where(l == 1, i, 0), 0)

    flops = (2 * np_ * fp * hp + 2 * np_ * np_ * hp
             + 2 * np_ * hp * op + 2 * np_ * np_ * op)
    bytes_accessed = (2 * (2 * np_ * np_)                       # A, bf16, x2 layers
                      + 2 * (np_ * fp + fp * hp + hp * op)      # X, W1, W2 (bf16)
                      + 4 * (hp + op)                           # biases (f32)
                      + 4 * np_ * op)                           # output (f32)

    kernel = functools.partial(fused_gcn_kernel, tile_i=tile_i, tile_k=tile_k)

    out_p = pl.pallas_call(
        kernel,
        out_shape=jax.ShapeDtypeStruct((np_, op), jnp.float32),
        grid_spec=pltpu.PrefetchScalarGridSpec(
            num_scalar_prefetch=0,
            grid=grid,
            in_specs=[
                pl.BlockSpec((tile_i, tile_k), lambda l, i, k: (i, k)),  # A
                pl.BlockSpec((tile_k, fp), x_map),                       # X
                pl.BlockSpec((fp, hp), lambda l, i, k: (0, 0)),          # W1
                pl.BlockSpec((1, hp), lambda l, i, k: (0, 0)),           # b1
                pl.BlockSpec((hp, op), lambda l, i, k: (0, 0)),          # W2
                pl.BlockSpec((1, op), lambda l, i, k: (0, 0)),           # b2
            ],
            out_specs=pl.BlockSpec((tile_i, op), out_map),
            scratch_shapes=[
                pltpu.VMEM((np_, hp), jnp.bfloat16),    # XW1 = X @ W1
                pltpu.VMEM((np_, hp), jnp.bfloat16),    # H (fused intermediate)
                pltpu.VMEM((np_, op), jnp.bfloat16),    # HW2 = H @ W2
                pltpu.VMEM((tile_i, hp), jnp.float32),  # layer-0 accumulator
            ],
        ),
        compiler_params=pltpu.CompilerParams(
            dimension_semantics=("arbitrary", "arbitrary", "arbitrary"),
            vmem_limit_bytes=_vmem_limit_bytes(),
        ),
        cost_estimate=pl.CostEstimate(
            flops=flops, transcendentals=0, bytes_accessed=bytes_accessed),
    )(a_p, x_p, w1_p, b1_p, w2_p, b2_p)

    return out_p[:n, :out_dim]


def init_params(key, input_size, hidden_size, output_size):
    k1, k2, k3, k4 = jax.random.split(key, 4)
    w1 = jax.random.normal(k1, (input_size, hidden_size), jnp.float32) * (
        1.0 / jnp.sqrt(jnp.float32(input_size)))
    w2 = jax.random.normal(k2, (hidden_size, output_size), jnp.float32) * (
        1.0 / jnp.sqrt(jnp.float32(hidden_size)))
    # Non-zero biases on purpose: guards the padded-row invariant (padded H
    # rows equal relu(b1) but are killed by zero padded A columns).
    b1 = 0.1 * jax.random.normal(k3, (hidden_size,), jnp.float32)
    b2 = 0.1 * jax.random.normal(k4, (output_size,), jnp.float32)
    return {"w1": w1, "b1": b1, "w2": w2, "b2": b2}


if __name__ == "__main__":
    # Small deterministic problem; 900 nodes is NOT a multiple of the tile so
    # the padding path (and nonzero-bias invariant) is exercised, and the grid
    # is a real (2, 4, 2).
    num_nodes = 900
    input_size = 16
    hidden_size = 32
    output_size = 8

    key = jax.random.PRNGKey(0)
    kx, kp = jax.random.split(key)

    x = jax.random.normal(kx, (num_nodes, input_size), jnp.float32)

    # Deterministic bidirectional ring graph, edge_index shape [2, E].
    src = jnp.arange(num_nodes, dtype=jnp.int32)
    dst = (src + 1) % num_nodes
    edge_index = jnp.stack(
        [jnp.concatenate([src, dst]), jnp.concatenate([dst, src])], axis=0)

    params = init_params(kp, input_size, hidden_size, output_size)

    # Graph is static: build A_norm once and reuse it (review item).
    a_norm = normalized_adjacency(edge_index, num_nodes)

    out = gcn_model_forward(params, x, edge_index, a_norm=a_norm)
    out = jax.block_until_ready(out)

    # Pure-JAX f32 reference (high-precision dots).
    def mm(a, b):
        return jnp.dot(a, b, precision=lax.Precision.HIGHEST)

    h_ref = jnp.maximum(mm(a_norm, mm(x, params["w1"])) + params["b1"], 0.0)
    out_ref = mm(a_norm, mm(h_ref, params["w2"])) + params["b2"]

    assert out.shape == (num_nodes, output_size)
    max_err = float(jnp.max(jnp.abs(out - out_ref)))
    # bf16-streamed operands with f32 accumulation -> bf16-level tolerance.
    assert jnp.allclose(out, out_ref, atol=3e-2, rtol=3e-2), max_err

    print("KERNEL_OK")
</pallas_src>

<mosaic_0001>
module attributes {stable_mosaic.version = 11 : i64} {
  func.func @fused_gcn_kernel(%arg0: i32, %arg1: i32, %arg2: i32, %arg3: memref<256x512xbf16, #tpu.memory_space<vmem>>, %arg4: memref<512x128xbf16, #tpu.memory_space<vmem>>, %arg5: memref<128x128xbf16, #tpu.memory_space<vmem>>, %arg6: memref<1x128xf32, #tpu.memory_space<vmem>>, %arg7: memref<128x128xbf16, #tpu.memory_space<vmem>>, %arg8: memref<1x128xf32, #tpu.memory_space<vmem>>, %arg9: memref<256x128xf32, #tpu.memory_space<vmem>>, %arg10: memref<1024x128xbf16, #tpu.memory_space<vmem>>, %arg11: memref<1024x128xbf16, #tpu.memory_space<vmem>>, %arg12: memref<1024x128xbf16, #tpu.memory_space<vmem>>, %arg13: memref<256x128xf32, #tpu.memory_space<vmem>>) attributes {dimension_semantics = [#tpu.dimension_semantics<arbitrary>, #tpu.dimension_semantics<arbitrary>, #tpu.dimension_semantics<arbitrary>], iteration_bounds = array<i64: 2, 4, 2>, scalar_prefetch = 0 : i64, scratch_operands = 4 : i64, tpu.core_type = #tpu.core_type<tc>, window_params = [{transform_indices = @transform_0, window_bounds = array<i64: 256, 512>}, {transform_indices = @transform_1, window_bounds = array<i64: 512, 128>}, {pipeline_mode = #tpu.pipeline_mode<synchronous>, transform_indices = @transform_2, window_bounds = array<i64: 128, 128>}, {pipeline_mode = #tpu.pipeline_mode<synchronous>, transform_indices = @transform_3, window_bounds = array<i64: 1, 128>}, {pipeline_mode = #tpu.pipeline_mode<synchronous>, transform_indices = @transform_4, window_bounds = array<i64: 128, 128>}, {pipeline_mode = #tpu.pipeline_mode<synchronous>, transform_indices = @transform_5, window_bounds = array<i64: 1, 128>}, {transform_indices = @transform_6, window_bounds = array<i64: 256, 128>}]} {
    %c512_i32 = arith.constant 512 : i32
    %0 = arith.muli %arg2, %c512_i32 : i32
    %1 = tpu.assume_multiple %0, 512 : i32
    %c0_i32 = arith.constant 0 : i32
    %2 = arith.cmpi eq, %arg0, %c0_i32 : i32
    %3 = arith.extui %2 : i1 to i32
    %c0_i32_0 = arith.constant 0 : i32
    %4 = arith.cmpi ne, %3, %c0_i32_0 : i32
    scf.if %4 {
      %c0_i32_2 = arith.constant 0 : i32
      %8 = arith.cmpi eq, %arg1, %c0_i32_2 : i32
      %9 = arith.extui %8 : i1 to i32
      %c0_i32_3 = arith.constant 0 : i32
      %10 = arith.cmpi ne, %9, %c0_i32_3 : i32
      scf.if %10 {
        %c0_14 = arith.constant 0 : index
        %c0_15 = arith.constant 0 : index
        %24 = vector.load %arg4[%c0_14, %c0_15] : memref<512x128xbf16, #tpu.memory_space<vmem>>, vector<512x128xbf16>
        %c0_16 = arith.constant 0 : index
        %c0_17 = arith.constant 0 : index
        %25 = vector.load %arg5[%c0_16, %c0_17] : memref<128x128xbf16, #tpu.memory_space<vmem>>, vector<128x128xbf16>
        %cst_18 = arith.constant dense<0.000000e+00> : vector<512x128xf32>
        %26 = tpu.matmul %24, %25, %cst_18 {dimension_numbers = #tpu.dot_dimension_numbers<[1], [0], [0], [1], [0, 0, 1, 1], [], []>} : vector<512x128xbf16>, vector<128x128xbf16>, vector<512x128xf32> -> vector<512x128xf32>
        %27 = arith.truncf %26 : vector<512x128xf32> to vector<512x128xbf16>
        %28 = arith.index_cast %1 : i32 to index
        %c0_19 = arith.constant 0 : index
        %29 = vector.load %arg10[%28, %c0_19] : memref<1024x128xbf16, #tpu.memory_space<vmem>>, vector<512x128xbf16>
        tpu.vector_store %arg10[%28, %c0_19], %27 {strides = array<i32>} : memref<1024x128xbf16, #tpu.memory_space<vmem>>, vector<512x128xbf16>,
      } else {
      }
      %c0_i32_4 = arith.constant 0 : i32
      %11 = arith.cmpi eq, %arg2, %c0_i32_4 : i32
      %12 = arith.extui %11 : i1 to i32
      %c0_i32_5 = arith.constant 0 : i32
      %13 = arith.cmpi ne, %12, %c0_i32_5 : i32
      scf.if %13 {
        %cst_14 = arith.constant 0.000000e+00 : f32
        %24 = vector.broadcast %cst_14 : f32 to vector<256x128xf32>
        %c0_15 = arith.constant 0 : index
        %c0_16 = arith.constant 0 : index
        %25 = vector.load %arg13[%c0_15, %c0_16] : memref<256x128xf32, #tpu.memory_space<vmem>>, vector<256x128xf32>
        tpu.vector_store %arg13[%c0_15, %c0_16], %24 {strides = array<i32>} : memref<256x128xf32, #tpu.memory_space<vmem>>, vector<256x128xf32>,
      } else {
      }
      %c0 = arith.constant 0 : index
      %c0_6 = arith.constant 0 : index
      %14 = vector.load %arg13[%c0, %c0_6] : memref<256x128xf32, #tpu.memory_space<vmem>>, vector<256x128xf32>
      %c0_7 = arith.constant 0 : index
      %c0_8 = arith.constant 0 : index
      %15 = vector.load %arg3[%c0_7, %c0_8] : memref<256x512xbf16, #tpu.memory_space<vmem>>, vector<256x512xbf16>
      %16 = arith.index_cast %1 : i32 to index
      %c0_9 = arith.constant 0 : index
      %17 = vector.load %arg10[%16, %c0_9] : memref<1024x128xbf16, #tpu.memory_space<vmem>>, vector<512x128xbf16>
      %cst = arith.constant dense<0.000000e+00> : vector<256x128xf32>
      %18 = tpu.matmul %15, %17, %cst {dimension_numbers = #tpu.dot_dimension_numbers<[1], [0], [0], [1], [0, 0, 1, 1], [], []>} : vector<256x512xbf16>, vector<512x128xbf16>, vector<256x128xf32> -> vector<256x128xf32>
      %19 = arith.addf %14, %18 : vector<256x128xf32>
      %c0_10 = arith.constant 0 : index
      %c0_11 = arith.constant 0 : index
      %20 = vector.load %arg13[%c0_10, %c0_11] : memref<256x128xf32, #tpu.memory_space<vmem>>, vector<256x128xf32>
      tpu.vector_store %arg13[%c0_10, %c0_11], %19 {strides = array<i32>} : memref<256x128xf32, #tpu.memory_space<vmem>>, vector<256x128xf32>,
      %c1_i32_12 = arith.constant 1 : i32
      %21 = arith.cmpi eq, %arg2, %c1_i32_12 : i32
      %22 = arith.extui %21 : i1 to i32
      %c0_i32_13 = arith.constant 0 : i32
      %23 = arith.cmpi ne, %22, %c0_i32_13 : i32
      scf.if %23 {
        %c256_i32 = arith.constant 256 : i32
        %24 = arith.muli %arg1, %c256_i32 : i32
        %25 = tpu.assume_multiple %24, 256 : i32
        %c0_14 = arith.constant 0 : index
        %c0_15 = arith.constant 0 : index
        %26 = vector.load %arg13[%c0_14, %c0_15] : memref<256x128xf32, #tpu.memory_space<vmem>>, vector<256x128xf32>
        %c0_16 = arith.constant 0 : index
        %c0_17 = arith.constant 0 : index
        %27 = vector.load %arg6[%c0_16, %c0_17] : memref<1x128xf32, #tpu.memory_space<vmem>>, vector<1x128xf32>
        %28 = vector.broadcast %27 : vector<1x128xf32> to vector<256x128xf32>
        %29 = arith.addf %26, %28 : vector<256x128xf32>
        %cst_18 = arith.constant 0.000000e+00 : f32
        %30 = vector.broadcast %cst_18 : f32 to vector<256x128xf32>
        %31 = arith.maximumf %29, %30 : vector<256x128xf32>
        %32 = arith.truncf %31 : vector<256x128xf32> to vector<256x128xbf16>
        %33 = arith.index_cast %25 : i32 to index
        %c0_19 = arith.constant 0 : index
        %34 = vector.load %arg11[%33, %c0_19] : memref<1024x128xbf16, #tpu.memory_space<vmem>>, vector<256x128xbf16>
        tpu.vector_store %arg11[%33, %c0_19], %32 {strides = array<i32>} : memref<1024x128xbf16, #tpu.memory_space<vmem>>, vector<256x128xbf16>,
      } else {
      }
    } else {
    }
    %c1_i32 = arith.constant 1 : i32
    %5 = arith.cmpi eq, %arg0, %c1_i32 : i32
    %6 = arith.extui %5 : i1 to i32
    %c0_i32_1 = arith.constant 0 : i32
    %7 = arith.cmpi ne, %6, %c0_i32_1 : i32
    scf.if %7 {
      %c0_i32_2 = arith.constant 0 : i32
      %8 = arith.cmpi eq, %arg1, %c0_i32_2 : i32
      %9 = arith.extui %8 : i1 to i32
      %c0_i32_3 = arith.constant 0 : i32
      %10 = arith.cmpi ne, %9, %c0_i32_3 : i32
      scf.if %10 {
        %24 = arith.index_cast %1 : i32 to index
        %c0_14 = arith.constant 0 : index
        %25 = vector.load %arg11[%24, %c0_14] : memref<1024x128xbf16, #tpu.memory_space<vmem>>, vector<512x128xbf16>
        %c0_15 = arith.constant 0 : index
        %c0_16 = arith.constant 0 : index
        %26 = vector.load %arg7[%c0_15, %c0_16] : memref<128x128xbf16, #tpu.memory_space<vmem>>, vector<128x128xbf16>
        %cst_17 = arith.constant dense<0.000000e+00> : vector<512x128xf32>
        %27 = tpu.matmul %25, %26, %cst_17 {dimension_numbers = #tpu.dot_dimension_numbers<[1], [0], [0], [1], [0, 0, 1, 1], [], []>} : vector<512x128xbf16>, vector<128x128xbf16>, vector<512x128xf32> -> vector<512x128xf32>
        %28 = arith.truncf %27 : vector<512x128xf32> to vector<512x128xbf16>
        %29 = arith.index_cast %1 : i32 to index
        %c0_18 = arith.constant 0 : index
        %30 = vector.load %arg12[%29, %c0_18] : memref<1024x128xbf16, #tpu.memory_space<vmem>>, vector<512x128xbf16>
        tpu.vector_store %arg12[%29, %c0_18], %28 {strides = array<i32>} : memref<1024x128xbf16, #tpu.memory_space<vmem>>, vector<512x128xbf16>,
      } else {
      }
      %c0_i32_4 = arith.constant 0 : i32
      %11 = arith.cmpi eq, %arg2, %c0_i32_4 : i32
      %12 = arith.extui %11 : i1 to i32
      %c0_i32_5 = arith.constant 0 : i32
      %13 = arith.cmpi ne, %12, %c0_i32_5 : i32
      scf.if %13 {
        %cst_14 = arith.constant 0.000000e+00 : f32
        %24 = vector.broadcast %cst_14 : f32 to vector<256x128xf32>
        %c0_15 = arith.constant 0 : index
        %c0_16 = arith.constant 0 : index
        %25 = vector.load %arg9[%c0_15, %c0_16] : memref<256x128xf32, #tpu.memory_space<vmem>>, vector<256x128xf32>
        tpu.vector_store %arg9[%c0_15, %c0_16], %24 {strides = array<i32>} : memref<256x128xf32, #tpu.memory_space<vmem>>, vector<256x128xf32>,
      } else {
      }
      %c0 = arith.constant 0 : index
      %c0_6 = arith.constant 0 : index
      %14 = vector.load %arg9[%c0, %c0_6] : memref<256x128xf32, #tpu.memory_space<vmem>>, vector<256x128xf32>
      %c0_7 = arith.constant 0 : index
      %c0_8 = arith.constant 0 : index
      %15 = vector.load %arg3[%c0_7, %c0_8] : memref<256x512xbf16, #tpu.memory_space<vmem>>, vector<256x512xbf16>
      %16 = arith.index_cast %1 : i32 to index
      %c0_9 = arith.constant 0 : index
      %17 = vector.load %arg12[%16, %c0_9] : memref<1024x128xbf16, #tpu.memory_space<vmem>>, vector<512x128xbf16>
      %cst = arith.constant dense<0.000000e+00> : vector<256x128xf32>
      %18 = tpu.matmul %15, %17, %cst {dimension_numbers = #tpu.dot_dimension_numbers<[1], [0], [0], [1], [0, 0, 1, 1], [], []>} : vector<256x512xbf16>, vector<512x128xbf16>, vector<256x128xf32> -> vector<256x128xf32>
      %19 = arith.addf %14, %18 : vector<256x128xf32>
      %c0_10 = arith.constant 0 : index
      %c0_11 = arith.constant 0 : index
      %20 = vector.load %arg9[%c0_10, %c0_11] : memref<256x128xf32, #tpu.memory_space<vmem>>, vector<256x128xf32>
      tpu.vector_store %arg9[%c0_10, %c0_11], %19 {strides = array<i32>} : memref<256x128xf32, #tpu.memory_space<vmem>>, vector<256x128xf32>,
      %c1_i32_12 = arith.constant 1 : i32
      %21 = arith.cmpi eq, %arg2, %c1_i32_12 : i32
      %22 = arith.extui %21 : i1 to i32
      %c0_i32_13 = arith.constant 0 : i32
      %23 = arith.cmpi ne, %22, %c0_i32_13 : i32
      scf.if %23 {
        %c0_14 = arith.constant 0 : index
        %c0_15 = arith.constant 0 : index
        %24 = vector.load %arg9[%c0_14, %c0_15] : memref<256x128xf32, #tpu.memory_space<vmem>>, vector<256x128xf32>
        %c0_16 = arith.constant 0 : index
        %c0_17 = arith.constant 0 : index
        %25 = vector.load %arg8[%c0_16, %c0_17] : memref<1x128xf32, #tpu.memory_space<vmem>>, vector<1x128xf32>
        %26 = vector.broadcast %25 : vector<1x128xf32> to vector<256x128xf32>
        %27 = arith.addf %24, %26 : vector<256x128xf32>
        %c0_18 = arith.constant 0 : index
        %c0_19 = arith.constant 0 : index
        %28 = vector.load %arg9[%c0_18, %c0_19] : memref<256x128xf32, #tpu.memory_space<vmem>>, vector<256x128xf32>
        tpu.vector_store %arg9[%c0_18, %c0_19], %27 {strides = array<i32>} : memref<256x128xf32, #tpu.memory_space<vmem>>, vector<256x128xf32>,
      } else {
      }
    } else {
    }
    return
  }
  func.func @transform_0(%arg0: i32, %arg1: i32, %arg2: i32) -> (i32, i32) {
    %c0_i32 = arith.constant 0 : i32
    return %arg1, %arg2 : i32, i32
  }
  func.func @transform_1(%arg0: i32, %arg1: i32, %arg2: i32) -> (i32, i32) {
    %c0_i32 = arith.constant 0 : i32
    %0 = arith.cmpi eq, %arg0, %c0_i32 : i32
    %c0_i32_0 = arith.constant 0 : i32
    %1 = arith.cmpi eq, %arg1, %c0_i32_0 : i32
    %2 = arith.andi %0, %1 : i1
    %c1_i32 = arith.constant 1 : i32
    %3 = arith.select %2, %arg2, %c1_i32 : i32
    %c0_i32_1 = arith.constant 0 : i32
    %c0_i32_2 = arith.constant 0 : i32
    return %3, %c0_i32_1 : i32, i32
  }
  func.func @transform_2(%arg0: i32, %arg1: i32, %arg2: i32) -> (i32, i32) {
    %c0_i32 = arith.constant 0 : i32
    %c0_i32_0 = arith.constant 0 : i32
    %c0_i32_1 = arith.constant 0 : i32
    return %c0_i32, %c0_i32_0 : i32, i32
  }
  func.func @transform_3(%arg0: i32, %arg1: i32, %arg2: i32) -> (i32, i32) {
    %c0_i32 = arith.constant 0 : i32
    %c0_i32_0 = arith.constant 0 : i32
    %c0_i32_1 = arith.constant 0 : i32
    return %c0_i32, %c0_i32_0 : i32, i32
  }
  func.func @transform_4(%arg0: i32, %arg1: i32, %arg2: i32) -> (i32, i32) {
    %c0_i32 = arith.constant 0 : i32
    %c0_i32_0 = arith.constant 0 : i32
    %c0_i32_1 = arith.constant 0 : i32
    return %c0_i32, %c0_i32_0 : i32, i32
  }
  func.func @transform_5(%arg0: i32, %arg1: i32, %arg2: i32) -> (i32, i32) {
    %c0_i32 = arith.constant 0 : i32
    %c0_i32_0 = arith.constant 0 : i32
    %c0_i32_1 = arith.constant 0 : i32
    return %c0_i32, %c0_i32_0 : i32, i32
  }
  func.func @transform_6(%arg0: i32, %arg1: i32, %arg2: i32) -> (i32, i32) {
    %c1_i32 = arith.constant 1 : i32
    %0 = arith.cmpi eq, %arg0, %c1_i32 : i32
    %c0_i32 = arith.constant 0 : i32
    %1 = arith.select %0, %arg1, %c0_i32 : i32
    %c0_i32_0 = arith.constant 0 : i32
    %c0_i32_1 = arith.constant 0 : i32
    return %1, %c0_i32_0 : i32, i32
  }
}

</mosaic_0001>

<bundles_post_ra>
// kernel: tpu_custom_call.1
= control target key start
LH: loop header
LB: loop body
LE: loop exit
PB: predicated region body
PF: predicated region fallthrough
CT: control target
= control target key end

     0   :  { %s8806_s0 = inlined_call_operand.hbm [shape: bf16[1024,1024], index: 0, kind: input, shape index: {}]   ;;  %s8807_s1 = inlined_call_operand.hbm [shape: bf16[1024,128], index: 1, kind: input, shape index: {}]   ;;  %s8808_s2 = inlined_call_operand.hbm [shape: bf16[128,128], index: 2, kind: input, shape index: {}]   ;;  %s8809_s3 = inlined_call_operand.hbm [shape: f32[1,128], index: 3, kind: input, shape index: {}]   ;;  %s8810_s4 = inlined_call_operand.hbm [shape: bf16[128,128], index: 4, kind: input, shape index: {}]   ;;  %s8811_s5 = inlined_call_operand.hbm [shape: f32[1,128], index: 5, kind: input, shape index: {}]   ;;  %s8812_s6 = inlined_call_operand.hbm [shape: f32[1024,128], index: 6, kind: output, shape index: {}]  }
   0x1   :  { %8833 = sst [smem:[#allocation38_spill]] %s8806_s0 }
   0x2   :  { %8834 = sst [smem:[#allocation39_spill]] %s8808_s2 }
   0x3   :  { %8835 = sst [smem:[#allocation40_spill]] %s8809_s3 }
   0x4   :  { %8836 = sst [smem:[#allocation41_spill]] %s8810_s4 }
   0x5   :  { %8837 = sst [smem:[#allocation42_spill]] %s8811_s5 }
   0x6   :  { %8838 = sst [smem:[#allocation43_spill]] %s8812_s6 }
   0x7   :  { %11 = vsyncpa [#allocation7], 0 }
   0x8   :  { %13 = vsyncpa [#allocation7 + $0x1], 0 }
   0x9   :  { %14 = vsyncpa [#allocation10], 0 }
   0xa   :  { %16 = vsyncpa [#allocation10 + $0x1], 0 }
   0xb   :  { %17 = vsyncpa [#allocation13], 0 }
   0xc   :  { %18 = vsyncpa [#allocation16], 0 }
   0xd   :  { %19 = vsyncpa [#allocation8], 0 }
   0xe   :  { %21 = vsyncpa [#allocation8 + $0x1], 0  ;;  %s7825_s21 = smov 0   ;;  %s7827_s22 = smov 0  }
   0xf   :  { %s7829_s23 = smov 0   ;;  %s7831_s24 = smov 0  }
  0x10   :  { %s7833_s25 = smov 0   ;;  %s7835_s26 = smov 0  }
  0x11   :  { %s7837_s27 = smov 0   ;;  %s7839_s28 = smov 0  }
  0x12   :  { %s7841_s29 = smov 0   ;;  %s7843_s30 = smov 0  }
  0x13   :  { %s7845_s7 = smov 0   ;;  %s7847_s8 = smov 0  }
  0x14   :  { %s7849_s9 = smov 0   ;;  %s7851_s10 = smov 0  }
  0x15   :  { %s7853_s11 = smov 0   ;;  %s7855_s12 = smov 0  }
  0x16 LB: > { %8839 = sst [smem:[#allocation24_spill]] %s7712_s21  ;;  %s7902_s13 = sadd.s32 4294967295, %s7772_s12   ;;  %s7772_s12 = sphi %s7855_s12, %s27_s12   ;;  %s7768_s11 = sphi %s7853_s11, %s8919_s11   ;;  %s7764_s10 = sphi %s7851_s10, %s8918_s10   ;;  %s7760_s9 = sphi %s7849_s9, %s8917_s9   ;;  %s7756_s8 = sphi %s7847_s8, %s8906_s8   ;;  %s7752_s7 = sphi %s7845_s7, %s8905_s7   ;;  %s7748_s30 = sphi %s7843_s30, %s8904_s30   ;;  %s7744_s29 = sphi %s7841_s29, %s8903_s29   ;;  %s7740_s28 = sphi %s7839_s28, %s8916_s28   ;;  %s7736_s27 = sphi %s7837_s27, %s8915_s27   ;;  %s7732_s26 = sphi %s7835_s26, %s8914_s26   ;;  %s7728_s25 = sphi %s7833_s25, %s8913_s25   ;;  %s7724_s24 = sphi %s7831_s24, %s8912_s24   ;;  %s7720_s23 = sphi %s7829_s23, %s8911_s23   ;;  %s7716_s22 = sphi %s7827_s22, %s8910_s22   ;;  %s7712_s21 = sphi %s7825_s21, %s8901_s21  }
  0x17   : > { %8840 = sst [smem:[#allocation25_spill]] %s7716_s22  ;;  %s5062_s14 = sadd.s32 4294967294, %s7772_s12  }
  0x18   : > { %8841 = sst [smem:[#allocation26_spill]] %s7744_s29  ;;  %p68_p0 = scmp.ne.s32.totalorder %s7740_s28, %s7736_s27 }
  0x19   : > { %8842 = sst [smem:[#allocation27_spill]] %s7748_s30  ;;  %p8818_p1 = scmp.eq.s32.totalorder %s7902_s13, 0 }
  0x1a   : > { %8843 = sst [smem:[#allocation28_spill]] %s7752_s7  ;;  %p104_p2 = scmp.ne.s32.totalorder %s7728_s25, %s7724_s24 }
  0x1b   : > { %8844 = sst [smem:[#allocation29_spill]] %s7756_s8  ;;  %p7911_p3 = por %p8818_p1, %p68_p0 }
  0x1c   : > { %8845 = sst [smem:[#allocation30_spill]] %s7760_s9  ;;  %p215_p4 = scmp.ne.s32.totalorder %s7720_s23, %s7716_s22 }
  0x1d   : > { %8846 = sst [smem:[#allocation31_spill]] %s7764_s10  ;;  %p7919_p5 = por %p104_p2, %p8818_p1 }
  0x1e   : > { %8847 = sst [smem:[#allocation32_spill]] %s7768_s11  ;;  %p216_p6 = scmp.eq.s32.totalorder %s7902_s13, 15 }
  0x1f   : > { %s8848_s16 = scalar_select %p7911_p3, 1, 0 }
  0x20   : > { %s8849_s17 = scalar_select %p7919_p5, 1, 0 }
  0x21   : > { %p221_p7 = scmp.ne.s32.totalorder %s7716_s22, %s7712_s21  ;;  %p222_p8 = scmp.eq.s32.totalorder %s5062_s14, 15 }
  0x22   : > { %8850 = sst [smem:[#allocation33_spill]] %s8849_s17  ;;  %p7926_p9 = por %p216_p6, %p215_p4 }
  0x23   : > { %p5065_p10 = scmp.ge.s32.totalorder %s7772_s12, 1  ;;  %p7931_p11 = por %p222_p8, %p221_p7 }
  0x24   : > { %s8851_s18 = scalar_select %p7926_p9, 1, 0 }
  0x25   : > { %s8853_s19 = scalar_select %p7931_p11, 1, 0 }
  0x26   : > { %8852 = sst [smem:[#allocation34_spill]] %s8851_s18  ;;  %p229_p12 = scmp.lt.s32.totalorder %s7772_s12, 17 }
  0x27   : > { %8854 = sst [smem:[#allocation35_spill]] %s8853_s19  ;;  %s7774_s24 = smov [#allocation11]  }
  0x28   : > { %p7936_p13 = pnand %p5065_p10, %p229_p12  ;;  %s241_s27 = sshll.u32 %s7774_s24, 4  ;;  %s242_s27 = int_to_ptr.vmem [resolvable:$true] %s241_s27 }
  0x29   : > { %s7775_s15 = smov [#allocation12]   ;;  %s7776_s21 = smov [#allocation14]  }
  0x2a   : > { %p6925_p0 = pneg %p7936_p13  ;;  %s255_s19 = sshll.u32 %s7775_s15, 4  ;;  %s256_s19 = int_to_ptr.vmem [resolvable:$true] %s255_s19 }
  0x2b   : > { %s265_s6 = sshll.u32 %s7776_s21, 4  ;;  %s7447_s18 = scalar_lea.vmem %s242_s27, 1024  ;;  %s266_s6 = int_to_ptr.vmem [resolvable:$true] %s265_s6 }
  0x2c   : > { %p7944_p2 = pnand %p6925_p0, %p8818_p1  ;;  %p7448_p6 = scmp.ne.s32.totalorder %s242_s27, %s7447_s18 }
  0x2d   : > { %p7455_p10 = scmp.lt.s32.totalorder %s242_s27, %s242_s27  ;;  %p7456_p12 = scmp.lt.s32.totalorder %s7447_s18, %s7447_s18 }
  0x2e   : > { %p7438_p4 = pneg %p7944_p2 }
  0x2f   : > { %p7457_p0 = por %p7456_p12, %p7455_p10 }
  0x30   : > { %p7450_p7 = pnand %p7448_p6, %p7438_p4 }
  0x32   : > { %p7451_p8 = pneg %p7450_p7 }
  0x34   : > { %p7458_p1 = pnand %p7457_p0, %p7451_p8 }
  0x36   : > { %7461 = shalt.err (!%p7458_p1)
}
  0x37   : > { %s8824_s24 = smov 64   ;;  %s8825_s15 = smov 4  }
  0x38   : > { %s8857_s2 = sld [smem:[#allocation39_spill]]  ;;  %s7473_s8 = scalar_lea.vmem %s256_s19, 16 }
  0x39   : > { %p7474_p6 = scmp.ne.s32.totalorder %s256_s19, %s7473_s8  ;;  %s7480_s18 = scalar_lea.vmem %s256_s19, 32 }
  0x3a   : > { %p7481_p1 = scmp.lt.s32.totalorder %s256_s19, %s256_s19  ;;  %p7482_p8 = scmp.lt.s32.totalorder %s7480_s18, %s7473_s8 }
  0x3b   : > { %p7476_p7 = pnand %p7474_p6, %p7438_p4 }
  0x3c   : > { %p7483_p12 = por %p7482_p8, %p7481_p1 }
  0x3d   : > { %p7477_p10 = pneg %p7476_p7 }
  0x3e   : > { %6928 = dma.hbm_to_vmem [thread:$0]  (!%p7944_p2), %s8857_s2, 1024, %s242_s27, [#allocation10], %s8824_s24, %s8824_s24, %s8825_s15  }
  0x3f   : > { %p7484_p0 = pnand %p7483_p12, %p7477_p10 }
  0x41   : > { %7487 = shalt.err (!%p7484_p0)
}
  0x42   : > { %s8858_s3 = sld [smem:[#allocation40_spill]]  ;;  %s7499_s7 = scalar_lea.vmem %s266_s6, 1024 }
  0x43   : > { %p7500_p11 = scmp.ne.s32.totalorder %s266_s6, %s7499_s7  ;;  %p7507_p9 = scmp.lt.s32.totalorder %s266_s6, %s266_s6 }
  0x44   : > { %p7508_p5 = scmp.lt.s32.totalorder %s7499_s7, %s7499_s7 }
  0x45   : > { %p7502_p6 = pnand %p7500_p11, %p7438_p4 }
  0x46   : > { %p7509_p3 = por %p7508_p5, %p7507_p9 }
  0x47   : > { %p7503_p7 = pneg %p7502_p6 }
  0x48   : > { %6931 = dma.hbm_to_vmem [thread:$0]  (!%p7944_p2), %s8858_s3, 16, %s256_s19, [#allocation13]  }
  0x49   : > { %p7510_p1 = pnand %p7509_p3, %p7503_p7 }
  0x4b   : > { %7513 = shalt.err (!%p7510_p1)
}
  0x4c   : > { %s8859_s4 = sld [smem:[#allocation41_spill]]  ;;  %s7779_s8 = smov [#allocation15]  }
  0x4d   : > { %s279_s19 = sshll.u32 %s7779_s8, 4  ;;  %s280_s19 = int_to_ptr.vmem [resolvable:$true] %s279_s19 }
  0x4e   : > { %s7525_s27 = scalar_lea.vmem %s280_s19, 16  ;;  %s7532_s21 = scalar_lea.vmem %s280_s19, 32 }
  0x4f   : > { %p7526_p11 = scmp.ne.s32.totalorder %s280_s19, %s7525_s27  ;;  %p7533_p9 = scmp.lt.s32.totalorder %s280_s19, %s280_s19 }
  0x50   : > { %p7534_p10 = scmp.lt.s32.totalorder %s7532_s21, %s7525_s27 }
  0x51   : > { %p7528_p5 = pnand %p7526_p11, %p7438_p4 }
  0x52   : > { %6934 = dma.hbm_to_vmem [thread:$0]  (!%p7944_p2), %s8859_s4, 1024, %s266_s6, [#allocation13], %s8824_s24, %s8824_s24, %s8825_s15  }
  0x53   : > { %p7529_p3 = pneg %p7528_p5  ;;  %p7535_p8 = por %p7534_p10, %p7533_p9 }
  0x55   : > { %p7536_p12 = pnand %p7535_p8, %p7529_p3 }
  0x57   : > { %7539 = shalt.err (!%p7536_p12)
}
  0x58   : > { %s8860_s5 = sld [smem:[#allocation42_spill]]  ;;  %p62_p4 = scmp.ne.s32.totalorder %s7744_s29, %s7740_s28 }
  0x59   : > { %p63_p0 = scmp.eq.s32.totalorder %s7772_s12, 0  ;;  %p6953_p6 = scmp.lt.s32.totalorder %s7772_s12, 16 }
  0x5a   : > { %s290_s22 = sand.u32 1, %s7744_s29   ;;  %s5073_s14 = sshll.u32 %s7760_s9, 2 }
  0x5b   : > { %p64_p7 = por %p63_p0, %p62_p4  ;;  %s5071_s30 = sshll.u32 %s290_s22, 9 }
  0x5c   : > { %s5543_s8 = sshll.u32 %s7764_s10, 8  ;;  %s294_s18 = scalar_lea.vmem [#allocation6], %s5071_s30 }
  0x5d   : > { %s301_s27 = sadd.s32 %s5543_s8, %s5073_s14  ;;  %s304_s7 = sshll.u32 %s294_s18, 4  ;;  %s305_s7 = int_to_ptr.vmem [resolvable:$true] %s304_s7 }
  0x5e   : > { %6937 = dma.hbm_to_vmem [thread:$0]  (!%p7944_p2), %s8860_s5, 16, %s280_s19, [#allocation16]  }
  0x5f   : > { %s5075_s21 = sshll.u32 %s301_s27, 6  ;;  %s8861_s0 = sld [smem:[#allocation38_spill]] }
  0x60   : > { %p8003_p2 = pnand %p6953_p6, %p64_p7  ;;  %s291_s6 = scalar_lea.sflag [#allocation7], %s290_s22 }
  0x61   : > { %s7553_s3 = scalar_lea.vmem %s305_s7, 8192  ;;  %s7780_s14 = smov [#allocation6]  }
  0x62   : > { %p7542_p1 = pneg %p8003_p2  ;;  %p7554_p11 = scmp.ne.s32.totalorder %s305_s7, %s7553_s3 }
  0x63   : > { %s7558_s30 = sshll.u32 %s7780_s14, 4  ;;  %s7559_s30 = int_to_ptr.vmem [resolvable:$false] %s7558_s30 }
  0x64   : > { %p7556_p5 = pnand %p7554_p11, %p7542_p1  ;;  %s7560_s8 = scalar_lea.vmem %s7559_s30, 16384 }
  0x65   : > { %s303_s2 = scalar_lea.hbm %s8861_s0, %s5075_s21  ;;  %p7561_p9 = scmp.lt.s32.totalorder %s305_s7, %s7559_s30 }
  0x66   : > { %p7557_p3 = pneg %p7556_p5  ;;  %p7562_p10 = scmp.lt.s32.totalorder %s7560_s8, %s7553_s3 }
  0x68   : > { %p7563_p8 = por %p7562_p10, %p7561_p9 }
  0x6a   : > { %p7564_p12 = pnand %p7563_p8, %p7557_p3 }
  0x6c   : > { %7567 = shalt.err (!%p7564_p12)
}
  0x6d   : > { %s7781_s24 = smov 512   ;;  %s7782_s15 = smov 256  }
  0x6e   : > { %s7783_s22 = smov 16   ;;  %s39_s3 = sadd.s32 1, %s7760_s9 }
  0x6f   : > { %6941 = dma.hbm_to_vmem [thread:$0]  (!%p8003_p2), %s303_s2, 8192, %s305_s7, %s291_s6, %s7781_s24, %s7782_s15, %s7783_s22  }
  0x70   : > { %p40_p4 = scmp.ge.s32.totalorder %s39_s3, 2  ;;  %s42_s27 = sadd.s32 1, %s7764_s10 }
  0x71   : > { %s46_s21 = sadd.s32 1, %s7768_s11  ;;  %p78_p7 = scmp.eq.s32.totalorder %s7768_s11, 0 }
  0x72   : > { %s8921_s3 = smov (%p40_p4, %s39_s3), 0  ;;  %s8923_s27 = smov (!%p40_p4, %s42_s27), %s7764_s10 }
  0x73   : > { %s51_s18 = ssub.s32 %s7760_s9, %s8921_s3  ;;  %p79_p1 = scmp.eq.s32.totalorder %s7764_s10, 0 }
  0x74   : > { %p44_p11 = scmp.ge.s32.totalorder %s8923_s27, 4  ;;  %s91_s19 = sadd.s32 1, %s7732_s26 }
  0x75   : > { %p80_p2 = pnand %p79_p1, %p78_p7  ;;  %p98_p5 = scmp.ne.s32.totalorder %s7732_s26, %s7728_s25 }
  0x76   : > { %s8925_s27 = smov (%p44_p11, %s8923_s27), 0  ;;  %s8927_s21 = smov (!%p44_p11, %s46_s21), %s7768_s11 }
  0x77   : > { %s50_s2 = ssub.s32 %s7764_s10, %s8925_s27  ;;  %p84_p3 = scmp.eq.s32.totalorder %s8925_s27, 0 }
  0x78   : > { %p48_p9 = scmp.ge.s32.totalorder %s8927_s21, 2  ;;  %s52_s6 = sor.u32 %s51_s18, %s50_s2 }
  0x79   : > { %p53_p10 = scmp.eq.s32.totalorder %s52_s6, 0  ;;  %p8032_p8 = por %p98_p5, %p63_p0 }
  0x7a   : > { %s8929_s21 = smov (%p48_p9, %s8927_s21), 0  ;;  %s8865_s14 = sadd.s32 1, %s7744_s29 }
  0x7b   : > { %8864 = sst [smem:[#allocation36_spill]] %s8929_s21  ;;  %p83_p12 = scmp.eq.s32.totalorder %s8929_s21, 0 }
  0x7c   : > { %s8041_s30 = scalar_select %p53_p10, %s7744_s29, %s8865_s14  }
  0x7d   : > { %s5063_s8 = scalar_select %p80_p2, 1, %s7760_s9 }
  0x7e   : > { %8866 = sst [smem:[#allocation37_spill]] %s8041_s30  ;;  %p198_p4 = scmp.eq.s32.totalorder %s7768_s11, 1 }
  0x7f   : > { %p200_p7 = scmp.eq.s32.totalorder %s8929_s21, 1  ;;  %s314_s24 = sand.u32 1, %s7772_s12  }
  0x80   : > { %p85_p1 = pnand %p84_p3, %p83_p12  ;;  %s316_s6 = sand.u32 1, %s7732_s26  }
  0x81   : > { %s199_s15 = scalar_select %p198_p4, %s7764_s10, 0 }
  0x82   : > { %s5064_s22 = scalar_select %p85_p1, 1, %s8921_s3 }
  0x83   : > { %s201_s18 = scalar_select %p200_p7, %s8925_s27, 0 }
  0x84   : > { %s88_s2 = ssub.s32 %s5063_s8, %s5064_s22  ;;  %s5076_s14 = sshll.u32 %s316_s6, 8 }
  0x85   : > { %p89_p0 = scmp.eq.s32.totalorder %s88_s2, 0  ;;  %s202_s0 = ssub.s32 %s199_s15, %s201_s18 }
  0x86   : > { %p203_p11 = scmp.eq.s32.totalorder %s202_s0, 0  ;;  %s8867_s5 = sadd.s32 1, %s7720_s23 }
  0x87   : > { %s8053_s4 = scalar_select %p89_p0, %s7732_s26, %s91_s19  }
  0x88   : > { %s8058_s9 = scalar_select %p203_p11, %s7720_s23, %s8867_s5  }
  0x89   : > { %s5544_s11 = sshll.u32 %s5063_s8, 12  ;;  %s318_s29 = scalar_lea.vmem [#allocation9], %s5076_s14 }
  0x8a   : > { %s329_s10 = scalar_lea.hbm %s8807_s1, %s5544_s11  ;;  %s330_s17 = sshll.u32 %s318_s29, 4  ;;  %s331_s17 = int_to_ptr.vmem [resolvable:$true] %s330_s17 }
  0x8b   : > { %p8067_p2 = pnand %p6953_p6, %p8032_p8  ;;  %s315_s0 = scalar_lea.sflag [#allocation10], %s314_s24 }
  0x8c   : > { %s7581_s5 = scalar_lea.vmem %s331_s17, 4096  ;;  %s7784_s19 = smov [#allocation9]  }
  0x8d   : > { %p7570_p5 = pneg %p8067_p2  ;;  %p7582_p3 = scmp.ne.s32.totalorder %s331_s17, %s7581_s5 }
  0x8e   : > { %s7586_s21 = sshll.u32 %s7784_s19, 4  ;;  %s7587_s21 = int_to_ptr.vmem [resolvable:$false] %s7586_s21 }
  0x8f   : > { %p7584_p9 = pnand %p7582_p3, %p7570_p5  ;;  %s7588_s11 = scalar_lea.vmem %s7587_s21, 8192 }
  0x90   : > { %p7589_p12 = scmp.lt.s32.totalorder %s331_s17, %s7587_s21  ;;  %p7590_p4 = scmp.lt.s32.totalorder %s7588_s11, %s7581_s5 }
  0x91   : > { %p7585_p10 = pneg %p7584_p9 }
  0x92   : > { %p7591_p7 = por %p7590_p4, %p7589_p12 }
  0x94   : > { %p7592_p1 = pnand %p7591_p7, %p7585_p10 }
  0x96   : > { %7595 = shalt.err (!%p7592_p1)
}
  0x97   : > { %s8869_s29 = smov 4   ;;  %s8870_s7 = smov 64  }
  0x98   : > { %6944 = dma.hbm_to_vmem [thread:$0]  (!%p8067_p2), %s329_s10, 4096, %s331_s17, %s315_s0, %s8870_s7, %s8870_s7, %s8869_s29  }
  0x99   : > { %342 = sbr.rel (%p7936_p13) target bundleno = 1664 (0x680), region = 44  ;;  %s344_s30 = sand.u32 (!%p7936_p13), 1, %s7740_s28  }
  0x9a   : > { %s5081_s8 = sshll.u32 (!%p7936_p13), %s344_s30, 9  ;;  %s345_s24 = scalar_lea.sflag (!%p7936_p13), [#allocation7], %s344_s30 }
  0x9b   : > { %s8081_s15 = scalar_lea.vmem (!%p7936_p13), [#allocation6], %s5081_s8  ;;  %p8871_p6 = scmp.ne.s32.totalorder (!%p7936_p13), %s8848_s16, 0 }
  0x9e   : > { %7687 = dma.done.wait (%p8871_p6), %s345_s24, 8192  }
  0x9f   : > { %7689 = vsyncadd (%p8871_p6), %s345_s24, 4294959104  ;;  %s8872_s18 = sld [smem:[#allocation33_spill]]  ;;  %s353_s2 = sand.u32 1, %s7902_s13  }
  0xa0   : > { %s355_s10 = sand.u32 1, %s7728_s25   ;;  %s354_s20 = scalar_lea.sflag [#allocation10], %s353_s2 }
  0xa1   : > { %s5082_s17 = sshll.u32 %s355_s10, 8 }
  0xa2   : > { %s8089_s6 = scalar_lea.vmem [#allocation9], %s5082_s17 }
  0xa5   : > { %p8873_p13 = scmp.ne.s32.totalorder %s8872_s18, 0 }
  0xa7   : > { %7691 = dma.done.wait (%p8873_p13), %s354_s20, 4096  }
  0xa8   : > { %7693 = vsyncadd (%p8873_p13), %s354_s20, 4294963200  ;;  %p8874_p8 = scmp.eq.s32.totalorder %s7902_s13, 0 }
  0xaa   : > { %7695 = dma.done.wait (%p8874_p8), [#allocation10], 1024   ;;  %p8875_p0 = pmov %p8874_p8 }
  0xac   : > { %7697 = vsyncadd (%p8875_p0), [#allocation10], 4294966272  ;;  %p8876_p11 = pmov %p8875_p0 }
  0xad   : > { %p8877_p2 = pmov %p8875_p0 }
  0xae   : > { %7699 = dma.done.wait (%p8876_p11), [#allocation13], 1040  }
  0xaf   : > { %7701 = vsyncadd (%p8877_p2), [#allocation13], 4294966256  ;;  %p8878_p5 = pmov %p8875_p0 }
  0xb0   : > { %p8879_p3 = pmov %p8875_p0 }
  0xb1   : > { %7703 = dma.done.wait (%p8878_p5), [#allocation16], 16  }
  0xb2   : > { %7705 = vsyncadd (%p8879_p3), [#allocation16], 4294967280  ;;  %s8880_s16 = sld [smem:[#allocation25_spill]] }
  0xb3   : > { %s8881_s14 = sld [smem:[#allocation27_spill]] }
  0xb4   : > { %s8882_s21 = sld [smem:[#allocation29_spill]] }
  0xb8   : > { %s404_s22 = sand.u32 1, %s8880_s16  }
  0xb9   : > { %s8109_s0 = sshll.u32 %s8881_s14, 9  ;;  %s5087_s5 = sshll.u32 %s404_s22, 8 }
  0xba   : > { %s8113_s19 = scalar_lea.vmem [#allocation17], %s5087_s5  ;;  %p5089_p9 = scmp.ne.s32.totalorder %s8882_s21, 0 }
  0xbb   : > { %s8883_s11 = sld [smem:[#allocation28_spill]] (!%p5089_p9) }
  0xbc   : > { %423 = sbr.rel (%p5089_p9) target bundleno = 911 (0x38f), region = 72 }
  0xc1   : > { %p5090_p10 = scmp.ne.s32.totalorder %s8883_s11, 0 }
  0xc2   : > { %s1293_s13 = sshra.s32 (!%p5090_p10), %s8109_s0, 3 }
  0xc3   : > { %427 = sbr.rel (%p5090_p10) target bundleno = 491 (0x1eb), region = 76  ;;  %s5195_s29 = sshll.u32 (!%p5090_p10), %s1293_s13, 2 }
  0xc4   : > { %s8150_s7 = scalar_lea.vmem (!%p5090_p10), [#allocation2], %s5195_s29 }
  0xc8   : > { %v7100_v0 = vld [vmem:[#allocation11 + $0x38] sm:$0xff]   ;;  %v7101_v1 = vld [vmem:[#allocation11 + $0x30] sm:$0xff]   ;;  %v7102_v2 = vld [vmem:[#allocation11 + $0x28] sm:$0xff]  }
  0xc9   : > { %6711 = vmatprep.subr.bf16.mxu0 %v7100_v0  ;;  %6871 = vmatprep.subr.bf16.mxu1 %v7100_v0  ;;  %v7103_v3 = vld [vmem:[#allocation11 + $0x20] sm:$0xff]   ;;  %v7104_v6 = vld [vmem:[#allocation11 + $0x18] sm:$0xff]   ;;  %v7105_v7 = vld [vmem:[#allocation11 + $0x10] sm:$0xff]  }
  0xca   : > { %6712 = vmatpush3.bf16.msra.mxu0 %v7100_v0  ;;  %6879 = vmatpush3.bf16.msra.mxu1 %v7100_v0  ;;  %v7108_v4 = vld [vmem:[%s8089_s6] sm:$0xff]   ;;  %v7106_v8 = vld [vmem:[#allocation11 + $0x8] sm:$0xff]   ;;  %v7112_v12 = vld [vmem:[%s8089_s6 + $0x10] sm:$0xff]  }
  0xcb   : > { %6713 = vmatprep.subr.bf16.mxu0 %v7101_v1  ;;  %6872 = vmatprep.subr.bf16.mxu1 %v7101_v1  ;;  %v7109_v5 = vld [vmem:[%s8089_s6 + $0x80] sm:$0xff]   ;;  %v7110_v10 = vld [vmem:[%s8089_s6 + $0x8] sm:$0xff]   ;;  %v7113_v13 = vld [vmem:[%s8089_s6 + $0x90] sm:$0xff]  }
  0xcc   : > { %6727 = vmatprep.mubr.bf16.mxu0 %v7108_v4  ;;  %6759 = vmatprep.mubr.bf16.mxu1 %v7109_v5  ;;  %v7107_v9 = vld [vmem:[#allocation11] sm:$0xff]   ;;  %v7111_v11 = vld [vmem:[%s8089_s6 + $0x88] sm:$0xff]   ;;  %v7114_v14 = vld [vmem:[%s8089_s6 + $0x18] sm:$0xff]  }
  0xcd   : > { %v7115_v15 = vld [vmem:[%s8089_s6 + $0x98] sm:$0xff]   ;;  %v7116_v16 = vld [vmem:[%s8089_s6 + $0x20] sm:$0xff]   ;;  %v7118_v18 = vld [vmem:[%s8089_s6 + $0x28] sm:$0xff]  }
  0xce   : > { %6714 = vmatpush3.bf16.msra.mxu0 %v7101_v1  ;;  %6880 = vmatpush3.bf16.msra.mxu1 %v7101_v1  ;;  %v7117_v17 = vld [vmem:[%s8089_s6 + $0xa0] sm:$0xff]   ;;  %v7119_v19 = vld [vmem:[%s8089_s6 + $0xa8] sm:$0xff]   ;;  %v7120_v20 = vld [vmem:[%s8089_s6 + $0x30] sm:$0xff]  }
  0xcf   : > { %6715 = vmatprep.subr.bf16.mxu0 %v7102_v2  ;;  %6873 = vmatprep.subr.bf16.mxu1 %v7102_v2  ;;  %v7121_v21 = vld [vmem:[%s8089_s6 + $0xb0] sm:$0xff]   ;;  %v7122_v22 = vld [vmem:[%s8089_s6 + $0x38] sm:$0xff]   ;;  %v7124_v24 = vld [vmem:[%s8089_s6 + $0x40] sm:$0xff]  }
  0xd0   : > { %v7123_v23 = vld [vmem:[%s8089_s6 + $0xb8] sm:$0xff]   ;;  %v7125_v25 = vld [vmem:[%s8089_s6 + $0xc0] sm:$0xff]   ;;  %v7126_v26 = vld [vmem:[%s8089_s6 + $0x48] sm:$0xff]  }
  0xd1   : > { %v7127_v27 = vld [vmem:[%s8089_s6 + $0xc8] sm:$0xff]   ;;  %v7128_v28 = vld [vmem:[%s8089_s6 + $0x50] sm:$0xff]   ;;  %v7130_v30 = vld [vmem:[%s8089_s6 + $0x58] sm:$0xff]  }
  0xd2   : > { %6716 = vmatpush3.bf16.msra.mxu0 %v7102_v2  ;;  %6881 = vmatpush3.bf16.msra.mxu1 %v7102_v2  ;;  %v7129_v29 = vld [vmem:[%s8089_s6 + $0xd0] sm:$0xff]   ;;  %v7131_v31 = vld [vmem:[%s8089_s6 + $0xd8] sm:$0xff]   ;;  %v7132_v32 = vld [vmem:[%s8089_s6 + $0x60] sm:$0xff]  }
  0xd3   : > { %6717 = vmatprep.subr.bf16.mxu0 %v7103_v3  ;;  %6874 = vmatprep.subr.bf16.mxu1 %v7103_v3  ;;  %v7133_v33 = vld [vmem:[%s8089_s6 + $0xe0] sm:$0xff]   ;;  %v7134_v34 = vld [vmem:[%s8089_s6 + $0x68] sm:$0xff]   ;;  %v7136_v36 = vld [vmem:[%s8089_s6 + $0x70] sm:$0xff]  }
  0xd4   : > { %v7135_v35 = vld [vmem:[%s8089_s6 + $0xe8] sm:$0xff]   ;;  %v7137_v37 = vld [vmem:[%s8089_s6 + $0xf0] sm:$0xff]   ;;  %v7138_v38 = vld [vmem:[%s8089_s6 + $0x78] sm:$0xff]  }
  0xd5   : > { %v7139_v39 = vld [vmem:[%s8089_s6 + $0xf8] sm:$0xff]  }
  0xd6   : > { %6718 = vmatpush3.bf16.msra.mxu0 %v7103_v3  ;;  %6882 = vmatpush3.bf16.msra.mxu1 %v7103_v3 }
  0xd7   : > { %6719 = vmatprep.subr.bf16.mxu0 %v7104_v6  ;;  %6875 = vmatprep.subr.bf16.mxu1 %v7104_v6 }
  0xda   : > { %6720 = vmatpush3.bf16.msra.mxu0 %v7104_v6  ;;  %6883 = vmatpush3.bf16.msra.mxu1 %v7104_v6 }
  0xdb   : > { %6721 = vmatprep.subr.bf16.mxu0 %v7105_v7  ;;  %6876 = vmatprep.subr.bf16.mxu1 %v7105_v7 }
  0xde   : > { %6722 = vmatpush3.bf16.msra.mxu0 %v7105_v7  ;;  %6884 = vmatpush3.bf16.msra.mxu1 %v7105_v7 }
  0xdf   : > { %6723 = vmatprep.subr.bf16.mxu0 %v7106_v8  ;;  %6877 = vmatprep.subr.bf16.mxu1 %v7106_v8 }
  0xe2   : > { %6724 = vmatpush3.bf16.msra.mxu0 %v7106_v8  ;;  %6885 = vmatpush3.bf16.msra.mxu1 %v7106_v8 }
  0xe3   : > { %6725 = vmatprep.subr.bf16.mxu0 %v7107_v9  ;;  %6878 = vmatprep.subr.bf16.mxu1 %v7107_v9 }
  0xe6   : > { %6726 = vmatpush3.bf16.msra.mxu0 %v7107_v9  ;;  %6886 = vmatpush3.bf16.msra.mxu1 %v7107_v9 }
  0xe9   : > { %6728 = vmatmul.mubr.bf16.vlgmr.msra.gmra.mxu0 %v7110_v10  ;;  %6760 = vmatmul.mubr.bf16.vlgmr.msra.gmra.mxu1 %v7111_v11 }
  0xea   : > { %6731 = vmatprep.mubr.bf16.mxu0 %v7112_v12  ;;  %6763 = vmatprep.mubr.bf16.mxu1 %v7113_v13 }
  0xf1   : > { %6732 = vmatmul.mubr.bf16.gmra.mxu0 %v7114_v14  ;;  %6764 = vmatmul.mubr.bf16.gmra.mxu1 %v7115_v15 }
  0xf2   : > { %6735 = vmatprep.mubr.bf16.mxu0 %v7116_v16  ;;  %6767 = vmatprep.mubr.bf16.mxu1 %v7117_v17 }
  0xf9   : > { %6736 = vmatmul.mubr.bf16.gmra.mxu0 %v7118_v18  ;;  %6768 = vmatmul.mubr.bf16.gmra.mxu1 %v7119_v19 }
  0xfa   : > { %6739 = vmatprep.mubr.bf16.mxu0 %v7120_v20  ;;  %6771 = vmatprep.mubr.bf16.mxu1 %v7121_v21 }
 0x101   : > { %6740 = vmatmul.mubr.bf16.gmra.mxu0 %v7122_v22  ;;  %6772 = vmatmul.mubr.bf16.gmra.mxu1 %v7123_v23 }
 0x102   : > { %6743 = vmatprep.mubr.bf16.mxu0 %v7124_v24  ;;  %6775 = vmatprep.mubr.bf16.mxu1 %v7125_v25 }
 0x109   : > { %6744 = vmatmul.mubr.bf16.gmra.mxu0 %v7126_v26  ;;  %6776 = vmatmul.mubr.bf16.gmra.mxu1 %v7127_v27 }
 0x10a   : > { %6747 = vmatprep.mubr.bf16.mxu0 %v7128_v28  ;;  %6779 = vmatprep.mubr.bf16.mxu1 %v7129_v29 }
 0x111   : > { %6748 = vmatmul.mubr.bf16.gmra.mxu0 %v7130_v30  ;;  %6780 = vmatmul.mubr.bf16.gmra.mxu1 %v7131_v31 }
 0x112   : > { %6751 = vmatprep.mubr.bf16.mxu0 %v7132_v32  ;;  %6783 = vmatprep.mubr.bf16.mxu1 %v7133_v33 }
 0x119   : > { %6752 = vmatmul.mubr.bf16.gmra.mxu0 %v7134_v34  ;;  %6784 = vmatmul.mubr.bf16.gmra.mxu1 %v7135_v35 }
 0x11a   : > { %6755 = vmatprep.mubr.bf16.mxu0 %v7136_v36  ;;  %6787 = vmatprep.mubr.bf16.mxu1 %v7137_v37 }
 0x121   : > { %6756 = vmatmul.mubr.bf16.gmra.mxu0 %v7138_v38  ;;  %6788 = vmatmul.mubr.bf16.gmra.mxu1 %v7139_v39 }
 0x1a9   : > { %v6729_v40 = vpop.f32.mrf.mxu0  ;;  %v6761_v41 = vpop.f32.mrf.mxu1 }
 0x1ab   : > { %v782_v42 = vpop.f32.mrf.mxu0  ;;  %v910_v43 = vpop.f32.mrf.mxu1 }
 0x1ad   : > { %v6730_v44 = vpop.f32.mrf.mxu0  ;;  %v6762_v45 = vpop.f32.mrf.mxu1 }
 0x1ae   : > { %v5714_v46 = vpack.c.bf16 %v6730_v44, %v6729_v40  ;;  %v5794_v47 = vpack.c.bf16 %v6762_v45, %v6761_v41 }
 0x1af   : > { %v785_v48 = vpop.f32.mrf.mxu0  ;;  %v913_v49 = vpop.f32.mrf.mxu1 }
 0x1b0   : > { %6106 = vst [vmem:[%s8150_s7 + $0x8] sm:$0xff] %v5714_v46   ;;  %6122 = vst [vmem:[%s8150_s7 + $0x88] sm:$0xff] %v5794_v47   ;;  %v5709_v50 = vpack.c.bf16 %v785_v48, %v782_v42  ;;  %v5789_v51 = vpack.c.bf16 %v913_v49, %v910_v43 }
 0x1b1   : > { %v6733_v52 = vpop.f32.mrf.mxu0  ;;  %v6765_v53 = vpop.f32.mrf.mxu1 }
 0x1b2   : > { %5710 = vst [vmem:[%s8150_s7] sm:$0xff] %v5709_v50   ;;  %6121 = vst [vmem:[%s8150_s7 + $0x80] sm:$0xff] %v5789_v51  }
 0x1b3   : > { %v798_v54 = vpop.f32.mrf.mxu0  ;;  %v926_v55 = vpop.f32.mrf.mxu1 }
 0x1b5   : > { %v6734_v56 = vpop.f32.mrf.mxu0  ;;  %v6766_v57 = vpop.f32.mrf.mxu1 }
 0x1b6   : > { %v5724_v58 = vpack.c.bf16 %v6734_v56, %v6733_v52  ;;  %v5804_v59 = vpack.c.bf16 %v6766_v57, %v6765_v53 }
 0x1b7   : > { %v801_v60 = vpop.f32.mrf.mxu0  ;;  %v929_v61 = vpop.f32.mrf.mxu1 }
 0x1b8   : > { %6108 = vst [vmem:[%s8150_s7 + $0x18] sm:$0xff] %v5724_v58   ;;  %6124 = vst [vmem:[%s8150_s7 + $0x98] sm:$0xff] %v5804_v59   ;;  %v5719_v62 = vpack.c.bf16 %v801_v60, %v798_v54  ;;  %v5799_v63 = vpack.c.bf16 %v929_v61, %v926_v55 }
 0x1b9   : > { %v6737_v0 = vpop.f32.mrf.mxu0  ;;  %v6769_v1 = vpop.f32.mrf.mxu1 }
 0x1ba   : > { %6107 = vst [vmem:[%s8150_s7 + $0x10] sm:$0xff] %v5719_v62   ;;  %6123 = vst [vmem:[%s8150_s7 + $0x90] sm:$0xff] %v5799_v63  }
 0x1bb   : > { %v814_v2 = vpop.f32.mrf.mxu0  ;;  %v942_v3 = vpop.f32.mrf.mxu1 }
 0x1bd   : > { %v6738_v4 = vpop.f32.mrf.mxu0  ;;  %v6770_v5 = vpop.f32.mrf.mxu1 }
 0x1be   : > { %v5734_v6 = vpack.c.bf16 %v6738_v4, %v6737_v0  ;;  %v5814_v7 = vpack.c.bf16 %v6770_v5, %v6769_v1 }
 0x1bf   : > { %v817_v8 = vpop.f32.mrf.mxu0  ;;  %v945_v9 = vpop.f32.mrf.mxu1 }
 0x1c0   : > { %6110 = vst [vmem:[%s8150_s7 + $0x28] sm:$0xff] %v5734_v6   ;;  %6126 = vst [vmem:[%s8150_s7 + $0xa8] sm:$0xff] %v5814_v7   ;;  %v5729_v10 = vpack.c.bf16 %v817_v8, %v814_v2  ;;  %v5809_v11 = vpack.c.bf16 %v945_v9, %v942_v3 }
 0x1c1   : > { %v6741_v12 = vpop.f32.mrf.mxu0  ;;  %v6773_v13 = vpop.f32.mrf.mxu1 }
 0x1c2   : > { %6109 = vst [vmem:[%s8150_s7 + $0x20] sm:$0xff] %v5729_v10   ;;  %6125 = vst [vmem:[%s8150_s7 + $0xa0] sm:$0xff] %v5809_v11  }
 0x1c3   : > { %v830_v14 = vpop.f32.mrf.mxu0  ;;  %v958_v15 = vpop.f32.mrf.mxu1 }
 0x1c5   : > { %v6742_v16 = vpop.f32.mrf.mxu0  ;;  %v6774_v17 = vpop.f32.mrf.mxu1 }
 0x1c6   : > { %v5744_v18 = vpack.c.bf16 %v6742_v16, %v6741_v12  ;;  %v5824_v19 = vpack.c.bf16 %v6774_v17, %v6773_v13 }
 0x1c7   : > { %v833_v20 = vpop.f32.mrf.mxu0  ;;  %v961_v21 = vpop.f32.mrf.mxu1 }
 0x1c8   : > { %6112 = vst [vmem:[%s8150_s7 + $0x38] sm:$0xff] %v5744_v18   ;;  %6128 = vst [vmem:[%s8150_s7 + $0xb8] sm:$0xff] %v5824_v19   ;;  %v5739_v22 = vpack.c.bf16 %v833_v20, %v830_v14  ;;  %v5819_v23 = vpack.c.bf16 %v961_v21, %v958_v15 }
 0x1c9   : > { %v6745_v24 = vpop.f32.mrf.mxu0  ;;  %v6777_v25 = vpop.f32.mrf.mxu1 }
 0x1ca   : > { %6111 = vst [vmem:[%s8150_s7 + $0x30] sm:$0xff] %v5739_v22   ;;  %6127 = vst [vmem:[%s8150_s7 + $0xb0] sm:$0xff] %v5819_v23  }
 0x1cb   : > { %v846_v26 = vpop.f32.mrf.mxu0  ;;  %v974_v27 = vpop.f32.mrf.mxu1 }
 0x1cd   : > { %v6746_v28 = vpop.f32.mrf.mxu0  ;;  %v6778_v29 = vpop.f32.mrf.mxu1 }
 0x1ce   : > { %v5754_v30 = vpack.c.bf16 %v6746_v28, %v6745_v24  ;;  %v5834_v31 = vpack.c.bf16 %v6778_v29, %v6777_v25 }
 0x1cf   : > { %v849_v32 = vpop.f32.mrf.mxu0  ;;  %v977_v33 = vpop.f32.mrf.mxu1 }
 0x1d0   : > { %6114 = vst [vmem:[%s8150_s7 + $0x48] sm:$0xff] %v5754_v30   ;;  %6130 = vst [vmem:[%s8150_s7 + $0xc8] sm:$0xff] %v5834_v31   ;;  %v5749_v34 = vpack.c.bf16 %v849_v32, %v846_v26  ;;  %v5829_v35 = vpack.c.bf16 %v977_v33, %v974_v27 }
 0x1d1   : > { %v6749_v36 = vpop.f32.mrf.mxu0  ;;  %v6781_v37 = vpop.f32.mrf.mxu1 }
 0x1d2   : > { %6113 = vst [vmem:[%s8150_s7 + $0x40] sm:$0xff] %v5749_v34   ;;  %6129 = vst [vmem:[%s8150_s7 + $0xc0] sm:$0xff] %v5829_v35  }
 0x1d3   : > { %v862_v38 = vpop.f32.mrf.mxu0  ;;  %v990_v39 = vpop.f32.mrf.mxu1 }
 0x1d5   : > { %v6750_v40 = vpop.f32.mrf.mxu0  ;;  %v6782_v41 = vpop.f32.mrf.mxu1 }
 0x1d6   : > { %v5764_v42 = vpack.c.bf16 %v6750_v40, %v6749_v36  ;;  %v5844_v43 = vpack.c.bf16 %v6782_v41, %v6781_v37 }
 0x1d7   : > { %v865_v44 = vpop.f32.mrf.mxu0  ;;  %v993_v45 = vpop.f32.mrf.mxu1 }
 0x1d8   : > { %6116 = vst [vmem:[%s8150_s7 + $0x58] sm:$0xff] %v5764_v42   ;;  %6132 = vst [vmem:[%s8150_s7 + $0xd8] sm:$0xff] %v5844_v43   ;;  %v5759_v46 = vpack.c.bf16 %v865_v44, %v862_v38  ;;  %v5839_v47 = vpack.c.bf16 %v993_v45, %v990_v39 }
 0x1d9   : > { %v6753_v48 = vpop.f32.mrf.mxu0  ;;  %v6785_v49 = vpop.f32.mrf.mxu1 }
 0x1da   : > { %6115 = vst [vmem:[%s8150_s7 + $0x50] sm:$0xff] %v5759_v46   ;;  %6131 = vst [vmem:[%s8150_s7 + $0xd0] sm:$0xff] %v5839_v47  }
 0x1db   : > { %v878_v50 = vpop.f32.mrf.mxu0  ;;  %v1006_v51 = vpop.f32.mrf.mxu1 }
 0x1dd   : > { %v6754_v52 = vpop.f32.mrf.mxu0  ;;  %v6786_v53 = vpop.f32.mrf.mxu1 }
 0x1de   : > { %v5774_v54 = vpack.c.bf16 %v6754_v52, %v6753_v48  ;;  %v5854_v55 = vpack.c.bf16 %v6786_v53, %v6785_v49 }
 0x1df   : > { %v881_v56 = vpop.f32.mrf.mxu0  ;;  %v1009_v57 = vpop.f32.mrf.mxu1 }
 0x1e0   : > { %6118 = vst [vmem:[%s8150_s7 + $0x68] sm:$0xff] %v5774_v54   ;;  %6134 = vst [vmem:[%s8150_s7 + $0xe8] sm:$0xff] %v5854_v55   ;;  %v5769_v58 = vpack.c.bf16 %v881_v56, %v878_v50  ;;  %v5849_v59 = vpack.c.bf16 %v1009_v57, %v1006_v51 }
 0x1e1   : > { %v6757_v60 = vpop.f32.mrf.mxu0  ;;  %v6789_v61 = vpop.f32.mrf.mxu1 }
 0x1e2   : > { %6117 = vst [vmem:[%s8150_s7 + $0x60] sm:$0xff] %v5769_v58   ;;  %6133 = vst [vmem:[%s8150_s7 + $0xe0] sm:$0xff] %v5849_v59  }
 0x1e3   : > { %v894_v62 = vpop.f32.mrf.mxu0  ;;  %v1022_v63 = vpop.f32.mrf.mxu1 }
 0x1e5   : > { %v6758_v0 = vpop.f32.mrf.mxu0  ;;  %v6790_v1 = vpop.f32.mrf.mxu1 }
 0x1e6   : > { %v5784_v2 = vpack.c.bf16 %v6758_v0, %v6757_v60  ;;  %v5864_v3 = vpack.c.bf16 %v6790_v1, %v6789_v61 }
 0x1e7   : > { %v897_v4 = vpop.f32.mrf.mxu0  ;;  %v1025_v5 = vpop.f32.mrf.mxu1 }
 0x1e8   : > { %6120 = vst [vmem:[%s8150_s7 + $0x78] sm:$0xff] %v5784_v2   ;;  %6136 = vst [vmem:[%s8150_s7 + $0xf8] sm:$0xff] %v5864_v3   ;;  %v5779_v6 = vpack.c.bf16 %v897_v4, %v894_v62  ;;  %v5859_v7 = vpack.c.bf16 %v1025_v5, %v1022_v63 }
 0x1ea   : > { %6119 = vst [vmem:[%s8150_s7 + $0x70] sm:$0xff] %v5779_v6   ;;  %6135 = vst [vmem:[%s8150_s7 + $0xf0] sm:$0xff] %v5859_v7  }
 0x1eb PF: > { %s8884_s30 = sld [smem:[#allocation27_spill]] }
 0x1f1   : > { %p5196_p12 = scmp.ne.s32.totalorder %s8884_s30, 0 }
 0x1f3   : > { %1364 = sbr.rel (%p5196_p12) target bundleno = 521 (0x209), region = 80 }
 0x1f8   : > { %v7785_v8 = vmov 0.0  }
 0x1f9   : > { %1365 = vst [vmem:[#allocation5 + $0xb0] sm:$0xff] %v7785_v8  ;;  %1366 = vst [vmem:[#allocation5] sm:$0xff] %v7785_v8 }
 0x1fa   : > { %1367 = vst [vmem:[#allocation5 + $0xd8] sm:$0xff] %v7785_v8  ;;  %1368 = vst [vmem:[#allocation5 + $0x18] sm:$0xff] %v7785_v8 }
 0x1fb   : > { %1369 = vst [vmem:[#allocation5 + $0x50] sm:$0xff] %v7785_v8  ;;  %1370 = vst [vmem:[#allocation5 + $0x68] sm:$0xff] %v7785_v8 }
 0x1fc   : > { %1371 = vst [vmem:[#allocation5 + $0x30] sm:$0xff] %v7785_v8  ;;  %1372 = vst [vmem:[#allocation5 + $0x48] sm:$0xff] %v7785_v8 }
 0x1fd   : > { %1373 = vst [vmem:[#allocation5 + $0x80] sm:$0xff] %v7785_v8  ;;  %1374 = vst [vmem:[#allocation5 + $0x88] sm:$0xff] %v7785_v8 }
 0x1fe   : > { %1375 = vst [vmem:[#allocation5 + $0xe8] sm:$0xff] %v7785_v8  ;;  %1376 = vst [vmem:[#allocation5 + $0xb8] sm:$0xff] %v7785_v8 }
 0x1ff   : > { %1377 = vst [vmem:[#allocation5 + $0x60] sm:$0xff] %v7785_v8  ;;  %1378 = vst [vmem:[#allocation5 + $0xf0] sm:$0xff] %v7785_v8 }
 0x200   : > { %1379 = vst [vmem:[#allocation5 + $0x8] sm:$0xff] %v7785_v8  ;;  %1380 = vst [vmem:[#allocation5 + $0x78] sm:$0xff] %v7785_v8 }
 0x201   : > { %1381 = vst [vmem:[#allocation5 + $0x38] sm:$0xff] %v7785_v8  ;;  %1382 = vst [vmem:[#allocation5 + $0x58] sm:$0xff] %v7785_v8 }
 0x202   : > { %1383 = vst [vmem:[#allocation5 + $0x40] sm:$0xff] %v7785_v8  ;;  %1384 = vst [vmem:[#allocation5 + $0xc8] sm:$0xff] %v7785_v8 }
 0x203   : > { %1385 = vst [vmem:[#allocation5 + $0xe0] sm:$0xff] %v7785_v8  ;;  %1386 = vst [vmem:[#allocation5 + $0x90] sm:$0xff] %v7785_v8 }
 0x204   : > { %1387 = vst [vmem:[#allocation5 + $0x70] sm:$0xff] %v7785_v8  ;;  %1388 = vst [vmem:[#allocation5 + $0xc0] sm:$0xff] %v7785_v8 }
 0x205   : > { %1389 = vst [vmem:[#allocation5 + $0xa8] sm:$0xff] %v7785_v8  ;;  %1390 = vst [vmem:[#allocation5 + $0xd0] sm:$0xff] %v7785_v8 }
 0x206   : > { %1391 = vst [vmem:[#allocation5 + $0x10] sm:$0xff] %v7785_v8  ;;  %1392 = vst [vmem:[#allocation5 + $0x28] sm:$0xff] %v7785_v8 }
 0x207   : > { %1393 = vst [vmem:[#allocation5 + $0xa0] sm:$0xff] %v7785_v8  ;;  %1394 = vst [vmem:[#allocation5 + $0xf8] sm:$0xff] %v7785_v8 }
 0x208   : > { %1395 = vst [vmem:[#allocation5 + $0x20] sm:$0xff] %v7785_v8  ;;  %1396 = vst [vmem:[#allocation5 + $0x98] sm:$0xff] %v7785_v8 }
 0x209 PF: > { %s1493_s8 = sshra.s32 %s8109_s0, 3  ;;  %v7174_v9 = vld [vmem:[%s8081_s15 + $0x4] ss:$16 sps:$4 sm:$0xff]   ;;  %v7177_v10 = vld [vmem:[%s8081_s15 + $0xc] ss:$16 sps:$4 sm:$0xff]   ;;  %s8885_s2 = sld [smem:[#allocation27_spill]] }
 0x20a   : > { %s5197_s24 = sshll.u32 %s1493_s8, 2  ;;  %2105 = vmatprep.mubr.bf16.mxu0 %v7174_v9  ;;  %2266 = vmatprep.mubr.bf16.mxu1 %v7177_v10  ;;  %v7172_v41 = vld [vmem:[%s8081_s15] ss:$16 sps:$4 sm:$0xff]   ;;  %v7175_v43 = vld [vmem:[%s8081_s15 + $0x8] ss:$16 sps:$4 sm:$0xff]  }
 0x20b   : > { %s8188_s18 = scalar_lea.vmem [#allocation2], %s5197_s24  ;;  %v7178_v45 = vld [vmem:[%s8081_s15 + $0x24] ss:$16 sps:$4 sm:$0xff]   ;;  %v7180_v46 = vld [vmem:[%s8081_s15 + $0x2c] ss:$16 sps:$4 sm:$0xff]  }
 0x20c   : > { %v7140_v11 = vld [vmem:[%s8188_s18 + $0x78] sm:$0xff]   ;;  %v7144_v15 = vld [vmem:[%s8188_s18 + $0x70] sm:$0xff]   ;;  %v7148_v19 = vld [vmem:[%s8188_s18 + $0x68] sm:$0xff]  }
 0x20d   : > { %v7141_v12 = vld [vmem:[%s8188_s18 + $0xf8] sm:$0xff]   ;;  %6223 = vmatprep.subr.bf16.mxu0 %v7140_v11  ;;  %v7145_v16 = vld [vmem:[%s8188_s18 + $0xf0] sm:$0xff]   ;;  %v7149_v20 = vld [vmem:[%s8188_s18 + $0xe8] sm:$0xff]  }
 0x20e   : > { %v7142_v13 = vld [vmem:[%s8188_s18 + $0x38] sm:$0xff]   ;;  %6335 = vmatprep.subr.bf16.mxu1 %v7141_v12  ;;  %v7146_v17 = vld [vmem:[%s8188_s18 + $0x30] sm:$0xff]   ;;  %v7150_v21 = vld [vmem:[%s8188_s18 + $0x28] sm:$0xff]  }
 0x20f   : > { %v7143_v14 = vld [vmem:[%s8188_s18 + $0xb8] sm:$0xff]   ;;  %6224 = vmatpush3.bf16.msra.mxu0 %v7142_v13  ;;  %v7147_v18 = vld [vmem:[%s8188_s18 + $0xb0] sm:$0xff]   ;;  %v7151_v22 = vld [vmem:[%s8188_s18 + $0xa8] sm:$0xff]   ;;  %p5294_p4 = scmp.ne.s32.totalorder %s8885_s2, 1 }
 0x210   : > { %6336 = vmatpush3.bf16.msra.mxu1 %v7143_v14  ;;  %6225 = vmatprep.subr.bf16.mxu0 %v7144_v15  ;;  %v7152_v23 = vld [vmem:[%s8188_s18 + $0x60] sm:$0xff]   ;;  %v7156_v27 = vld [vmem:[%s8188_s18 + $0x58] sm:$0xff]   ;;  %v7160_v31 = vld [vmem:[%s8188_s18 + $0x50] sm:$0xff]   ;;  %s8886_s10 = sld [smem:[#allocation28_spill]] (!%p5294_p4) }
 0x211   : > { %6337 = vmatprep.subr.bf16.mxu1 %v7145_v16  ;;  %v7153_v24 = vld [vmem:[%s8188_s18 + $0xe0] sm:$0xff]   ;;  %v7157_v28 = vld [vmem:[%s8188_s18 + $0xd8] sm:$0xff]   ;;  %v7161_v32 = vld [vmem:[%s8188_s18 + $0xd0] sm:$0xff]  }
 0x212   : > { %v7154_v25 = vld [vmem:[%s8188_s18 + $0x20] sm:$0xff]   ;;  %v7158_v29 = vld [vmem:[%s8188_s18 + $0x18] sm:$0xff]   ;;  %v7162_v33 = vld [vmem:[%s8188_s18 + $0x10] sm:$0xff]  }
 0x213   : > { %6226 = vmatpush3.bf16.msra.mxu0 %v7146_v17  ;;  %v7155_v26 = vld [vmem:[%s8188_s18 + $0xa0] sm:$0xff]   ;;  %v7159_v30 = vld [vmem:[%s8188_s18 + $0x98] sm:$0xff]   ;;  %v7163_v34 = vld [vmem:[%s8188_s18 + $0x90] sm:$0xff]  }
 0x214   : > { %6338 = vmatpush3.bf16.msra.mxu1 %v7147_v18  ;;  %6227 = vmatprep.subr.bf16.mxu0 %v7148_v19  ;;  %v7164_v35 = vld [vmem:[%s8188_s18 + $0x48] sm:$0xff]   ;;  %v7168_v39 = vld [vmem:[%s8188_s18 + $0x40] sm:$0xff]  }
 0x215   : > { %6339 = vmatprep.subr.bf16.mxu1 %v7149_v20  ;;  %v7165_v36 = vld [vmem:[%s8188_s18 + $0xc8] sm:$0xff]   ;;  %v7169_v40 = vld [vmem:[%s8188_s18 + $0xc0] sm:$0xff]  }
 0x216   : > { %v7166_v37 = vld [vmem:[%s8188_s18 + $0x8] sm:$0xff]   ;;  %v7170_v42 = vld [vmem:[%s8188_s18] sm:$0xff]   ;;  %s5295_s17 = sshll.u32 (!%p5294_p4), %s8886_s10, 8 }
 0x217   : > { %6228 = vmatpush3.bf16.msra.mxu0 %v7150_v21  ;;  %v7167_v38 = vld [vmem:[%s8188_s18 + $0x88] sm:$0xff]   ;;  %v7171_v44 = vld [vmem:[%s8188_s18 + $0x80] sm:$0xff]   ;;  %s8290_s20 = sshra.s32 (!%p5294_p4), %s5295_s17, 3 }
 0x218   : > { %6340 = vmatpush3.bf16.msra.mxu1 %v7151_v22  ;;  %6229 = vmatprep.subr.bf16.mxu0 %v7152_v23  ;;  %v7182_v47 = vld [vmem:[%s8081_s15 + $0x20] ss:$16 sps:$4 sm:$0xff]   ;;  %v7183_v48 = vld [vmem:[%s8081_s15 + $0x28] ss:$16 sps:$4 sm:$0xff]   ;;  %v7184_v49 = vld [vmem:[%s8081_s15 + $0x44] ss:$16 sps:$4 sm:$0xff]  }
 0x219   : > { %6341 = vmatprep.subr.bf16.mxu1 %v7153_v24  ;;  %v7186_v50 = vld [vmem:[%s8081_s15 + $0x4c] ss:$16 sps:$4 sm:$0xff]   ;;  %v7188_v51 = vld [vmem:[%s8081_s15 + $0x40] ss:$16 sps:$4 sm:$0xff]   ;;  %v7189_v52 = vld [vmem:[%s8081_s15 + $0x48] ss:$16 sps:$4 sm:$0xff]  }
 0x21a   : > { %v7190_v53 = vld [vmem:[%s8081_s15 + $0x64] ss:$16 sps:$4 sm:$0xff]   ;;  %v7192_v54 = vld [vmem:[%s8081_s15 + $0x6c] ss:$16 sps:$4 sm:$0xff]   ;;  %v7194_v55 = vld [vmem:[%s8081_s15 + $0x60] ss:$16 sps:$4 sm:$0xff]  }
 0x21b   : > { %6230 = vmatpush3.bf16.msra.mxu0 %v7154_v25  ;;  %v7195_v56 = vld [vmem:[%s8081_s15 + $0x68] ss:$16 sps:$4 sm:$0xff]   ;;  %v7196_v57 = vld [vmem:[%s8081_s15 + $0x84] ss:$16 sps:$4 sm:$0xff]   ;;  %v7198_v58 = vld [vmem:[%s8081_s15 + $0x8c] ss:$16 sps:$4 sm:$0xff]  }
 0x21c   : > { %6342 = vmatpush3.bf16.msra.mxu1 %v7155_v26  ;;  %6231 = vmatprep.subr.bf16.mxu0 %v7156_v27  ;;  %v7200_v59 = vld [vmem:[%s8081_s15 + $0x80] ss:$16 sps:$4 sm:$0xff]   ;;  %v7201_v60 = vld [vmem:[%s8081_s15 + $0x88] ss:$16 sps:$4 sm:$0xff]   ;;  %v7202_v61 = vld [vmem:[%s8081_s15 + $0xa4] ss:$16 sps:$4 sm:$0xff]  }
 0x21d   : > { %6343 = vmatprep.subr.bf16.mxu1 %v7157_v28  ;;  %v7204_v62 = vld [vmem:[%s8081_s15 + $0xac] ss:$16 sps:$4 sm:$0xff]   ;;  %v7206_v63 = vld [vmem:[%s8081_s15 + $0xa0] ss:$16 sps:$4 sm:$0xff]   ;;  %v7207_v0 = vld [vmem:[%s8081_s15 + $0xa8] ss:$16 sps:$4 sm:$0xff]  }
 0x21e   : > { %v7208_v1 = vld [vmem:[%s8081_s15 + $0xc4] ss:$16 sps:$4 sm:$0xff]   ;;  %v7210_v2 = vld [vmem:[%s8081_s15 + $0xcc] ss:$16 sps:$4 sm:$0xff]   ;;  %v7212_v3 = vld [vmem:[%s8081_s15 + $0xc0] ss:$16 sps:$4 sm:$0xff]  }
 0x21f   : > { %6232 = vmatpush3.bf16.msra.mxu0 %v7158_v29  ;;  %v7213_v4 = vld [vmem:[%s8081_s15 + $0xc8] ss:$16 sps:$4 sm:$0xff]   ;;  %v7214_v5 = vld [vmem:[%s8081_s15 + $0xe4] ss:$16 sps:$4 sm:$0xff]   ;;  %v7216_v6 = vld [vmem:[%s8081_s15 + $0xec] ss:$16 sps:$4 sm:$0xff]  }
 0x220   : > { %6344 = vmatpush3.bf16.msra.mxu1 %v7159_v30  ;;  %6233 = vmatprep.subr.bf16.mxu0 %v7160_v31  ;;  %v7218_v7 = vld [vmem:[%s8081_s15 + $0xe0] ss:$16 sps:$4 sm:$0xff]   ;;  %v7219_v8 = vld [vmem:[%s8081_s15 + $0xe8] ss:$16 sps:$4 sm:$0xff]   ;;  %v7220_v9 = vld [vmem:[%s8081_s15 + $0x104] ss:$16 sps:$4 sm:$0xff]  }
 0x221   : > { %6345 = vmatprep.subr.bf16.mxu1 %v7161_v32  ;;  %v7222_v10 = vld [vmem:[%s8081_s15 + $0x10c] ss:$16 sps:$4 sm:$0xff]   ;;  %v7224_v11 = vld [vmem:[%s8081_s15 + $0x100] ss:$16 sps:$4 sm:$0xff]   ;;  %v7225_v12 = vld [vmem:[%s8081_s15 + $0x108] ss:$16 sps:$4 sm:$0xff]  }
 0x222   : > { %v7226_v13 = vld [vmem:[%s8081_s15 + $0x124] ss:$16 sps:$4 sm:$0xff]   ;;  %v7228_v14 = vld [vmem:[%s8081_s15 + $0x12c] ss:$16 sps:$4 sm:$0xff]   ;;  %v7230_v15 = vld [vmem:[%s8081_s15 + $0x120] ss:$16 sps:$4 sm:$0xff]  }
 0x223   : > { %6234 = vmatpush3.bf16.msra.mxu0 %v7162_v33  ;;  %v7231_v16 = vld [vmem:[%s8081_s15 + $0x128] ss:$16 sps:$4 sm:$0xff]   ;;  %v7232_v17 = vld [vmem:[%s8081_s15 + $0x144] ss:$16 sps:$4 sm:$0xff]   ;;  %v7234_v18 = vld [vmem:[%s8081_s15 + $0x14c] ss:$16 sps:$4 sm:$0xff]  }
 0x224   : > { %6346 = vmatpush3.bf16.msra.mxu1 %v7163_v34  ;;  %6235 = vmatprep.subr.bf16.mxu0 %v7164_v35  ;;  %v7236_v19 = vld [vmem:[%s8081_s15 + $0x140] ss:$16 sps:$4 sm:$0xff]   ;;  %v7237_v20 = vld [vmem:[%s8081_s15 + $0x148] ss:$16 sps:$4 sm:$0xff]   ;;  %v7238_v21 = vld [vmem:[%s8081_s15 + $0x164] ss:$16 sps:$4 sm:$0xff]  }
 0x225   : > { %6347 = vmatprep.subr.bf16.mxu1 %v7165_v36  ;;  %v7240_v22 = vld [vmem:[%s8081_s15 + $0x16c] ss:$16 sps:$4 sm:$0xff]   ;;  %v7242_v23 = vld [vmem:[%s8081_s15 + $0x160] ss:$16 sps:$4 sm:$0xff]   ;;  %v7243_v24 = vld [vmem:[%s8081_s15 + $0x168] ss:$16 sps:$4 sm:$0xff]  }
 0x226   : > { %v7244_v25 = vld [vmem:[%s8081_s15 + $0x184] ss:$16 sps:$4 sm:$0xff]   ;;  %v7246_v26 = vld [vmem:[%s8081_s15 + $0x18c] ss:$16 sps:$4 sm:$0xff]   ;;  %v7248_v27 = vld [vmem:[%s8081_s15 + $0x180] ss:$16 sps:$4 sm:$0xff]  }
 0x227   : > { %6236 = vmatpush3.bf16.msra.mxu0 %v7166_v37  ;;  %v7249_v28 = vld [vmem:[%s8081_s15 + $0x188] ss:$16 sps:$4 sm:$0xff]   ;;  %v7250_v29 = vld [vmem:[%s8081_s15 + $0x1a4] ss:$16 sps:$4 sm:$0xff]   ;;  %v7252_v30 = vld [vmem:[%s8081_s15 + $0x1ac] ss:$16 sps:$4 sm:$0xff]  }
 0x228   : > { %6348 = vmatpush3.bf16.msra.mxu1 %v7167_v38  ;;  %6237 = vmatprep.subr.bf16.mxu0 %v7168_v39  ;;  %v7254_v31 = vld [vmem:[%s8081_s15 + $0x1a0] ss:$16 sps:$4 sm:$0xff]   ;;  %v7255_v32 = vld [vmem:[%s8081_s15 + $0x1a8] ss:$16 sps:$4 sm:$0xff]   ;;  %v7256_v33 = vld [vmem:[%s8081_s15 + $0x1c4] ss:$16 sps:$4 sm:$0xff]  }
 0x229   : > { %6349 = vmatprep.subr.bf16.mxu1 %v7169_v40  ;;  %v7258_v34 = vld [vmem:[%s8081_s15 + $0x1cc] ss:$16 sps:$4 sm:$0xff]   ;;  %v7260_v35 = vld [vmem:[%s8081_s15 + $0x1c0] ss:$16 sps:$4 sm:$0xff]   ;;  %v7261_v36 = vld [vmem:[%s8081_s15 + $0x1c8] ss:$16 sps:$4 sm:$0xff]  }
 0x22a   : > { %v7262_v37 = vld [vmem:[%s8081_s15 + $0x1e4] ss:$16 sps:$4 sm:$0xff]   ;;  %v7264_v38 = vld [vmem:[%s8081_s15 + $0x1ec] ss:$16 sps:$4 sm:$0xff]   ;;  %v7266_v39 = vld [vmem:[%s8081_s15 + $0x1e0] ss:$16 sps:$4 sm:$0xff]  }
 0x22b   : > { %6238 = vmatpush3.bf16.msra.mxu0 %v7170_v42  ;;  %v7267_v40 = vld [vmem:[%s8081_s15 + $0x1e8] ss:$16 sps:$4 sm:$0xff]   ;;  %s5329_s6 = sshll.u32 (!%p5294_p4), %s8290_s20, 2 }
 0x22c   : > { %6350 = vmatpush3.bf16.msra.mxu1 %v7171_v44  ;;  %s8304_s16 = scalar_lea.vmem (!%p5294_p4), [#allocation3], %s5329_s6 }
 0x22e   : > { %2106 = vmatmul.mubr.bf16.vlgmr.msra.gmra.mxu0 %v7172_v41 }
 0x22f   : > { %2267 = vmatmul.mubr.bf16.vlgmr.msra.gmra.mxu1 %v7175_v43  ;;  %2113 = vmatprep.mubr.bf16.mxu0 %v7178_v45 }
 0x230   : > { %2274 = vmatprep.mubr.bf16.mxu1 %v7180_v46 }
 0x236   : > { %2114 = vmatmul.mubr.bf16.gmra.mxu0 %v7182_v47 }
 0x237   : > { %2275 = vmatmul.mubr.bf16.gmra.mxu1 %v7183_v48  ;;  %2121 = vmatprep.mubr.bf16.mxu0 %v7184_v49  ;;  %v1397_v48 = vld [vmem:[#allocation5 + $0xb0] sm:$0xff] }
 0x238   : > { %2282 = vmatprep.mubr.bf16.mxu1 %v7186_v50 }
 0x23e   : > { %2122 = vmatmul.mubr.bf16.gmra.mxu0 %v7188_v51 }
 0x23f   : > { %2283 = vmatmul.mubr.bf16.gmra.mxu1 %v7189_v52  ;;  %2129 = vmatprep.mubr.bf16.mxu0 %v7190_v53 }
 0x240   : > { %2290 = vmatprep.mubr.bf16.mxu1 %v7192_v54 }
 0x246   : > { %2130 = vmatmul.mubr.bf16.gmra.mxu0 %v7194_v55 }
 0x247   : > { %2291 = vmatmul.mubr.bf16.gmra.mxu1 %v7195_v56  ;;  %2137 = vmatprep.mubr.bf16.mxu0 %v7196_v57  ;;  %v1398_v57 = vld [vmem:[#allocation5] sm:$0xff] }
 0x248   : > { %2298 = vmatprep.mubr.bf16.mxu1 %v7198_v58 }
 0x24e   : > { %2138 = vmatmul.mubr.bf16.gmra.mxu0 %v7200_v59 }
 0x24f   : > { %2299 = vmatmul.mubr.bf16.gmra.mxu1 %v7201_v60  ;;  %2145 = vmatprep.mubr.bf16.mxu0 %v7202_v61 }
 0x250   : > { %2306 = vmatprep.mubr.bf16.mxu1 %v7204_v62 }
 0x256   : > { %2146 = vmatmul.mubr.bf16.gmra.mxu0 %v7206_v63 }
 0x257   : > { %2307 = vmatmul.mubr.bf16.gmra.mxu1 %v7207_v0  ;;  %2153 = vmatprep.mubr.bf16.mxu0 %v7208_v1 }
 0x258   : > { %2314 = vmatprep.mubr.bf16.mxu1 %v7210_v2  ;;  %v1399_v2 = vld [vmem:[#allocation5 + $0xd8] sm:$0xff] }
 0x25e   : > { %2154 = vmatmul.mubr.bf16.gmra.mxu0 %v7212_v3 }
 0x25f   : > { %2315 = vmatmul.mubr.bf16.gmra.mxu1 %v7213_v4  ;;  %2161 = vmatprep.mubr.bf16.mxu0 %v7214_v5 }
 0x260   : > { %2322 = vmatprep.mubr.bf16.mxu1 %v7216_v6 }
 0x266   : > { %2162 = vmatmul.mubr.bf16.gmra.mxu0 %v7218_v7 }
 0x267   : > { %2323 = vmatmul.mubr.bf16.gmra.mxu1 %v7219_v8  ;;  %2169 = vmatprep.mubr.bf16.mxu0 %v7220_v9 }
 0x268   : > { %2330 = vmatprep.mubr.bf16.mxu1 %v7222_v10 }
 0x26e   : > { %2170 = vmatmul.mubr.bf16.gmra.mxu0 %v7224_v11  ;;  %v1400_v11 = vld [vmem:[#allocation5 + $0x18] sm:$0xff] }
 0x26f   : > { %2331 = vmatmul.mubr.bf16.gmra.mxu1 %v7225_v12  ;;  %2177 = vmatprep.mubr.bf16.mxu0 %v7226_v13 }
 0x270   : > { %2338 = vmatprep.mubr.bf16.mxu1 %v7228_v14 }
 0x276   : > { %2178 = vmatmul.mubr.bf16.gmra.mxu0 %v7230_v15 }
 0x277   : > { %2339 = vmatmul.mubr.bf16.gmra.mxu1 %v7231_v16  ;;  %2185 = vmatprep.mubr.bf16.mxu0 %v7232_v17 }
 0x278   : > { %2346 = vmatprep.mubr.bf16.mxu1 %v7234_v18 }
 0x27e   : > { %2186 = vmatmul.mubr.bf16.gmra.mxu0 %v7236_v19 }
 0x27f   : > { %2347 = vmatmul.mubr.bf16.gmra.mxu1 %v7237_v20  ;;  %2193 = vmatprep.mubr.bf16.mxu0 %v7238_v21  ;;  %v1401_v20 = vld [vmem:[#allocation5 + $0x50] sm:$0xff] }
 0x280   : > { %2354 = vmatprep.mubr.bf16.mxu1 %v7240_v22 }
 0x286   : > { %2194 = vmatmul.mubr.bf16.gmra.mxu0 %v7242_v23 }
 0x287   : > { %2355 = vmatmul.mubr.bf16.gmra.mxu1 %v7243_v24  ;;  %2201 = vmatprep.mubr.bf16.mxu0 %v7244_v25 }
 0x288   : > { %2362 = vmatprep.mubr.bf16.mxu1 %v7246_v26 }
 0x28e   : > { %2202 = vmatmul.mubr.bf16.gmra.mxu0 %v7248_v27 }
 0x28f   : > { %2363 = vmatmul.mubr.bf16.gmra.mxu1 %v7249_v28  ;;  %2209 = vmatprep.mubr.bf16.mxu0 %v7250_v29  ;;  %v1402_v29 = vld [vmem:[#allocation5 + $0x68] sm:$0xff] }
 0x290   : > { %2370 = vmatprep.mubr.bf16.mxu1 %v7252_v30 }
 0x296   : > { %2210 = vmatmul.mubr.bf16.gmra.mxu0 %v7254_v31 }
 0x297   : > { %2371 = vmatmul.mubr.bf16.gmra.mxu1 %v7255_v32  ;;  %2217 = vmatprep.mubr.bf16.mxu0 %v7256_v33 }
 0x298   : > { %2378 = vmatprep.mubr.bf16.mxu1 %v7258_v34 }
 0x29e   : > { %2218 = vmatmul.mubr.bf16.gmra.mxu0 %v7260_v35 }
 0x29f   : > { %2379 = vmatmul.mubr.bf16.gmra.mxu1 %v7261_v36  ;;  %2225 = vmatprep.mubr.bf16.mxu0 %v7262_v37 }
 0x2a0   : > { %2386 = vmatprep.mubr.bf16.mxu1 %v7264_v38  ;;  %v1403_v38 = vld [vmem:[#allocation5 + $0x30] sm:$0xff] }
 0x2a6   : > { %2226 = vmatmul.mubr.bf16.gmra.mxu0 %v7266_v39 }
 0x2a7   : > { %2387 = vmatmul.mubr.bf16.gmra.mxu1 %v7267_v40 }
 0x2ee   : > { %v6239_v41 = vpop.f32.mrf.mxu0 }
 0x2ef   : > { %v6351_v42 = vpop.f32.mrf.mxu1 }
 0x2f0   : > { %v6240_v43 = vpop.f32.mrf.mxu0 }
 0x2f1   : > { %v6241_v44 = vadd.f32 %v6240_v43, %v6239_v41  ;;  %v6352_v45 = vpop.f32.mrf.mxu1 }
 0x2f2   : > { %v6353_v46 = vadd.f32 %v6352_v45, %v6351_v42  ;;  %v6242_v47 = vpop.f32.mrf.mxu0 }
 0x2f3   : > { %v6354_v49 = vpop.f32.mrf.mxu1 }
 0x2f4   : > { %v2269_v50 = vadd.f32 %v6353_v46, %v6241_v44  ;;  %v6243_v51 = vpop.f32.mrf.mxu0 }
 0x2f5   : > { %v6244_v52 = vadd.f32 %v6243_v51, %v6242_v47  ;;  %v6355_v53 = vpop.f32.mrf.mxu1  ;;  %v1404_v47 = vld [vmem:[#allocation5 + $0x48] sm:$0xff] }
 0x2f6   : > { %v2395_v54 = vadd.f32 %v2269_v50, %v1397_v48  ;;  %v6356_v55 = vadd.f32 %v6355_v53, %v6354_v49  ;;  %v6245_v56 = vpop.f32.mrf.mxu0 }
 0x2f7   : > { %v6357_v58 = vpop.f32.mrf.mxu1 }
 0x2f8   : > { %2427 = vst [vmem:[#allocation5 + $0xb0] sm:$0xff] %v2395_v54  ;;  %v2272_v59 = vadd.f32 %v6356_v55, %v6244_v52  ;;  %v6246_v60 = vpop.f32.mrf.mxu0 }
 0x2f9   : > { %v6247_v61 = vadd.f32 %v6246_v60, %v6245_v56  ;;  %v6358_v62 = vpop.f32.mrf.mxu1  ;;  %v1405_v56 = vld [vmem:[#allocation5 + $0x80] sm:$0xff] }
 0x2fa   : > { %v2396_v63 = vadd.f32 %v2272_v59, %v1398_v57  ;;  %v6359_v0 = vadd.f32 %v6358_v62, %v6357_v58  ;;  %v6248_v1 = vpop.f32.mrf.mxu0 }
 0x2fb   : > { %v6360_v3 = vpop.f32.mrf.mxu1 }
 0x2fc   : > { %2428 = vst [vmem:[#allocation5] sm:$0xff] %v2396_v63  ;;  %v2277_v4 = vadd.f32 %v6359_v0, %v6247_v61  ;;  %v6249_v5 = vpop.f32.mrf.mxu0 }
 0x2fd   : > { %v6250_v6 = vadd.f32 %v6249_v5, %v6248_v1  ;;  %v6361_v7 = vpop.f32.mrf.mxu1  ;;  %v1406_v1 = vld [vmem:[#allocation5 + $0x88] sm:$0xff] }
 0x2fe   : > { %v2397_v8 = vadd.f32 %v2277_v4, %v1399_v2  ;;  %v6362_v9 = vadd.f32 %v6361_v7, %v6360_v3  ;;  %v6251_v10 = vpop.f32.mrf.mxu0 }
 0x2ff   : > { %v6363_v12 = vpop.f32.mrf.mxu1 }
 0x300   : > { %2429 = vst [vmem:[#allocation5 + $0xd8] sm:$0xff] %v2397_v8  ;;  %v2280_v13 = vadd.f32 %v6362_v9, %v6250_v6  ;;  %v6252_v14 = vpop.f32.mrf.mxu0 }
 0x301   : > { %v6253_v15 = vadd.f32 %v6252_v14, %v6251_v10  ;;  %v6364_v16 = vpop.f32.mrf.mxu1  ;;  %v1407_v10 = vld [vmem:[#allocation5 + $0xe8] sm:$0xff] }
 0x302   : > { %v2398_v17 = vadd.f32 %v2280_v13, %v1400_v11  ;;  %v6365_v18 = vadd.f32 %v6364_v16, %v6363_v12  ;;  %v6254_v19 = vpop.f32.mrf.mxu0 }
 0x303   : > { %v6366_v21 = vpop.f32.mrf.mxu1 }
 0x304   : > { %2430 = vst [vmem:[#allocation5 + $0x18] sm:$0xff] %v2398_v17  ;;  %v2285_v22 = vadd.f32 %v6365_v18, %v6253_v15  ;;  %v6255_v23 = vpop.f32.mrf.mxu0 }
 0x305   : > { %v6256_v24 = vadd.f32 %v6255_v23, %v6254_v19  ;;  %v6367_v25 = vpop.f32.mrf.mxu1  ;;  %v1408_v19 = vld [vmem:[#allocation5 + $0xb8] sm:$0xff] }
 0x306   : > { %v2399_v26 = vadd.f32 %v2285_v22, %v1401_v20  ;;  %v6368_v27 = vadd.f32 %v6367_v25, %v6366_v21  ;;  %v6257_v28 = vpop.f32.mrf.mxu0 }
 0x307   : > { %v6369_v30 = vpop.f32.mrf.mxu1 }
 0x308   : > { %2431 = vst [vmem:[#allocation5 + $0x50] sm:$0xff] %v2399_v26  ;;  %v2288_v31 = vadd.f32 %v6368_v27, %v6256_v24  ;;  %v6258_v32 = vpop.f32.mrf.mxu0 }
 0x309   : > { %v6259_v33 = vadd.f32 %v6258_v32, %v6257_v28  ;;  %v6370_v34 = vpop.f32.mrf.mxu1  ;;  %v1409_v28 = vld [vmem:[#allocation5 + $0x60] sm:$0xff] }
 0x30a   : > { %v2400_v35 = vadd.f32 %v2288_v31, %v1402_v29  ;;  %v6371_v36 = vadd.f32 %v6370_v34, %v6369_v30  ;;  %v6260_v37 = vpop.f32.mrf.mxu0 }
 0x30b   : > { %v6372_v39 = vpop.f32.mrf.mxu1 }
 0x30c   : > { %2432 = vst [vmem:[#allocation5 + $0x68] sm:$0xff] %v2400_v35  ;;  %v2293_v40 = vadd.f32 %v6371_v36, %v6259_v33  ;;  %v6261_v41 = vpop.f32.mrf.mxu0 }
 0x30d   : > { %v6262_v42 = vadd.f32 %v6261_v41, %v6260_v37  ;;  %v6373_v43 = vpop.f32.mrf.mxu1  ;;  %v1410_v37 = vld [vmem:[#allocation5 + $0xf0] sm:$0xff] }
 0x30e   : > { %v2401_v44 = vadd.f32 %v2293_v40, %v1403_v38  ;;  %v6374_v45 = vadd.f32 %v6373_v43, %v6372_v39  ;;  %v6263_v46 = vpop.f32.mrf.mxu0 }
 0x30f   : > { %v6375_v48 = vpop.f32.mrf.mxu1 }
 0x310   : > { %2433 = vst [vmem:[#allocation5 + $0x30] sm:$0xff] %v2401_v44  ;;  %v2296_v49 = vadd.f32 %v6374_v45, %v6262_v42  ;;  %v6264_v50 = vpop.f32.mrf.mxu0 }
 0x311   : > { %v6265_v51 = vadd.f32 %v6264_v50, %v6263_v46  ;;  %v6376_v52 = vpop.f32.mrf.mxu1  ;;  %v1411_v46 = vld [vmem:[#allocation5 + $0x8] sm:$0xff] }
 0x312   : > { %v2402_v53 = vadd.f32 %v2296_v49, %v1404_v47  ;;  %v6377_v54 = vadd.f32 %v6376_v52, %v6375_v48  ;;  %v6266_v55 = vpop.f32.mrf.mxu0 }
 0x313   : > { %v6378_v57 = vpop.f32.mrf.mxu1 }
 0x314   : > { %2434 = vst [vmem:[#allocation5 + $0x48] sm:$0xff] %v2402_v53  ;;  %v2301_v58 = vadd.f32 %v6377_v54, %v6265_v51  ;;  %v6267_v59 = vpop.f32.mrf.mxu0 }
 0x315   : > { %v6268_v60 = vadd.f32 %v6267_v59, %v6266_v55  ;;  %v6379_v61 = vpop.f32.mrf.mxu1  ;;  %v1412_v55 = vld [vmem:[#allocation5 + $0x78] sm:$0xff] }
 0x316   : > { %v2403_v62 = vadd.f32 %v2301_v58, %v1405_v56  ;;  %v6380_v63 = vadd.f32 %v6379_v61, %v6378_v57  ;;  %v6269_v0 = vpop.f32.mrf.mxu0 }
 0x317   : > { %v6381_v2 = vpop.f32.mrf.mxu1 }
 0x318   : > { %2435 = vst [vmem:[#allocation5 + $0x80] sm:$0xff] %v2403_v62  ;;  %v2304_v3 = vadd.f32 %v6380_v63, %v6268_v60  ;;  %v6270_v4 = vpop.f32.mrf.mxu0 }
 0x319   : > { %v6271_v5 = vadd.f32 %v6270_v4, %v6269_v0  ;;  %v6382_v6 = vpop.f32.mrf.mxu1  ;;  %v1413_v0 = vld [vmem:[#allocation5 + $0x38] sm:$0xff] }
 0x31a   : > { %v2404_v7 = vadd.f32 %v2304_v3, %v1406_v1  ;;  %v6383_v8 = vadd.f32 %v6382_v6, %v6381_v2  ;;  %v6272_v9 = vpop.f32.mrf.mxu0 }
 0x31b   : > { %v6384_v11 = vpop.f32.mrf.mxu1 }
 0x31c   : > { %2436 = vst [vmem:[#allocation5 + $0x88] sm:$0xff] %v2404_v7  ;;  %v2309_v12 = vadd.f32 %v6383_v8, %v6271_v5  ;;  %v6273_v13 = vpop.f32.mrf.mxu0 }
 0x31d   : > { %v6274_v14 = vadd.f32 %v6273_v13, %v6272_v9  ;;  %v6385_v15 = vpop.f32.mrf.mxu1  ;;  %v1414_v9 = vld [vmem:[#allocation5 + $0x58] sm:$0xff] }
 0x31e   : > { %v2405_v16 = vadd.f32 %v2309_v12, %v1407_v10  ;;  %v6386_v17 = vadd.f32 %v6385_v15, %v6384_v11  ;;  %v6275_v18 = vpop.f32.mrf.mxu0 }
 0x31f   : > { %v6387_v20 = vpop.f32.mrf.mxu1 }
 0x320   : > { %2437 = vst [vmem:[#allocation5 + $0xe8] sm:$0xff] %v2405_v16  ;;  %v2312_v21 = vadd.f32 %v6386_v17, %v6274_v14  ;;  %v6276_v22 = vpop.f32.mrf.mxu0 }
 0x321   : > { %v6277_v23 = vadd.f32 %v6276_v22, %v6275_v18  ;;  %v6388_v24 = vpop.f32.mrf.mxu1  ;;  %v1415_v18 = vld [vmem:[#allocation5 + $0x40] sm:$0xff] }
 0x322   : > { %v2406_v25 = vadd.f32 %v2312_v21, %v1408_v19  ;;  %v6389_v26 = vadd.f32 %v6388_v24, %v6387_v20  ;;  %v6278_v27 = vpop.f32.mrf.mxu0 }
 0x323   : > { %v6390_v29 = vpop.f32.mrf.mxu1 }
 0x324   : > { %2438 = vst [vmem:[#allocation5 + $0xb8] sm:$0xff] %v2406_v25  ;;  %v2317_v30 = vadd.f32 %v6389_v26, %v6277_v23  ;;  %v6279_v31 = vpop.f32.mrf.mxu0 }
 0x325   : > { %v6280_v32 = vadd.f32 %v6279_v31, %v6278_v27  ;;  %v6391_v33 = vpop.f32.mrf.mxu1  ;;  %v1416_v27 = vld [vmem:[#allocation5 + $0xc8] sm:$0xff] }
 0x326   : > { %v2407_v34 = vadd.f32 %v2317_v30, %v1409_v28  ;;  %v6392_v35 = vadd.f32 %v6391_v33, %v6390_v29  ;;  %v6281_v36 = vpop.f32.mrf.mxu0 }
 0x327   : > { %v6393_v38 = vpop.f32.mrf.mxu1 }
 0x328   : > { %2439 = vst [vmem:[#allocation5 + $0x60] sm:$0xff] %v2407_v34  ;;  %v2320_v39 = vadd.f32 %v6392_v35, %v6280_v32  ;;  %v6282_v40 = vpop.f32.mrf.mxu0 }
 0x329   : > { %v6283_v41 = vadd.f32 %v6282_v40, %v6281_v36  ;;  %v6394_v42 = vpop.f32.mrf.mxu1  ;;  %v1417_v36 = vld [vmem:[#allocation5 + $0xe0] sm:$0xff] }
 0x32a   : > { %v2408_v43 = vadd.f32 %v2320_v39, %v1410_v37  ;;  %v6395_v44 = vadd.f32 %v6394_v42, %v6393_v38  ;;  %v6284_v45 = vpop.f32.mrf.mxu0 }
 0x32b   : > { %v6396_v47 = vpop.f32.mrf.mxu1 }
 0x32c   : > { %2440 = vst [vmem:[#allocation5 + $0xf0] sm:$0xff] %v2408_v43  ;;  %v2325_v48 = vadd.f32 %v6395_v44, %v6283_v41  ;;  %v6285_v49 = vpop.f32.mrf.mxu0 }
 0x32d   : > { %v6286_v50 = vadd.f32 %v6285_v49, %v6284_v45  ;;  %v6397_v51 = vpop.f32.mrf.mxu1  ;;  %v1418_v45 = vld [vmem:[#allocation5 + $0x90] sm:$0xff] }
 0x32e   : > { %v2409_v52 = vadd.f32 %v2325_v48, %v1411_v46  ;;  %v6398_v53 = vadd.f32 %v6397_v51, %v6396_v47  ;;  %v6287_v54 = vpop.f32.mrf.mxu0 }
 0x32f   : > { %v6399_v56 = vpop.f32.mrf.mxu1 }
 0x330   : > { %2441 = vst [vmem:[#allocation5 + $0x8] sm:$0xff] %v2409_v52  ;;  %v2328_v57 = vadd.f32 %v6398_v53, %v6286_v50  ;;  %v6288_v58 = vpop.f32.mrf.mxu0 }
 0x331   : > { %v6289_v59 = vadd.f32 %v6288_v58, %v6287_v54  ;;  %v6400_v60 = vpop.f32.mrf.mxu1  ;;  %v1419_v54 = vld [vmem:[#allocation5 + $0x70] sm:$0xff] }
 0x332   : > { %v2410_v61 = vadd.f32 %v2328_v57, %v1412_v55  ;;  %v6401_v62 = vadd.f32 %v6400_v60, %v6399_v56  ;;  %v6290_v63 = vpop.f32.mrf.mxu0 }
 0x333   : > { %v6402_v1 = vpop.f32.mrf.mxu1 }
 0x334   : > { %2442 = vst [vmem:[#allocation5 + $0x78] sm:$0xff] %v2410_v61  ;;  %v2333_v2 = vadd.f32 %v6401_v62, %v6289_v59  ;;  %v6291_v3 = vpop.f32.mrf.mxu0 }
 0x335   : > { %v6292_v4 = vadd.f32 %v6291_v3, %v6290_v63  ;;  %v6403_v5 = vpop.f32.mrf.mxu1  ;;  %v1420_v63 = vld [vmem:[#allocation5 + $0xc0] sm:$0xff] }
 0x336   : > { %v2411_v6 = vadd.f32 %v2333_v2, %v1413_v0  ;;  %v6404_v7 = vadd.f32 %v6403_v5, %v6402_v1  ;;  %v6293_v8 = vpop.f32.mrf.mxu0 }
 0x337   : > { %v6405_v10 = vpop.f32.mrf.mxu1 }
 0x338   : > { %2443 = vst [vmem:[#allocation5 + $0x38] sm:$0xff] %v2411_v6  ;;  %v2336_v11 = vadd.f32 %v6404_v7, %v6292_v4  ;;  %v6294_v12 = vpop.f32.mrf.mxu0 }
 0x339   : > { %v6295_v13 = vadd.f32 %v6294_v12, %v6293_v8  ;;  %v6406_v14 = vpop.f32.mrf.mxu1  ;;  %v1421_v8 = vld [vmem:[#allocation5 + $0xa8] sm:$0xff] }
 0x33a   : > { %v2412_v15 = vadd.f32 %v2336_v11, %v1414_v9  ;;  %v6407_v16 = vadd.f32 %v6406_v14, %v6405_v10  ;;  %v6296_v17 = vpop.f32.mrf.mxu0 }
 0x33b   : > { %v6408_v19 = vpop.f32.mrf.mxu1 }
 0x33c   : > { %2444 = vst [vmem:[#allocation5 + $0x58] sm:$0xff] %v2412_v15  ;;  %v2341_v20 = vadd.f32 %v6407_v16, %v6295_v13  ;;  %v6297_v21 = vpop.f32.mrf.mxu0 }
 0x33d   : > { %v6298_v22 = vadd.f32 %v6297_v21, %v6296_v17  ;;  %v6409_v23 = vpop.f32.mrf.mxu1  ;;  %v1422_v17 = vld [vmem:[#allocation5 + $0xd0] sm:$0xff] }
 0x33e   : > { %v2413_v24 = vadd.f32 %v2341_v20, %v1415_v18  ;;  %v6410_v25 = vadd.f32 %v6409_v23, %v6408_v19  ;;  %v6299_v26 = vpop.f32.mrf.mxu0 }
 0x33f   : > { %v6411_v28 = vpop.f32.mrf.mxu1 }
 0x340   : > { %2445 = vst [vmem:[#allocation5 + $0x40] sm:$0xff] %v2413_v24  ;;  %v2344_v29 = vadd.f32 %v6410_v25, %v6298_v22  ;;  %v6300_v30 = vpop.f32.mrf.mxu0 }
 0x341   : > { %v6301_v31 = vadd.f32 %v6300_v30, %v6299_v26  ;;  %v6412_v32 = vpop.f32.mrf.mxu1  ;;  %v1423_v26 = vld [vmem:[#allocation5 + $0x10] sm:$0xff] }
 0x342   : > { %v2414_v33 = vadd.f32 %v2344_v29, %v1416_v27  ;;  %v6413_v34 = vadd.f32 %v6412_v32, %v6411_v28  ;;  %v6302_v35 = vpop.f32.mrf.mxu0 }
 0x343   : > { %v6414_v37 = vpop.f32.mrf.mxu1 }
 0x344   : > { %2446 = vst [vmem:[#allocation5 + $0xc8] sm:$0xff] %v2414_v33  ;;  %v2349_v38 = vadd.f32 %v6413_v34, %v6301_v31  ;;  %v6303_v39 = vpop.f32.mrf.mxu0 }
 0x345   : > { %v6304_v40 = vadd.f32 %v6303_v39, %v6302_v35  ;;  %v6415_v41 = vpop.f32.mrf.mxu1  ;;  %v1424_v35 = vld [vmem:[#allocation5 + $0x28] sm:$0xff] }
 0x346   : > { %v2415_v42 = vadd.f32 %v2349_v38, %v1417_v36  ;;  %v6416_v43 = vadd.f32 %v6415_v41, %v6414_v37  ;;  %v6305_v44 = vpop.f32.mrf.mxu0 }
 0x347   : > { %v6417_v46 = vpop.f32.mrf.mxu1 }
 0x348   : > { %2447 = vst [vmem:[#allocation5 + $0xe0] sm:$0xff] %v2415_v42  ;;  %v2352_v47 = vadd.f32 %v6416_v43, %v6304_v40  ;;  %v6306_v48 = vpop.f32.mrf.mxu0 }
 0x349   : > { %v6307_v49 = vadd.f32 %v6306_v48, %v6305_v44  ;;  %v6418_v50 = vpop.f32.mrf.mxu1  ;;  %v1425_v44 = vld [vmem:[#allocation5 + $0xa0] sm:$0xff] }
 0x34a   : > { %v2416_v51 = vadd.f32 %v2352_v47, %v1418_v45  ;;  %v6419_v52 = vadd.f32 %v6418_v50, %v6417_v46  ;;  %v6308_v53 = vpop.f32.mrf.mxu0 }
 0x34b   : > { %v6420_v55 = vpop.f32.mrf.mxu1 }
 0x34c   : > { %2448 = vst [vmem:[#allocation5 + $0x90] sm:$0xff] %v2416_v51  ;;  %v2357_v56 = vadd.f32 %v6419_v52, %v6307_v49  ;;  %v6309_v57 = vpop.f32.mrf.mxu0 }
 0x34d   : > { %v6310_v58 = vadd.f32 %v6309_v57, %v6308_v53  ;;  %v6421_v59 = vpop.f32.mrf.mxu1  ;;  %v1426_v53 = vld [vmem:[#allocation5 + $0xf8] sm:$0xff] }
 0x34e   : > { %v2417_v60 = vadd.f32 %v2357_v56, %v1419_v54  ;;  %v6422_v61 = vadd.f32 %v6421_v59, %v6420_v55  ;;  %v6311_v62 = vpop.f32.mrf.mxu0 }
 0x34f   : > { %v6423_v0 = vpop.f32.mrf.mxu1 }
 0x350   : > { %2449 = vst [vmem:[#allocation5 + $0x70] sm:$0xff] %v2417_v60  ;;  %v2360_v1 = vadd.f32 %v6422_v61, %v6310_v58  ;;  %v6312_v2 = vpop.f32.mrf.mxu0 }
 0x351   : > { %v6313_v3 = vadd.f32 %v6312_v2, %v6311_v62  ;;  %v6424_v4 = vpop.f32.mrf.mxu1  ;;  %v1427_v62 = vld [vmem:[#allocation5 + $0x20] sm:$0xff] }
 0x352   : > { %v2418_v5 = vadd.f32 %v2360_v1, %v1420_v63  ;;  %v6425_v6 = vadd.f32 %v6424_v4, %v6423_v0  ;;  %v6314_v7 = vpop.f32.mrf.mxu0 }
 0x353   : > { %v6426_v9 = vpop.f32.mrf.mxu1 }
 0x354   : > { %2450 = vst [vmem:[#allocation5 + $0xc0] sm:$0xff] %v2418_v5  ;;  %v2365_v10 = vadd.f32 %v6425_v6, %v6313_v3  ;;  %v6315_v11 = vpop.f32.mrf.mxu0  ;;  %v1428_v6 = vld [vmem:[#allocation5 + $0x98] sm:$0xff] }
 0x355   : > { %v6316_v12 = vadd.f32 %v6315_v11, %v6314_v7  ;;  %v6427_v13 = vpop.f32.mrf.mxu1 }
 0x356   : > { %v2419_v14 = vadd.f32 %v2365_v10, %v1421_v8  ;;  %v6428_v15 = vadd.f32 %v6427_v13, %v6426_v9  ;;  %v6317_v16 = vpop.f32.mrf.mxu0 }
 0x357   : > { %v6429_v18 = vpop.f32.mrf.mxu1 }
 0x358   : > { %2451 = vst [vmem:[#allocation5 + $0xa8] sm:$0xff] %v2419_v14  ;;  %v2368_v19 = vadd.f32 %v6428_v15, %v6316_v12  ;;  %v6318_v20 = vpop.f32.mrf.mxu0 }
 0x359   : > { %v6319_v21 = vadd.f32 %v6318_v20, %v6317_v16  ;;  %v6430_v22 = vpop.f32.mrf.mxu1 }
 0x35a   : > { %v2420_v23 = vadd.f32 %v2368_v19, %v1422_v17  ;;  %v6431_v24 = vadd.f32 %v6430_v22, %v6429_v18  ;;  %v6320_v25 = vpop.f32.mrf.mxu0 }
 0x35b   : > { %v6432_v27 = vpop.f32.mrf.mxu1 }
 0x35c   : > { %2452 = vst [vmem:[#allocation5 + $0xd0] sm:$0xff] %v2420_v23  ;;  %v2373_v28 = vadd.f32 %v6431_v24, %v6319_v21  ;;  %v6321_v29 = vpop.f32.mrf.mxu0 }
 0x35d   : > { %v6322_v30 = vadd.f32 %v6321_v29, %v6320_v25  ;;  %v6433_v31 = vpop.f32.mrf.mxu1 }
 0x35e   : > { %v2421_v32 = vadd.f32 %v2373_v28, %v1423_v26  ;;  %v6434_v33 = vadd.f32 %v6433_v31, %v6432_v27  ;;  %v6323_v34 = vpop.f32.mrf.mxu0 }
 0x35f   : > { %v6435_v36 = vpop.f32.mrf.mxu1 }
 0x360   : > { %2453 = vst [vmem:[#allocation5 + $0x10] sm:$0xff] %v2421_v32  ;;  %v2376_v37 = vadd.f32 %v6434_v33, %v6322_v30  ;;  %v6324_v38 = vpop.f32.mrf.mxu0 }
 0x361   : > { %v6325_v39 = vadd.f32 %v6324_v38, %v6323_v34  ;;  %v6436_v40 = vpop.f32.mrf.mxu1 }
 0x362   : > { %v2422_v41 = vadd.f32 %v2376_v37, %v1424_v35  ;;  %v6437_v42 = vadd.f32 %v6436_v40, %v6435_v36  ;;  %v6326_v43 = vpop.f32.mrf.mxu0 }
 0x363   : > { %v6438_v45 = vpop.f32.mrf.mxu1 }
 0x364   : > { %2454 = vst [vmem:[#allocation5 + $0x28] sm:$0xff] %v2422_v41  ;;  %v2381_v46 = vadd.f32 %v6437_v42, %v6325_v39  ;;  %v6327_v47 = vpop.f32.mrf.mxu0 }
 0x365   : > { %v6328_v48 = vadd.f32 %v6327_v47, %v6326_v43  ;;  %v6439_v49 = vpop.f32.mrf.mxu1 }
 0x366   : > { %v2423_v50 = vadd.f32 %v2381_v46, %v1425_v44  ;;  %v6440_v51 = vadd.f32 %v6439_v49, %v6438_v45  ;;  %v6329_v52 = vpop.f32.mrf.mxu0 }
 0x367   : > { %v6441_v54 = vpop.f32.mrf.mxu1 }
 0x368   : > { %2455 = vst [vmem:[#allocation5 + $0xa0] sm:$0xff] %v2423_v50  ;;  %v2384_v55 = vadd.f32 %v6440_v51, %v6328_v48  ;;  %v6330_v56 = vpop.f32.mrf.mxu0 }
 0x369   : > { %v6331_v57 = vadd.f32 %v6330_v56, %v6329_v52  ;;  %v6442_v58 = vpop.f32.mrf.mxu1 }
 0x36a   : > { %v2424_v59 = vadd.f32 %v2384_v55, %v1426_v53  ;;  %v6443_v60 = vadd.f32 %v6442_v58, %v6441_v54  ;;  %v6332_v61 = vpop.f32.mrf.mxu0 }
 0x36b   : > { %v6444_v63 = vpop.f32.mrf.mxu1 }
 0x36c   : > { %2456 = vst [vmem:[#allocation5 + $0xf8] sm:$0xff] %v2424_v59  ;;  %v2389_v0 = vadd.f32 %v6443_v60, %v6331_v57  ;;  %v6333_v1 = vpop.f32.mrf.mxu0 }
 0x36d   : > { %v6334_v2 = vadd.f32 %v6333_v1, %v6332_v61  ;;  %v6445_v3 = vpop.f32.mrf.mxu1 }
 0x36e   : > { %v2425_v4 = vadd.f32 %v2389_v0, %v1427_v62  ;;  %v6446_v5 = vadd.f32 %v6445_v3, %v6444_v63 }
 0x370   : > { %2457 = vst [vmem:[#allocation5 + $0x20] sm:$0xff] %v2425_v4  ;;  %v2392_v7 = vadd.f32 %v6446_v5, %v6334_v2  ;;  %2462 = sbr.rel (%p5294_p4) target bundleno = 911 (0x38f), region = 84 }
 0x372   : > { %v2426_v8 = vadd.f32 %v2392_v7, %v1428_v6 }
 0x374   : > { %2458 = vst [vmem:[#allocation5 + $0x98] sm:$0xff] %v2426_v8 }
 0x375   : > { %v2464_v9 = vld [vmem:[#allocation5 + $0xb0] sm:$0xff]  ;;  %v2465_v10 = vld [vmem:[#allocation5] sm:$0xff]  ;;  %v2466_v14 = vld [vmem:[#allocation5 + $0xd8] sm:$0xff] }
 0x376   : > { %v8286_v11 = vld [vmem:[#allocation12] ss:$0 sm:$0xff]  ;;  %v2467_v15 = vld [vmem:[#allocation5 + $0x18] sm:$0xff]  ;;  %v2468_v16 = vld [vmem:[#allocation5 + $0x50] sm:$0xff] }
 0x377   : > { %v2503_v12 = vadd.f32 %v8286_v11, %v2464_v9  ;;  %v2504_v13 = vadd.f32 %v8286_v11, %v2465_v10  ;;  %v2505_v17 = vadd.f32 %v8286_v11, %v2466_v14  ;;  %v2506_v18 = vadd.f32 %v8286_v11, %v2467_v15  ;;  %v2469_v19 = vld [vmem:[#allocation5 + $0x68] sm:$0xff]  ;;  %v2470_v21 = vld [vmem:[#allocation5 + $0x30] sm:$0xff]  ;;  %v2472_v27 = vld [vmem:[#allocation5 + $0x80] sm:$0xff] }
 0x378   : > { %v2507_v20 = vadd.f32 %v8286_v11, %v2468_v16  ;;  %v2471_v22 = vld [vmem:[#allocation5 + $0x48] sm:$0xff]  ;;  %v2508_v25 = vadd.f32 %v8286_v11, %v2469_v19  ;;  %v2509_v26 = vadd.f32 %v8286_v11, %v2470_v21  ;;  %v2475_v34 = vld [vmem:[#allocation5 + $0xb8] sm:$0xff]  ;;  %v2476_v35 = vld [vmem:[#allocation5 + $0x60] sm:$0xff]  ;;  %v2511_v39 = vadd.f32 %v8286_v11, %v2472_v27 }
 0x379   : > { %v2535_v23 = vmax.f32 %v2503_v12, 0.0  ;;  %v2536_v24 = vmax.f32 %v2504_v13, 0.0  ;;  %v2473_v28 = vld [vmem:[#allocation5 + $0x88] sm:$0xff]  ;;  %v2537_v30 = vmax.f32 %v2505_v17, 0.0  ;;  %v2538_v31 = vmax.f32 %v2506_v18, 0.0  ;;  %v2477_v40 = vld [vmem:[#allocation5 + $0xf0] sm:$0xff] }
 0x37a   : > { %v2474_v29 = vld [vmem:[#allocation5 + $0xe8] sm:$0xff]  ;;  %v2539_v32 = vmax.f32 %v2507_v20, 0.0  ;;  %v2510_v33 = vadd.f32 %v8286_v11, %v2471_v22  ;;  %v2540_v37 = vmax.f32 %v2508_v25, 0.0  ;;  %v2541_v38 = vmax.f32 %v2509_v26, 0.0  ;;  %v2479_v46 = vld [vmem:[#allocation5 + $0x78] sm:$0xff]  ;;  %v2482_v57 = vld [vmem:[#allocation5 + $0x40] sm:$0xff] }
 0x37b   : > { %v5869_v36 = vpack.c.bf16 %v2536_v24, %v2535_v23  ;;  %v5874_v41 = vpack.c.bf16 %v2538_v31, %v2537_v30  ;;  %v2512_v43 = vadd.f32 %v8286_v11, %v2473_v28  ;;  %v2513_v44 = vadd.f32 %v8286_v11, %v2474_v29  ;;  %v2478_v45 = vld [vmem:[#allocation5 + $0x8] sm:$0xff]  ;;  %v2480_v51 = vld [vmem:[#allocation5 + $0x38] sm:$0xff]  ;;  %v2484_v3 = vld [vmem:[#allocation5 + $0xe0] sm:$0xff] }
 0x37c   : > { %v2542_v42 = vmax.f32 %v2510_v33, 0.0  ;;  %v5879_v47 = vpack.c.bf16 %v2540_v37, %v2539_v32  ;;  %v2543_v48 = vmax.f32 %v2511_v39, 0.0  ;;  %v2514_v49 = vadd.f32 %v8286_v11, %v2475_v34  ;;  %v2481_v52 = vld [vmem:[#allocation5 + $0x58] sm:$0xff]  ;;  %v2483_v62 = vld [vmem:[#allocation5 + $0xc8] sm:$0xff]  ;;  %v2485_v4 = vld [vmem:[#allocation5 + $0x90] sm:$0xff] }
 0x37d   : > { %5870 = vst [vmem:[%s8304_s16] sm:$0xff] %v5869_v36   ;;  %v2515_v50 = vadd.f32 %v8286_v11, %v2476_v35  ;;  %6137 = vst [vmem:[%s8304_s16 + $0x8] sm:$0xff] %v5874_v41   ;;  %v2544_v54 = vmax.f32 %v2512_v43, 0.0  ;;  %v2545_v55 = vmax.f32 %v2513_v44, 0.0  ;;  %v2516_v56 = vadd.f32 %v8286_v11, %v2477_v40  ;;  %v2486_v9 = vld [vmem:[#allocation5 + $0x70] sm:$0xff]  ;;  %v2487_v10 = vld [vmem:[#allocation5 + $0xc0] sm:$0xff] }
 0x37e   : > { %v5884_v53 = vpack.c.bf16 %v2542_v42, %v2541_v38  ;;  %6138 = vst [vmem:[%s8304_s16 + $0x10] sm:$0xff] %v5879_v47   ;;  %v2546_v58 = vmax.f32 %v2514_v49, 0.0  ;;  %v2517_v60 = vadd.f32 %v8286_v11, %v2478_v45  ;;  %v2518_v61 = vadd.f32 %v8286_v11, %v2479_v46  ;;  %v2488_v16 = vld [vmem:[#allocation5 + $0xa8] sm:$0xff]  ;;  %v2489_v17 = vld [vmem:[#allocation5 + $0xd0] sm:$0xff]  ;;  %v2492_v32 = vld [vmem:[#allocation5 + $0xa0] sm:$0xff] }
 0x37f   : > { %v2547_v59 = vmax.f32 %v2515_v50, 0.0  ;;  %v5889_v63 = vpack.c.bf16 %v2544_v54, %v2543_v48  ;;  %v2548_v0 = vmax.f32 %v2516_v56, 0.0  ;;  %v2519_v1 = vadd.f32 %v8286_v11, %v2480_v51  ;;  %v2490_v22 = vld [vmem:[#allocation5 + $0x10] sm:$0xff]  ;;  %v2491_v27 = vld [vmem:[#allocation5 + $0x28] sm:$0xff]  ;;  %v2493_v33 = vld [vmem:[#allocation5 + $0xf8] sm:$0xff] }
 0x380   : > { %6139 = vst [vmem:[%s8304_s16 + $0x18] sm:$0xff] %v5884_v53   ;;  %v2520_v2 = vadd.f32 %v8286_v11, %v2481_v52  ;;  %v5894_v5 = vpack.c.bf16 %v2546_v58, %v2545_v55  ;;  %v2549_v6 = vmax.f32 %v2517_v60, 0.0  ;;  %v2550_v7 = vmax.f32 %v2518_v61, 0.0  ;;  %v2494_v38 = vld [vmem:[#allocation5 + $0x20] sm:$0xff]  ;;  %v2495_v39 = vld [vmem:[#allocation5 + $0x98] sm:$0xff] }
 0x381   : > { %v2521_v8 = vadd.f32 %v8286_v11, %v2482_v57  ;;  %6140 = vst [vmem:[%s8304_s16 + $0x20] sm:$0xff] %v5889_v63   ;;  %v5899_v12 = vpack.c.bf16 %v2548_v0, %v2547_v59  ;;  %v2551_v13 = vmax.f32 %v2519_v1, 0.0  ;;  %v2522_v15 = vadd.f32 %v8286_v11, %v2483_v62 }
 0x382   : > { %v2552_v14 = vmax.f32 %v2520_v2, 0.0  ;;  %6141 = vst [vmem:[%s8304_s16 + $0x28] sm:$0xff] %v5894_v5   ;;  %v5904_v18 = vpack.c.bf16 %v2550_v7, %v2549_v6  ;;  %v2523_v20 = vadd.f32 %v8286_v11, %v2484_v3  ;;  %v2524_v21 = vadd.f32 %v8286_v11, %v2485_v4 }
 0x383   : > { %v2553_v19 = vmax.f32 %v2521_v8, 0.0  ;;  %6142 = vst [vmem:[%s8304_s16 + $0x30] sm:$0xff] %v5899_v12   ;;  %v2554_v24 = vmax.f32 %v2522_v15, 0.0  ;;  %v2525_v25 = vadd.f32 %v8286_v11, %v2486_v9  ;;  %v2526_v26 = vadd.f32 %v8286_v11, %v2487_v10 }
 0x384   : > { %v5909_v23 = vpack.c.bf16 %v2552_v14, %v2551_v13  ;;  %6143 = vst [vmem:[%s8304_s16 + $0x38] sm:$0xff] %v5904_v18   ;;  %v2555_v28 = vmax.f32 %v2523_v20, 0.0  ;;  %v2556_v29 = vmax.f32 %v2524_v21, 0.0  ;;  %v2527_v30 = vadd.f32 %v8286_v11, %v2488_v16 }
 0x385   : > { %v2528_v31 = vadd.f32 %v8286_v11, %v2489_v17  ;;  %v5914_v34 = vpack.c.bf16 %v2554_v24, %v2553_v19  ;;  %v2557_v35 = vmax.f32 %v2525_v25, 0.0  ;;  %v2558_v36 = vmax.f32 %v2526_v26, 0.0 }
 0x386   : > { %6144 = vst [vmem:[%s8304_s16 + $0x40] sm:$0xff] %v5909_v23   ;;  %v2529_v37 = vadd.f32 %v8286_v11, %v2490_v22  ;;  %v5919_v40 = vpack.c.bf16 %v2556_v29, %v2555_v28  ;;  %v2559_v41 = vmax.f32 %v2527_v30, 0.0  ;;  %v2530_v43 = vadd.f32 %v8286_v11, %v2491_v27 }
 0x387   : > { %v2560_v42 = vmax.f32 %v2528_v31, 0.0  ;;  %6145 = vst [vmem:[%s8304_s16 + $0x48] sm:$0xff] %v5914_v34   ;;  %v5924_v44 = vpack.c.bf16 %v2558_v36, %v2557_v35  ;;  %v2531_v46 = vadd.f32 %v8286_v11, %v2492_v32  ;;  %v2532_v47 = vadd.f32 %v8286_v11, %v2493_v33 }
 0x388   : > { %v2561_v45 = vmax.f32 %v2529_v37, 0.0  ;;  %6146 = vst [vmem:[%s8304_s16 + $0x50] sm:$0xff] %v5919_v40   ;;  %v2562_v49 = vmax.f32 %v2530_v43, 0.0  ;;  %v2533_v50 = vadd.f32 %v8286_v11, %v2494_v38  ;;  %v2534_v51 = vadd.f32 %v8286_v11, %v2495_v39 }
 0x389   : > { %v5929_v48 = vpack.c.bf16 %v2560_v42, %v2559_v41  ;;  %6147 = vst [vmem:[%s8304_s16 + $0x58] sm:$0xff] %v5924_v44   ;;  %v2563_v52 = vmax.f32 %v2531_v46, 0.0  ;;  %v2564_v53 = vmax.f32 %v2532_v47, 0.0 }
 0x38a   : > { %v5934_v54 = vpack.c.bf16 %v2562_v49, %v2561_v45  ;;  %v2565_v55 = vmax.f32 %v2533_v50, 0.0  ;;  %v2566_v56 = vmax.f32 %v2534_v51, 0.0 }
 0x38b   : > { %6148 = vst [vmem:[%s8304_s16 + $0x60] sm:$0xff] %v5929_v48   ;;  %v5939_v57 = vpack.c.bf16 %v2564_v53, %v2563_v52 }
 0x38c   : > { %6149 = vst [vmem:[%s8304_s16 + $0x68] sm:$0xff] %v5934_v54   ;;  %v5944_v58 = vpack.c.bf16 %v2566_v56, %v2565_v55 }
 0x38d   : > { %6150 = vst [vmem:[%s8304_s16 + $0x70] sm:$0xff] %v5939_v57  }
 0x38e   : > { %6151 = vst [vmem:[%s8304_s16 + $0x78] sm:$0xff] %v5944_v58  }
 0x38f PF: > { %s8887_s14 = sld [smem:[#allocation29_spill]] }
 0x395   : > { %p5330_p7 = scmp.ne.s32.totalorder %s8887_s14, 1 }
 0x396   : > { %s8888_s5 = sld [smem:[#allocation28_spill]] (!%p5330_p7) }
 0x397   : > { %2734 = sbr.rel (%p5330_p7) target bundleno = 1635 (0x663), region = 88 }
 0x39c   : > { %p5331_p1 = scmp.ne.s32.totalorder %s8888_s5, 0 }
 0x39d   : > { %s2739_s21 = sshra.s32 (!%p5331_p1), %s8109_s0, 3 }
 0x39e   : > { %2738 = sbr.rel (%p5331_p1) target bundleno = 1222 (0x4c6), region = 92  ;;  %s8346_s11 = sshll.u32 (!%p5331_p1), %s2739_s21, 2 }
 0x39f   : > { %s8349_s13 = scalar_lea.vmem (!%p5331_p1), [#allocation3], %s8346_s11  ;;  %s8384_s29 = scalar_lea.vmem (!%p5331_p1), [#allocation4], %s8346_s11 }
 0x3a3   : > { %v7268_v11 = vld [vmem:[#allocation14 + $0x38] sm:$0xff]   ;;  %v7269_v59 = vld [vmem:[#allocation14 + $0x30] sm:$0xff]   ;;  %v7270_v60 = vld [vmem:[#allocation14 + $0x28] sm:$0xff]  }
 0x3a4   : > { %6791 = vmatprep.subr.bf16.mxu0 %v7268_v11  ;;  %6887 = vmatprep.subr.bf16.mxu1 %v7268_v11  ;;  %v7271_v61 = vld [vmem:[#allocation14 + $0x20] sm:$0xff]   ;;  %v7272_v0 = vld [vmem:[#allocation14 + $0x18] sm:$0xff]   ;;  %v7273_v1 = vld [vmem:[#allocation14 + $0x10] sm:$0xff]  }
 0x3a5   : > { %6792 = vmatpush3.bf16.msra.mxu0 %v7268_v11  ;;  %6895 = vmatpush3.bf16.msra.mxu1 %v7268_v11  ;;  %v7276_v62 = vld [vmem:[%s8349_s13] sm:$0xff]   ;;  %v7274_v2 = vld [vmem:[#allocation14 + $0x8] sm:$0xff]   ;;  %v7282_v8 = vld [vmem:[%s8349_s13 + $0x18] sm:$0xff]  }
 0x3a6   : > { %6793 = vmatprep.subr.bf16.mxu0 %v7269_v59  ;;  %6888 = vmatprep.subr.bf16.mxu1 %v7269_v59  ;;  %v7277_v63 = vld [vmem:[%s8349_s13 + $0x80] sm:$0xff]   ;;  %v7278_v4 = vld [vmem:[%s8349_s13 + $0x8] sm:$0xff]   ;;  %v7280_v6 = vld [vmem:[%s8349_s13 + $0x10] sm:$0xff]  }
 0x3a7   : > { %6807 = vmatprep.mubr.bf16.mxu0 %v7276_v62  ;;  %6839 = vmatprep.mubr.bf16.mxu1 %v7277_v63  ;;  %v7275_v3 = vld [vmem:[#allocation14] sm:$0xff]   ;;  %v7281_v7 = vld [vmem:[%s8349_s13 + $0x90] sm:$0xff]   ;;  %v7283_v9 = vld [vmem:[%s8349_s13 + $0x98] sm:$0xff]  }
 0x3a8   : > { %v7279_v5 = vld [vmem:[%s8349_s13 + $0x88] sm:$0xff]   ;;  %v7284_v10 = vld [vmem:[%s8349_s13 + $0x20] sm:$0xff]   ;;  %v7288_v15 = vld [vmem:[%s8349_s13 + $0x30] sm:$0xff]  }
 0x3a9   : > { %6794 = vmatpush3.bf16.msra.mxu0 %v7269_v59  ;;  %6896 = vmatpush3.bf16.msra.mxu1 %v7269_v59  ;;  %v7285_v12 = vld [vmem:[%s8349_s13 + $0xa0] sm:$0xff]   ;;  %v7286_v13 = vld [vmem:[%s8349_s13 + $0x28] sm:$0xff]   ;;  %v7289_v16 = vld [vmem:[%s8349_s13 + $0xb0] sm:$0xff]  }
 0x3aa   : > { %6795 = vmatprep.subr.bf16.mxu0 %v7270_v60  ;;  %6889 = vmatprep.subr.bf16.mxu1 %v7270_v60  ;;  %v7287_v14 = vld [vmem:[%s8349_s13 + $0xa8] sm:$0xff]   ;;  %v7290_v17 = vld [vmem:[%s8349_s13 + $0x38] sm:$0xff]   ;;  %v7292_v19 = vld [vmem:[%s8349_s13 + $0x40] sm:$0xff]  }
 0x3ab   : > { %v7291_v18 = vld [vmem:[%s8349_s13 + $0xb8] sm:$0xff]   ;;  %v7293_v20 = vld [vmem:[%s8349_s13 + $0xc0] sm:$0xff]   ;;  %v7294_v21 = vld [vmem:[%s8349_s13 + $0x48] sm:$0xff]  }
 0x3ac   : > { %v7295_v22 = vld [vmem:[%s8349_s13 + $0xc8] sm:$0xff]   ;;  %v7296_v23 = vld [vmem:[%s8349_s13 + $0x50] sm:$0xff]   ;;  %v7298_v25 = vld [vmem:[%s8349_s13 + $0x58] sm:$0xff]  }
 0x3ad   : > { %6796 = vmatpush3.bf16.msra.mxu0 %v7270_v60  ;;  %6897 = vmatpush3.bf16.msra.mxu1 %v7270_v60  ;;  %v7297_v24 = vld [vmem:[%s8349_s13 + $0xd0] sm:$0xff]   ;;  %v7299_v26 = vld [vmem:[%s8349_s13 + $0xd8] sm:$0xff]   ;;  %v7300_v27 = vld [vmem:[%s8349_s13 + $0x60] sm:$0xff]  }
 0x3ae   : > { %6797 = vmatprep.subr.bf16.mxu0 %v7271_v61  ;;  %6890 = vmatprep.subr.bf16.mxu1 %v7271_v61  ;;  %v7301_v28 = vld [vmem:[%s8349_s13 + $0xe0] sm:$0xff]   ;;  %v7302_v29 = vld [vmem:[%s8349_s13 + $0x68] sm:$0xff]   ;;  %v7304_v31 = vld [vmem:[%s8349_s13 + $0x70] sm:$0xff]  }
 0x3af   : > { %v7303_v30 = vld [vmem:[%s8349_s13 + $0xe8] sm:$0xff]   ;;  %v7305_v32 = vld [vmem:[%s8349_s13 + $0xf0] sm:$0xff]   ;;  %v7306_v33 = vld [vmem:[%s8349_s13 + $0x78] sm:$0xff]  }
 0x3b0   : > { %v7307_v34 = vld [vmem:[%s8349_s13 + $0xf8] sm:$0xff]  }
 0x3b1   : > { %6798 = vmatpush3.bf16.msra.mxu0 %v7271_v61  ;;  %6898 = vmatpush3.bf16.msra.mxu1 %v7271_v61 }
 0x3b2   : > { %6799 = vmatprep.subr.bf16.mxu0 %v7272_v0  ;;  %6891 = vmatprep.subr.bf16.mxu1 %v7272_v0 }
 0x3b5   : > { %6800 = vmatpush3.bf16.msra.mxu0 %v7272_v0  ;;  %6899 = vmatpush3.bf16.msra.mxu1 %v7272_v0 }
 0x3b6   : > { %6801 = vmatprep.subr.bf16.mxu0 %v7273_v1  ;;  %6892 = vmatprep.subr.bf16.mxu1 %v7273_v1 }
 0x3b9   : > { %6802 = vmatpush3.bf16.msra.mxu0 %v7273_v1  ;;  %6900 = vmatpush3.bf16.msra.mxu1 %v7273_v1 }
 0x3ba   : > { %6803 = vmatprep.subr.bf16.mxu0 %v7274_v2  ;;  %6893 = vmatprep.subr.bf16.mxu1 %v7274_v2 }
 0x3bd   : > { %6804 = vmatpush3.bf16.msra.mxu0 %v7274_v2  ;;  %6901 = vmatpush3.bf16.msra.mxu1 %v7274_v2 }
 0x3be   : > { %6805 = vmatprep.subr.bf16.mxu0 %v7275_v3  ;;  %6894 = vmatprep.subr.bf16.mxu1 %v7275_v3 }
 0x3c1   : > { %6806 = vmatpush3.bf16.msra.mxu0 %v7275_v3  ;;  %6902 = vmatpush3.bf16.msra.mxu1 %v7275_v3 }
 0x3c4   : > { %6808 = vmatmul.mubr.bf16.vlgmr.msra.gmra.mxu0 %v7278_v4  ;;  %6840 = vmatmul.mubr.bf16.vlgmr.msra.gmra.mxu1 %v7279_v5 }
 0x3c5   : > { %6811 = vmatprep.mubr.bf16.mxu0 %v7280_v6  ;;  %6843 = vmatprep.mubr.bf16.mxu1 %v7281_v7 }
 0x3cc   : > { %6812 = vmatmul.mubr.bf16.gmra.mxu0 %v7282_v8  ;;  %6844 = vmatmul.mubr.bf16.gmra.mxu1 %v7283_v9 }
 0x3cd   : > { %6815 = vmatprep.mubr.bf16.mxu0 %v7284_v10  ;;  %6847 = vmatprep.mubr.bf16.mxu1 %v7285_v12 }
 0x3d4   : > { %6816 = vmatmul.mubr.bf16.gmra.mxu0 %v7286_v13  ;;  %6848 = vmatmul.mubr.bf16.gmra.mxu1 %v7287_v14 }
 0x3d5   : > { %6819 = vmatprep.mubr.bf16.mxu0 %v7288_v15  ;;  %6851 = vmatprep.mubr.bf16.mxu1 %v7289_v16 }
 0x3dc   : > { %6820 = vmatmul.mubr.bf16.gmra.mxu0 %v7290_v17  ;;  %6852 = vmatmul.mubr.bf16.gmra.mxu1 %v7291_v18 }
 0x3dd   : > { %6823 = vmatprep.mubr.bf16.mxu0 %v7292_v19  ;;  %6855 = vmatprep.mubr.bf16.mxu1 %v7293_v20 }
 0x3e4   : > { %6824 = vmatmul.mubr.bf16.gmra.mxu0 %v7294_v21  ;;  %6856 = vmatmul.mubr.bf16.gmra.mxu1 %v7295_v22 }
 0x3e5   : > { %6827 = vmatprep.mubr.bf16.mxu0 %v7296_v23  ;;  %6859 = vmatprep.mubr.bf16.mxu1 %v7297_v24 }
 0x3ec   : > { %6828 = vmatmul.mubr.bf16.gmra.mxu0 %v7298_v25  ;;  %6860 = vmatmul.mubr.bf16.gmra.mxu1 %v7299_v26 }
 0x3ed   : > { %6831 = vmatprep.mubr.bf16.mxu0 %v7300_v27  ;;  %6863 = vmatprep.mubr.bf16.mxu1 %v7301_v28 }
 0x3f4   : > { %6832 = vmatmul.mubr.bf16.gmra.mxu0 %v7302_v29  ;;  %6864 = vmatmul.mubr.bf16.gmra.mxu1 %v7303_v30 }
 0x3f5   : > { %6835 = vmatprep.mubr.bf16.mxu0 %v7304_v31  ;;  %6867 = vmatprep.mubr.bf16.mxu1 %v7305_v32 }
 0x3fc   : > { %6836 = vmatmul.mubr.bf16.gmra.mxu0 %v7306_v33  ;;  %6868 = vmatmul.mubr.bf16.gmra.mxu1 %v7307_v34 }
 0x484   : > { %v6809_v35 = vpop.f32.mrf.mxu0  ;;  %v6841_v36 = vpop.f32.mrf.mxu1 }
 0x486   : > { %v3097_v37 = vpop.f32.mrf.mxu0  ;;  %v3225_v38 = vpop.f32.mrf.mxu1 }
 0x488   : > { %v6810_v39 = vpop.f32.mrf.mxu0  ;;  %v6842_v40 = vpop.f32.mrf.mxu1 }
 0x489   : > { %v5954_v41 = vpack.c.bf16 %v6810_v39, %v6809_v35  ;;  %v6034_v42 = vpack.c.bf16 %v6842_v40, %v6841_v36 }
 0x48a   : > { %v3100_v43 = vpop.f32.mrf.mxu0  ;;  %v3228_v44 = vpop.f32.mrf.mxu1 }
 0x48b   : > { %6152 = vst [vmem:[%s8384_s29 + $0x8] sm:$0xff] %v5954_v41   ;;  %6168 = vst [vmem:[%s8384_s29 + $0x88] sm:$0xff] %v6034_v42   ;;  %v5949_v45 = vpack.c.bf16 %v3100_v43, %v3097_v37  ;;  %v6029_v46 = vpack.c.bf16 %v3228_v44, %v3225_v38 }
 0x48c   : > { %v6813_v47 = vpop.f32.mrf.mxu0  ;;  %v6845_v48 = vpop.f32.mrf.mxu1 }
 0x48d   : > { %5950 = vst [vmem:[%s8384_s29] sm:$0xff] %v5949_v45   ;;  %6167 = vst [vmem:[%s8384_s29 + $0x80] sm:$0xff] %v6029_v46  }
 0x48e   : > { %v3113_v49 = vpop.f32.mrf.mxu0  ;;  %v3241_v50 = vpop.f32.mrf.mxu1 }
 0x490   : > { %v6814_v51 = vpop.f32.mrf.mxu0  ;;  %v6846_v52 = vpop.f32.mrf.mxu1 }
 0x491   : > { %v5964_v53 = vpack.c.bf16 %v6814_v51, %v6813_v47  ;;  %v6044_v54 = vpack.c.bf16 %v6846_v52, %v6845_v48 }
 0x492   : > { %v3116_v55 = vpop.f32.mrf.mxu0  ;;  %v3244_v56 = vpop.f32.mrf.mxu1 }
 0x493   : > { %6154 = vst [vmem:[%s8384_s29 + $0x18] sm:$0xff] %v5964_v53   ;;  %6170 = vst [vmem:[%s8384_s29 + $0x98] sm:$0xff] %v6044_v54   ;;  %v5959_v57 = vpack.c.bf16 %v3116_v55, %v3113_v49  ;;  %v6039_v58 = vpack.c.bf16 %v3244_v56, %v3241_v50 }
 0x494   : > { %v6817_v11 = vpop.f32.mrf.mxu0  ;;  %v6849_v59 = vpop.f32.mrf.mxu1 }
 0x495   : > { %6153 = vst [vmem:[%s8384_s29 + $0x10] sm:$0xff] %v5959_v57   ;;  %6169 = vst [vmem:[%s8384_s29 + $0x90] sm:$0xff] %v6039_v58  }
 0x496   : > { %v3129_v60 = vpop.f32.mrf.mxu0  ;;  %v3257_v61 = vpop.f32.mrf.mxu1 }
 0x498   : > { %v6818_v62 = vpop.f32.mrf.mxu0  ;;  %v6850_v63 = vpop.f32.mrf.mxu1 }
 0x499   : > { %v5974_v0 = vpack.c.bf16 %v6818_v62, %v6817_v11  ;;  %v6054_v1 = vpack.c.bf16 %v6850_v63, %v6849_v59 }
 0x49a   : > { %v3132_v2 = vpop.f32.mrf.mxu0  ;;  %v3260_v3 = vpop.f32.mrf.mxu1 }
 0x49b   : > { %6156 = vst [vmem:[%s8384_s29 + $0x28] sm:$0xff] %v5974_v0   ;;  %6172 = vst [vmem:[%s8384_s29 + $0xa8] sm:$0xff] %v6054_v1   ;;  %v5969_v4 = vpack.c.bf16 %v3132_v2, %v3129_v60  ;;  %v6049_v5 = vpack.c.bf16 %v3260_v3, %v3257_v61 }
 0x49c   : > { %v6821_v6 = vpop.f32.mrf.mxu0  ;;  %v6853_v7 = vpop.f32.mrf.mxu1 }
 0x49d   : > { %6155 = vst [vmem:[%s8384_s29 + $0x20] sm:$0xff] %v5969_v4   ;;  %6171 = vst [vmem:[%s8384_s29 + $0xa0] sm:$0xff] %v6049_v5  }
 0x49e   : > { %v3145_v8 = vpop.f32.mrf.mxu0  ;;  %v3273_v9 = vpop.f32.mrf.mxu1 }
 0x4a0   : > { %v6822_v10 = vpop.f32.mrf.mxu0  ;;  %v6854_v12 = vpop.f32.mrf.mxu1 }
 0x4a1   : > { %v5984_v13 = vpack.c.bf16 %v6822_v10, %v6821_v6  ;;  %v6064_v14 = vpack.c.bf16 %v6854_v12, %v6853_v7 }
 0x4a2   : > { %v3148_v15 = vpop.f32.mrf.mxu0  ;;  %v3276_v16 = vpop.f32.mrf.mxu1 }
 0x4a3   : > { %6158 = vst [vmem:[%s8384_s29 + $0x38] sm:$0xff] %v5984_v13   ;;  %6174 = vst [vmem:[%s8384_s29 + $0xb8] sm:$0xff] %v6064_v14   ;;  %v5979_v17 = vpack.c.bf16 %v3148_v15, %v3145_v8  ;;  %v6059_v18 = vpack.c.bf16 %v3276_v16, %v3273_v9 }
 0x4a4   : > { %v6825_v19 = vpop.f32.mrf.mxu0  ;;  %v6857_v20 = vpop.f32.mrf.mxu1 }
 0x4a5   : > { %6157 = vst [vmem:[%s8384_s29 + $0x30] sm:$0xff] %v5979_v17   ;;  %6173 = vst [vmem:[%s8384_s29 + $0xb0] sm:$0xff] %v6059_v18  }
 0x4a6   : > { %v3161_v21 = vpop.f32.mrf.mxu0  ;;  %v3289_v22 = vpop.f32.mrf.mxu1 }
 0x4a8   : > { %v6826_v23 = vpop.f32.mrf.mxu0  ;;  %v6858_v24 = vpop.f32.mrf.mxu1 }
 0x4a9   : > { %v5994_v25 = vpack.c.bf16 %v6826_v23, %v6825_v19  ;;  %v6074_v26 = vpack.c.bf16 %v6858_v24, %v6857_v20 }
 0x4aa   : > { %v3164_v27 = vpop.f32.mrf.mxu0  ;;  %v3292_v28 = vpop.f32.mrf.mxu1 }
 0x4ab   : > { %6160 = vst [vmem:[%s8384_s29 + $0x48] sm:$0xff] %v5994_v25   ;;  %6176 = vst [vmem:[%s8384_s29 + $0xc8] sm:$0xff] %v6074_v26   ;;  %v5989_v29 = vpack.c.bf16 %v3164_v27, %v3161_v21  ;;  %v6069_v30 = vpack.c.bf16 %v3292_v28, %v3289_v22 }
 0x4ac   : > { %v6829_v31 = vpop.f32.mrf.mxu0  ;;  %v6861_v32 = vpop.f32.mrf.mxu1 }
 0x4ad   : > { %6159 = vst [vmem:[%s8384_s29 + $0x40] sm:$0xff] %v5989_v29   ;;  %6175 = vst [vmem:[%s8384_s29 + $0xc0] sm:$0xff] %v6069_v30  }
 0x4ae   : > { %v3177_v33 = vpop.f32.mrf.mxu0  ;;  %v3305_v34 = vpop.f32.mrf.mxu1 }
 0x4b0   : > { %v6830_v35 = vpop.f32.mrf.mxu0  ;;  %v6862_v36 = vpop.f32.mrf.mxu1 }
 0x4b1   : > { %v6004_v37 = vpack.c.bf16 %v6830_v35, %v6829_v31  ;;  %v6084_v38 = vpack.c.bf16 %v6862_v36, %v6861_v32 }
 0x4b2   : > { %v3180_v39 = vpop.f32.mrf.mxu0  ;;  %v3308_v40 = vpop.f32.mrf.mxu1 }
 0x4b3   : > { %6162 = vst [vmem:[%s8384_s29 + $0x58] sm:$0xff] %v6004_v37   ;;  %6178 = vst [vmem:[%s8384_s29 + $0xd8] sm:$0xff] %v6084_v38   ;;  %v5999_v41 = vpack.c.bf16 %v3180_v39, %v3177_v33  ;;  %v6079_v42 = vpack.c.bf16 %v3308_v40, %v3305_v34 }
 0x4b4   : > { %v6833_v43 = vpop.f32.mrf.mxu0  ;;  %v6865_v44 = vpop.f32.mrf.mxu1 }
 0x4b5   : > { %6161 = vst [vmem:[%s8384_s29 + $0x50] sm:$0xff] %v5999_v41   ;;  %6177 = vst [vmem:[%s8384_s29 + $0xd0] sm:$0xff] %v6079_v42  }
 0x4b6   : > { %v3193_v45 = vpop.f32.mrf.mxu0  ;;  %v3321_v46 = vpop.f32.mrf.mxu1 }
 0x4b8   : > { %v6834_v47 = vpop.f32.mrf.mxu0  ;;  %v6866_v48 = vpop.f32.mrf.mxu1 }
 0x4b9   : > { %v6014_v49 = vpack.c.bf16 %v6834_v47, %v6833_v43  ;;  %v6094_v50 = vpack.c.bf16 %v6866_v48, %v6865_v44 }
 0x4ba   : > { %v3196_v51 = vpop.f32.mrf.mxu0  ;;  %v3324_v52 = vpop.f32.mrf.mxu1 }
 0x4bb   : > { %6164 = vst [vmem:[%s8384_s29 + $0x68] sm:$0xff] %v6014_v49   ;;  %6180 = vst [vmem:[%s8384_s29 + $0xe8] sm:$0xff] %v6094_v50   ;;  %v6009_v53 = vpack.c.bf16 %v3196_v51, %v3193_v45  ;;  %v6089_v54 = vpack.c.bf16 %v3324_v52, %v3321_v46 }
 0x4bc   : > { %v6837_v55 = vpop.f32.mrf.mxu0  ;;  %v6869_v56 = vpop.f32.mrf.mxu1 }
 0x4bd   : > { %6163 = vst [vmem:[%s8384_s29 + $0x60] sm:$0xff] %v6009_v53   ;;  %6179 = vst [vmem:[%s8384_s29 + $0xe0] sm:$0xff] %v6089_v54  }
 0x4be   : > { %v3209_v57 = vpop.f32.mrf.mxu0  ;;  %v3337_v58 = vpop.f32.mrf.mxu1 }
 0x4c0   : > { %v6838_v11 = vpop.f32.mrf.mxu0  ;;  %v6870_v59 = vpop.f32.mrf.mxu1 }
 0x4c1   : > { %v6024_v60 = vpack.c.bf16 %v6838_v11, %v6837_v55  ;;  %v6104_v61 = vpack.c.bf16 %v6870_v59, %v6869_v56 }
 0x4c2   : > { %v3212_v62 = vpop.f32.mrf.mxu0  ;;  %v3340_v63 = vpop.f32.mrf.mxu1 }
 0x4c3   : > { %6166 = vst [vmem:[%s8384_s29 + $0x78] sm:$0xff] %v6024_v60   ;;  %6182 = vst [vmem:[%s8384_s29 + $0xf8] sm:$0xff] %v6104_v61   ;;  %v6019_v0 = vpack.c.bf16 %v3212_v62, %v3209_v57  ;;  %v6099_v1 = vpack.c.bf16 %v3340_v63, %v3337_v58 }
 0x4c5   : > { %6165 = vst [vmem:[%s8384_s29 + $0x70] sm:$0xff] %v6019_v0   ;;  %6181 = vst [vmem:[%s8384_s29 + $0xf0] sm:$0xff] %v6099_v1  }
 0x4c6 PF: > { %s8889_s7 = sld [smem:[#allocation27_spill]] }
 0x4cc   : > { %p5438_p6 = scmp.ne.s32.totalorder %s8889_s7, 0 }
 0x4ce   : > { %3677 = sbr.rel (%p5438_p6) target bundleno = 1252 (0x4e4), region = 96 }
 0x4d3   : > { %v7786_v2 = vmov 0.0  }
 0x4d4   : > { %3678 = vst [vmem:[%s8113_s19] sm:$0xff] %v7786_v2  ;;  %3679 = vst [vmem:[%s8113_s19 + $0x8] sm:$0xff] %v7786_v2 }
 0x4d5   : > { %3680 = vst [vmem:[%s8113_s19 + $0x10] sm:$0xff] %v7786_v2  ;;  %3681 = vst [vmem:[%s8113_s19 + $0x18] sm:$0xff] %v7786_v2 }
 0x4d6   : > { %3682 = vst [vmem:[%s8113_s19 + $0x20] sm:$0xff] %v7786_v2  ;;  %3683 = vst [vmem:[%s8113_s19 + $0x28] sm:$0xff] %v7786_v2 }
 0x4d7   : > { %3684 = vst [vmem:[%s8113_s19 + $0x30] sm:$0xff] %v7786_v2  ;;  %3685 = vst [vmem:[%s8113_s19 + $0x38] sm:$0xff] %v7786_v2 }
 0x4d8   : > { %3686 = vst [vmem:[%s8113_s19 + $0x40] sm:$0xff] %v7786_v2  ;;  %3687 = vst [vmem:[%s8113_s19 + $0x48] sm:$0xff] %v7786_v2 }
 0x4d9   : > { %3688 = vst [vmem:[%s8113_s19 + $0x50] sm:$0xff] %v7786_v2  ;;  %3689 = vst [vmem:[%s8113_s19 + $0x58] sm:$0xff] %v7786_v2 }
 0x4da   : > { %3690 = vst [vmem:[%s8113_s19 + $0x60] sm:$0xff] %v7786_v2  ;;  %3691 = vst [vmem:[%s8113_s19 + $0x68] sm:$0xff] %v7786_v2 }
 0x4db   : > { %3692 = vst [vmem:[%s8113_s19 + $0x70] sm:$0xff] %v7786_v2  ;;  %3693 = vst [vmem:[%s8113_s19 + $0x78] sm:$0xff] %v7786_v2 }
 0x4dc   : > { %3694 = vst [vmem:[%s8113_s19 + $0x80] sm:$0xff] %v7786_v2  ;;  %3695 = vst [vmem:[%s8113_s19 + $0x88] sm:$0xff] %v7786_v2 }
 0x4dd   : > { %3696 = vst [vmem:[%s8113_s19 + $0x90] sm:$0xff] %v7786_v2  ;;  %3697 = vst [vmem:[%s8113_s19 + $0x98] sm:$0xff] %v7786_v2 }
 0x4de   : > { %3698 = vst [vmem:[%s8113_s19 + $0xa0] sm:$0xff] %v7786_v2  ;;  %3699 = vst [vmem:[%s8113_s19 + $0xa8] sm:$0xff] %v7786_v2 }
 0x4df   : > { %3700 = vst [vmem:[%s8113_s19 + $0xb0] sm:$0xff] %v7786_v2  ;;  %3701 = vst [vmem:[%s8113_s19 + $0xb8] sm:$0xff] %v7786_v2 }
 0x4e0   : > { %3702 = vst [vmem:[%s8113_s19 + $0xc0] sm:$0xff] %v7786_v2  ;;  %3703 = vst [vmem:[%s8113_s19 + $0xc8] sm:$0xff] %v7786_v2 }
 0x4e1   : > { %3704 = vst [vmem:[%s8113_s19 + $0xd0] sm:$0xff] %v7786_v2  ;;  %3705 = vst [vmem:[%s8113_s19 + $0xd8] sm:$0xff] %v7786_v2 }
 0x4e2   : > { %3706 = vst [vmem:[%s8113_s19 + $0xe0] sm:$0xff] %v7786_v2  ;;  %3707 = vst [vmem:[%s8113_s19 + $0xe8] sm:$0xff] %v7786_v2 }
 0x4e3   : > { %3708 = vst [vmem:[%s8113_s19 + $0xf0] sm:$0xff] %v7786_v2  ;;  %3709 = vst [vmem:[%s8113_s19 + $0xf8] sm:$0xff] %v7786_v2 }
 0x4e4 PF: > { %s3806_s30 = sshra.s32 %s8109_s0, 3  ;;  %v7342_v3 = vld [vmem:[%s8081_s15 + $0x4] ss:$16 sps:$4 sm:$0xff]   ;;  %v7345_v4 = vld [vmem:[%s8081_s15 + $0xc] ss:$16 sps:$4 sm:$0xff]  }
 0x4e5   : > { %s5439_s8 = sshll.u32 %s3806_s30, 2  ;;  %4418 = vmatprep.mubr.bf16.mxu0 %v7342_v3  ;;  %4579 = vmatprep.mubr.bf16.mxu1 %v7345_v4  ;;  %v7340_v36 = vld [vmem:[%s8081_s15] ss:$16 sps:$4 sm:$0xff]   ;;  %v7343_v38 = vld [vmem:[%s8081_s15 + $0x8] ss:$16 sps:$4 sm:$0xff]  }
 0x4e6   : > { %s8454_s24 = scalar_lea.vmem [#allocation4], %s5439_s8  ;;  %v7346_v40 = vld [vmem:[%s8081_s15 + $0x24] ss:$16 sps:$4 sm:$0xff]   ;;  %v7348_v41 = vld [vmem:[%s8081_s15 + $0x2c] ss:$16 sps:$4 sm:$0xff]  }
 0x4e7   : > { %v7308_v5 = vld [vmem:[%s8454_s24 + $0x78] sm:$0xff]   ;;  %v7312_v9 = vld [vmem:[%s8454_s24 + $0x70] sm:$0xff]   ;;  %v7316_v14 = vld [vmem:[%s8454_s24 + $0x68] sm:$0xff]  }
 0x4e8   : > { %v7309_v6 = vld [vmem:[%s8454_s24 + $0xf8] sm:$0xff]   ;;  %6487 = vmatprep.subr.bf16.mxu0 %v7308_v5  ;;  %v7313_v10 = vld [vmem:[%s8454_s24 + $0xf0] sm:$0xff]   ;;  %v7317_v15 = vld [vmem:[%s8454_s24 + $0xe8] sm:$0xff]  }
 0x4e9   : > { %v7310_v7 = vld [vmem:[%s8454_s24 + $0x38] sm:$0xff]   ;;  %6599 = vmatprep.subr.bf16.mxu1 %v7309_v6  ;;  %v7314_v12 = vld [vmem:[%s8454_s24 + $0x30] sm:$0xff]   ;;  %v7318_v16 = vld [vmem:[%s8454_s24 + $0x28] sm:$0xff]  }
 0x4ea   : > { %v7311_v8 = vld [vmem:[%s8454_s24 + $0xb8] sm:$0xff]   ;;  %6488 = vmatpush3.bf16.msra.mxu0 %v7310_v7  ;;  %v7315_v13 = vld [vmem:[%s8454_s24 + $0xb0] sm:$0xff]   ;;  %v7319_v17 = vld [vmem:[%s8454_s24 + $0xa8] sm:$0xff]  }
 0x4eb   : > { %6600 = vmatpush3.bf16.msra.mxu1 %v7311_v8  ;;  %6489 = vmatprep.subr.bf16.mxu0 %v7312_v9  ;;  %v7320_v18 = vld [vmem:[%s8454_s24 + $0x60] sm:$0xff]   ;;  %v7324_v22 = vld [vmem:[%s8454_s24 + $0x58] sm:$0xff]   ;;  %v7328_v26 = vld [vmem:[%s8454_s24 + $0x50] sm:$0xff]  }
 0x4ec   : > { %6601 = vmatprep.subr.bf16.mxu1 %v7313_v10  ;;  %v7321_v19 = vld [vmem:[%s8454_s24 + $0xe0] sm:$0xff]   ;;  %v7325_v23 = vld [vmem:[%s8454_s24 + $0xd8] sm:$0xff]   ;;  %v7329_v27 = vld [vmem:[%s8454_s24 + $0xd0] sm:$0xff]  }
 0x4ed   : > { %v7322_v20 = vld [vmem:[%s8454_s24 + $0x20] sm:$0xff]   ;;  %v7326_v24 = vld [vmem:[%s8454_s24 + $0x18] sm:$0xff]   ;;  %v7330_v28 = vld [vmem:[%s8454_s24 + $0x10] sm:$0xff]  }
 0x4ee   : > { %6490 = vmatpush3.bf16.msra.mxu0 %v7314_v12  ;;  %v7323_v21 = vld [vmem:[%s8454_s24 + $0xa0] sm:$0xff]   ;;  %v7327_v25 = vld [vmem:[%s8454_s24 + $0x98] sm:$0xff]   ;;  %v7331_v29 = vld [vmem:[%s8454_s24 + $0x90] sm:$0xff]  }
 0x4ef   : > { %6602 = vmatpush3.bf16.msra.mxu1 %v7315_v13  ;;  %6491 = vmatprep.subr.bf16.mxu0 %v7316_v14  ;;  %v7332_v30 = vld [vmem:[%s8454_s24 + $0x48] sm:$0xff]   ;;  %v7336_v34 = vld [vmem:[%s8454_s24 + $0x40] sm:$0xff]  }
 0x4f0   : > { %6603 = vmatprep.subr.bf16.mxu1 %v7317_v15  ;;  %v7333_v31 = vld [vmem:[%s8454_s24 + $0xc8] sm:$0xff]   ;;  %v7337_v35 = vld [vmem:[%s8454_s24 + $0xc0] sm:$0xff]  }
 0x4f1   : > { %v7334_v32 = vld [vmem:[%s8454_s24 + $0x8] sm:$0xff]   ;;  %v7338_v37 = vld [vmem:[%s8454_s24] sm:$0xff]  }
 0x4f2   : > { %6492 = vmatpush3.bf16.msra.mxu0 %v7318_v16  ;;  %v7335_v33 = vld [vmem:[%s8454_s24 + $0x88] sm:$0xff]   ;;  %v7339_v39 = vld [vmem:[%s8454_s24 + $0x80] sm:$0xff]  }
 0x4f3   : > { %6604 = vmatpush3.bf16.msra.mxu1 %v7319_v17  ;;  %6493 = vmatprep.subr.bf16.mxu0 %v7320_v18  ;;  %v7350_v42 = vld [vmem:[%s8081_s15 + $0x20] ss:$16 sps:$4 sm:$0xff]   ;;  %v7351_v43 = vld [vmem:[%s8081_s15 + $0x28] ss:$16 sps:$4 sm:$0xff]   ;;  %v7352_v44 = vld [vmem:[%s8081_s15 + $0x44] ss:$16 sps:$4 sm:$0xff]  }
 0x4f4   : > { %6605 = vmatprep.subr.bf16.mxu1 %v7321_v19  ;;  %v7354_v45 = vld [vmem:[%s8081_s15 + $0x4c] ss:$16 sps:$4 sm:$0xff]   ;;  %v7356_v46 = vld [vmem:[%s8081_s15 + $0x40] ss:$16 sps:$4 sm:$0xff]   ;;  %v7357_v47 = vld [vmem:[%s8081_s15 + $0x48] ss:$16 sps:$4 sm:$0xff]  }
 0x4f5   : > { %v7358_v48 = vld [vmem:[%s8081_s15 + $0x64] ss:$16 sps:$4 sm:$0xff]   ;;  %v7360_v49 = vld [vmem:[%s8081_s15 + $0x6c] ss:$16 sps:$4 sm:$0xff]   ;;  %v7362_v50 = vld [vmem:[%s8081_s15 + $0x60] ss:$16 sps:$4 sm:$0xff]  }
 0x4f6   : > { %6494 = vmatpush3.bf16.msra.mxu0 %v7322_v20  ;;  %v7363_v51 = vld [vmem:[%s8081_s15 + $0x68] ss:$16 sps:$4 sm:$0xff]   ;;  %v7364_v52 = vld [vmem:[%s8081_s15 + $0x84] ss:$16 sps:$4 sm:$0xff]   ;;  %v7366_v53 = vld [vmem:[%s8081_s15 + $0x8c] ss:$16 sps:$4 sm:$0xff]  }
 0x4f7   : > { %6606 = vmatpush3.bf16.msra.mxu1 %v7323_v21  ;;  %6495 = vmatprep.subr.bf16.mxu0 %v7324_v22  ;;  %v7368_v54 = vld [vmem:[%s8081_s15 + $0x80] ss:$16 sps:$4 sm:$0xff]   ;;  %v7369_v55 = vld [vmem:[%s8081_s15 + $0x88] ss:$16 sps:$4 sm:$0xff]   ;;  %v7370_v56 = vld [vmem:[%s8081_s15 + $0xa4] ss:$16 sps:$4 sm:$0xff]  }
 0x4f8   : > { %6607 = vmatprep.subr.bf16.mxu1 %v7325_v23  ;;  %v7372_v57 = vld [vmem:[%s8081_s15 + $0xac] ss:$16 sps:$4 sm:$0xff]   ;;  %v7374_v58 = vld [vmem:[%s8081_s15 + $0xa0] ss:$16 sps:$4 sm:$0xff]   ;;  %v7375_v11 = vld [vmem:[%s8081_s15 + $0xa8] ss:$16 sps:$4 sm:$0xff]  }
 0x4f9   : > { %v7376_v59 = vld [vmem:[%s8081_s15 + $0xc4] ss:$16 sps:$4 sm:$0xff]   ;;  %v7378_v60 = vld [vmem:[%s8081_s15 + $0xcc] ss:$16 sps:$4 sm:$0xff]   ;;  %v7380_v61 = vld [vmem:[%s8081_s15 + $0xc0] ss:$16 sps:$4 sm:$0xff]  }
 0x4fa   : > { %6496 = vmatpush3.bf16.msra.mxu0 %v7326_v24  ;;  %v7381_v62 = vld [vmem:[%s8081_s15 + $0xc8] ss:$16 sps:$4 sm:$0xff]   ;;  %v7382_v63 = vld [vmem:[%s8081_s15 + $0xe4] ss:$16 sps:$4 sm:$0xff]   ;;  %v7384_v0 = vld [vmem:[%s8081_s15 + $0xec] ss:$16 sps:$4 sm:$0xff]  }
 0x4fb   : > { %6608 = vmatpush3.bf16.msra.mxu1 %v7327_v25  ;;  %6497 = vmatprep.subr.bf16.mxu0 %v7328_v26  ;;  %v7386_v1 = vld [vmem:[%s8081_s15 + $0xe0] ss:$16 sps:$4 sm:$0xff]   ;;  %v7387_v2 = vld [vmem:[%s8081_s15 + $0xe8] ss:$16 sps:$4 sm:$0xff]   ;;  %v7388_v3 = vld [vmem:[%s8081_s15 + $0x104] ss:$16 sps:$4 sm:$0xff]  }
 0x4fc   : > { %6609 = vmatprep.subr.bf16.mxu1 %v7329_v27  ;;  %v7390_v4 = vld [vmem:[%s8081_s15 + $0x10c] ss:$16 sps:$4 sm:$0xff]   ;;  %v7392_v5 = vld [vmem:[%s8081_s15 + $0x100] ss:$16 sps:$4 sm:$0xff]   ;;  %v7393_v6 = vld [vmem:[%s8081_s15 + $0x108] ss:$16 sps:$4 sm:$0xff]  }
 0x4fd   : > { %v7394_v7 = vld [vmem:[%s8081_s15 + $0x124] ss:$16 sps:$4 sm:$0xff]   ;;  %v7396_v8 = vld [vmem:[%s8081_s15 + $0x12c] ss:$16 sps:$4 sm:$0xff]   ;;  %v7398_v9 = vld [vmem:[%s8081_s15 + $0x120] ss:$16 sps:$4 sm:$0xff]  }
 0x4fe   : > { %6498 = vmatpush3.bf16.msra.mxu0 %v7330_v28  ;;  %v7399_v10 = vld [vmem:[%s8081_s15 + $0x128] ss:$16 sps:$4 sm:$0xff]   ;;  %v7400_v12 = vld [vmem:[%s8081_s15 + $0x144] ss:$16 sps:$4 sm:$0xff]   ;;  %v7402_v13 = vld [vmem:[%s8081_s15 + $0x14c] ss:$16 sps:$4 sm:$0xff]  }
 0x4ff   : > { %6610 = vmatpush3.bf16.msra.mxu1 %v7331_v29  ;;  %6499 = vmatprep.subr.bf16.mxu0 %v7332_v30  ;;  %v7404_v14 = vld [vmem:[%s8081_s15 + $0x140] ss:$16 sps:$4 sm:$0xff]   ;;  %v7405_v15 = vld [vmem:[%s8081_s15 + $0x148] ss:$16 sps:$4 sm:$0xff]   ;;  %v7406_v16 = vld [vmem:[%s8081_s15 + $0x164] ss:$16 sps:$4 sm:$0xff]  }
 0x500   : > { %6611 = vmatprep.subr.bf16.mxu1 %v7333_v31  ;;  %v7408_v17 = vld [vmem:[%s8081_s15 + $0x16c] ss:$16 sps:$4 sm:$0xff]   ;;  %v7410_v18 = vld [vmem:[%s8081_s15 + $0x160] ss:$16 sps:$4 sm:$0xff]   ;;  %v7411_v19 = vld [vmem:[%s8081_s15 + $0x168] ss:$16 sps:$4 sm:$0xff]  }
 0x501   : > { %v7412_v20 = vld [vmem:[%s8081_s15 + $0x184] ss:$16 sps:$4 sm:$0xff]   ;;  %v7414_v21 = vld [vmem:[%s8081_s15 + $0x18c] ss:$16 sps:$4 sm:$0xff]   ;;  %v7416_v22 = vld [vmem:[%s8081_s15 + $0x180] ss:$16 sps:$4 sm:$0xff]  }
 0x502   : > { %6500 = vmatpush3.bf16.msra.mxu0 %v7334_v32  ;;  %v7417_v23 = vld [vmem:[%s8081_s15 + $0x188] ss:$16 sps:$4 sm:$0xff]   ;;  %v7418_v24 = vld [vmem:[%s8081_s15 + $0x1a4] ss:$16 sps:$4 sm:$0xff]   ;;  %v7420_v25 = vld [vmem:[%s8081_s15 + $0x1ac] ss:$16 sps:$4 sm:$0xff]  }
 0x503   : > { %6612 = vmatpush3.bf16.msra.mxu1 %v7335_v33  ;;  %6501 = vmatprep.subr.bf16.mxu0 %v7336_v34  ;;  %v7422_v26 = vld [vmem:[%s8081_s15 + $0x1a0] ss:$16 sps:$4 sm:$0xff]   ;;  %v7423_v27 = vld [vmem:[%s8081_s15 + $0x1a8] ss:$16 sps:$4 sm:$0xff]   ;;  %v7424_v28 = vld [vmem:[%s8081_s15 + $0x1c4] ss:$16 sps:$4 sm:$0xff]  }
 0x504   : > { %6613 = vmatprep.subr.bf16.mxu1 %v7337_v35  ;;  %v7426_v29 = vld [vmem:[%s8081_s15 + $0x1cc] ss:$16 sps:$4 sm:$0xff]   ;;  %v7428_v30 = vld [vmem:[%s8081_s15 + $0x1c0] ss:$16 sps:$4 sm:$0xff]   ;;  %v7429_v31 = vld [vmem:[%s8081_s15 + $0x1c8] ss:$16 sps:$4 sm:$0xff]  }
 0x505   : > { %v7430_v32 = vld [vmem:[%s8081_s15 + $0x1e4] ss:$16 sps:$4 sm:$0xff]   ;;  %v7432_v33 = vld [vmem:[%s8081_s15 + $0x1ec] ss:$16 sps:$4 sm:$0xff]   ;;  %v7434_v34 = vld [vmem:[%s8081_s15 + $0x1e0] ss:$16 sps:$4 sm:$0xff]  }
 0x506   : > { %6502 = vmatpush3.bf16.msra.mxu0 %v7338_v37  ;;  %v7435_v35 = vld [vmem:[%s8081_s15 + $0x1e8] ss:$16 sps:$4 sm:$0xff]   ;;  %s8890_s15 = sld [smem:[#allocation27_spill]] }
 0x507   : > { %6614 = vmatpush3.bf16.msra.mxu1 %v7339_v39 }
 0x509   : > { %4419 = vmatmul.mubr.bf16.vlgmr.msra.gmra.mxu0 %v7340_v36 }
 0x50a   : > { %4580 = vmatmul.mubr.bf16.vlgmr.msra.gmra.mxu1 %v7343_v38  ;;  %4426 = vmatprep.mubr.bf16.mxu0 %v7346_v40 }
 0x50b   : > { %4587 = vmatprep.mubr.bf16.mxu1 %v7348_v41 }
 0x50c   : > { %p5536_p13 = scmp.ne.s32.totalorder %s8890_s15, 1 }
 0x511   : > { %4427 = vmatmul.mubr.bf16.gmra.mxu0 %v7350_v42 }
 0x512   : > { %4588 = vmatmul.mubr.bf16.gmra.mxu1 %v7351_v43  ;;  %4434 = vmatprep.mubr.bf16.mxu0 %v7352_v44  ;;  %v3710_v43 = vld [vmem:[%s8113_s19] sm:$0xff] }
 0x513   : > { %4595 = vmatprep.mubr.bf16.mxu1 %v7354_v45 }
 0x519   : > { %4435 = vmatmul.mubr.bf16.gmra.mxu0 %v7356_v46 }
 0x51a   : > { %4596 = vmatmul.mubr.bf16.gmra.mxu1 %v7357_v47  ;;  %4442 = vmatprep.mubr.bf16.mxu0 %v7358_v48 }
 0x51b   : > { %4603 = vmatprep.mubr.bf16.mxu1 %v7360_v49 }
 0x521   : > { %4443 = vmatmul.mubr.bf16.gmra.mxu0 %v7362_v50 }
 0x522   : > { %4604 = vmatmul.mubr.bf16.gmra.mxu1 %v7363_v51  ;;  %4450 = vmatprep.mubr.bf16.mxu0 %v7364_v52  ;;  %v3711_v52 = vld [vmem:[%s8113_s19 + $0x8] sm:$0xff] }
 0x523   : > { %4611 = vmatprep.mubr.bf16.mxu1 %v7366_v53 }
 0x529   : > { %4451 = vmatmul.mubr.bf16.gmra.mxu0 %v7368_v54 }
 0x52a   : > { %4612 = vmatmul.mubr.bf16.gmra.mxu1 %v7369_v55  ;;  %4458 = vmatprep.mubr.bf16.mxu0 %v7370_v56 }
 0x52b   : > { %4619 = vmatprep.mubr.bf16.mxu1 %v7372_v57 }
 0x531   : > { %4459 = vmatmul.mubr.bf16.gmra.mxu0 %v7374_v58 }
 0x532   : > { %4620 = vmatmul.mubr.bf16.gmra.mxu1 %v7375_v11  ;;  %4466 = vmatprep.mubr.bf16.mxu0 %v7376_v59 }
 0x533   : > { %4627 = vmatprep.mubr.bf16.mxu1 %v7378_v60  ;;  %v3712_v60 = vld [vmem:[%s8113_s19 + $0x10] sm:$0xff] }
 0x539   : > { %4467 = vmatmul.mubr.bf16.gmra.mxu0 %v7380_v61 }
 0x53a   : > { %4628 = vmatmul.mubr.bf16.gmra.mxu1 %v7381_v62  ;;  %4474 = vmatprep.mubr.bf16.mxu0 %v7382_v63 }
 0x53b   : > { %4635 = vmatprep.mubr.bf16.mxu1 %v7384_v0 }
 0x541   : > { %4475 = vmatmul.mubr.bf16.gmra.mxu0 %v7386_v1 }
 0x542   : > { %4636 = vmatmul.mubr.bf16.gmra.mxu1 %v7387_v2  ;;  %4482 = vmatprep.mubr.bf16.mxu0 %v7388_v3 }
 0x543   : > { %4643 = vmatprep.mubr.bf16.mxu1 %v7390_v4 }
 0x549   : > { %4483 = vmatmul.mubr.bf16.gmra.mxu0 %v7392_v5  ;;  %v3713_v5 = vld [vmem:[%s8113_s19 + $0x18] sm:$0xff] }
 0x54a   : > { %4644 = vmatmul.mubr.bf16.gmra.mxu1 %v7393_v6  ;;  %4490 = vmatprep.mubr.bf16.mxu0 %v7394_v7 }
 0x54b   : > { %4651 = vmatprep.mubr.bf16.mxu1 %v7396_v8 }
 0x551   : > { %4491 = vmatmul.mubr.bf16.gmra.mxu0 %v7398_v9 }
 0x552   : > { %4652 = vmatmul.mubr.bf16.gmra.mxu1 %v7399_v10  ;;  %4498 = vmatprep.mubr.bf16.mxu0 %v7400_v12 }
 0x553   : > { %4659 = vmatprep.mubr.bf16.mxu1 %v7402_v13 }
 0x559   : > { %4499 = vmatmul.mubr.bf16.gmra.mxu0 %v7404_v14 }
 0x55a   : > { %4660 = vmatmul.mubr.bf16.gmra.mxu1 %v7405_v15  ;;  %4506 = vmatprep.mubr.bf16.mxu0 %v7406_v16  ;;  %v3714_v15 = vld [vmem:[%s8113_s19 + $0x20] sm:$0xff] }
 0x55b   : > { %4667 = vmatprep.mubr.bf16.mxu1 %v7408_v17 }
 0x561   : > { %4507 = vmatmul.mubr.bf16.gmra.mxu0 %v7410_v18 }
 0x562   : > { %4668 = vmatmul.mubr.bf16.gmra.mxu1 %v7411_v19  ;;  %4514 = vmatprep.mubr.bf16.mxu0 %v7412_v20 }
 0x563   : > { %4675 = vmatprep.mubr.bf16.mxu1 %v7414_v21 }
 0x569   : > { %4515 = vmatmul.mubr.bf16.gmra.mxu0 %v7416_v22 }
 0x56a   : > { %4676 = vmatmul.mubr.bf16.gmra.mxu1 %v7417_v23  ;;  %4522 = vmatprep.mubr.bf16.mxu0 %v7418_v24  ;;  %v3715_v24 = vld [vmem:[%s8113_s19 + $0x28] sm:$0xff] }
 0x56b   : > { %4683 = vmatprep.mubr.bf16.mxu1 %v7420_v25 }
 0x571   : > { %4523 = vmatmul.mubr.bf16.gmra.mxu0 %v7422_v26 }
 0x572   : > { %4684 = vmatmul.mubr.bf16.gmra.mxu1 %v7423_v27  ;;  %4530 = vmatprep.mubr.bf16.mxu0 %v7424_v28 }
 0x573   : > { %4691 = vmatprep.mubr.bf16.mxu1 %v7426_v29 }
 0x579   : > { %4531 = vmatmul.mubr.bf16.gmra.mxu0 %v7428_v30 }
 0x57a   : > { %4692 = vmatmul.mubr.bf16.gmra.mxu1 %v7429_v31  ;;  %4538 = vmatprep.mubr.bf16.mxu0 %v7430_v32 }
 0x57b   : > { %4699 = vmatprep.mubr.bf16.mxu1 %v7432_v33  ;;  %v3716_v33 = vld [vmem:[%s8113_s19 + $0x30] sm:$0xff] }
 0x581   : > { %4539 = vmatmul.mubr.bf16.gmra.mxu0 %v7434_v34 }
 0x582   : > { %4700 = vmatmul.mubr.bf16.gmra.mxu1 %v7435_v35 }
 0x5c9   : > { %v6503_v36 = vpop.f32.mrf.mxu0 }
 0x5ca   : > { %v6615_v37 = vpop.f32.mrf.mxu1 }
 0x5cb   : > { %v6504_v38 = vpop.f32.mrf.mxu0 }
 0x5cc   : > { %v6505_v39 = vadd.f32 %v6504_v38, %v6503_v36  ;;  %v6616_v40 = vpop.f32.mrf.mxu1 }
 0x5cd   : > { %v6617_v41 = vadd.f32 %v6616_v40, %v6615_v37  ;;  %v6506_v42 = vpop.f32.mrf.mxu0 }
 0x5ce   : > { %v6618_v44 = vpop.f32.mrf.mxu1 }
 0x5cf   : > { %v4582_v45 = vadd.f32 %v6617_v41, %v6505_v39  ;;  %v6507_v46 = vpop.f32.mrf.mxu0 }
 0x5d0   : > { %v6508_v47 = vadd.f32 %v6507_v46, %v6506_v42  ;;  %v6619_v48 = vpop.f32.mrf.mxu1  ;;  %v3717_v42 = vld [vmem:[%s8113_s19 + $0x38] sm:$0xff] }
 0x5d1   : > { %v4708_v49 = vadd.f32 %v4582_v45, %v3710_v43  ;;  %v6620_v50 = vadd.f32 %v6619_v48, %v6618_v44  ;;  %v6509_v51 = vpop.f32.mrf.mxu0 }
 0x5d2   : > { %v6621_v53 = vpop.f32.mrf.mxu1 }
 0x5d3   : > { %4740 = vst [vmem:[%s8113_s19] sm:$0xff] %v4708_v49  ;;  %v4585_v54 = vadd.f32 %v6620_v50, %v6508_v47  ;;  %v6510_v55 = vpop.f32.mrf.mxu0 }
 0x5d4   : > { %v6511_v56 = vadd.f32 %v6510_v55, %v6509_v51  ;;  %v6622_v57 = vpop.f32.mrf.mxu1  ;;  %v3718_v51 = vld [vmem:[%s8113_s19 + $0x40] sm:$0xff] }
 0x5d5   : > { %v4709_v58 = vadd.f32 %v4585_v54, %v3711_v52  ;;  %v6623_v11 = vadd.f32 %v6622_v57, %v6621_v53  ;;  %v6512_v59 = vpop.f32.mrf.mxu0 }
 0x5d6   : > { %v6624_v61 = vpop.f32.mrf.mxu1 }
 0x5d7   : > { %4741 = vst [vmem:[%s8113_s19 + $0x8] sm:$0xff] %v4709_v58  ;;  %v4590_v62 = vadd.f32 %v6623_v11, %v6511_v56  ;;  %v6513_v63 = vpop.f32.mrf.mxu0 }
 0x5d8   : > { %v6514_v0 = vadd.f32 %v6513_v63, %v6512_v59  ;;  %v6625_v1 = vpop.f32.mrf.mxu1  ;;  %v3719_v59 = vld [vmem:[%s8113_s19 + $0x48] sm:$0xff] }
 0x5d9   : > { %v4710_v2 = vadd.f32 %v4590_v62, %v3712_v60  ;;  %v6626_v3 = vadd.f32 %v6625_v1, %v6624_v61  ;;  %v6515_v4 = vpop.f32.mrf.mxu0 }
 0x5da   : > { %v6627_v6 = vpop.f32.mrf.mxu1 }
 0x5db   : > { %4742 = vst [vmem:[%s8113_s19 + $0x10] sm:$0xff] %v4710_v2  ;;  %v4593_v7 = vadd.f32 %v6626_v3, %v6514_v0  ;;  %v6516_v8 = vpop.f32.mrf.mxu0 }
 0x5dc   : > { %v6517_v9 = vadd.f32 %v6516_v8, %v6515_v4  ;;  %v6628_v10 = vpop.f32.mrf.mxu1  ;;  %v3720_v4 = vld [vmem:[%s8113_s19 + $0x50] sm:$0xff] }
 0x5dd   : > { %v4711_v12 = vadd.f32 %v4593_v7, %v3713_v5  ;;  %v6629_v13 = vadd.f32 %v6628_v10, %v6627_v6  ;;  %v6518_v14 = vpop.f32.mrf.mxu0 }
 0x5de   : > { %v6630_v16 = vpop.f32.mrf.mxu1 }
 0x5df   : > { %4743 = vst [vmem:[%s8113_s19 + $0x18] sm:$0xff] %v4711_v12  ;;  %v4598_v17 = vadd.f32 %v6629_v13, %v6517_v9  ;;  %v6519_v18 = vpop.f32.mrf.mxu0 }
 0x5e0   : > { %v6520_v19 = vadd.f32 %v6519_v18, %v6518_v14  ;;  %v6631_v20 = vpop.f32.mrf.mxu1  ;;  %v3721_v14 = vld [vmem:[%s8113_s19 + $0x58] sm:$0xff] }
 0x5e1   : > { %v4712_v21 = vadd.f32 %v4598_v17, %v3714_v15  ;;  %v6632_v22 = vadd.f32 %v6631_v20, %v6630_v16  ;;  %v6521_v23 = vpop.f32.mrf.mxu0 }
 0x5e2   : > { %v6633_v25 = vpop.f32.mrf.mxu1 }
 0x5e3   : > { %4744 = vst [vmem:[%s8113_s19 + $0x20] sm:$0xff] %v4712_v21  ;;  %v4601_v26 = vadd.f32 %v6632_v22, %v6520_v19  ;;  %v6522_v27 = vpop.f32.mrf.mxu0 }
 0x5e4   : > { %v6523_v28 = vadd.f32 %v6522_v27, %v6521_v23  ;;  %v6634_v29 = vpop.f32.mrf.mxu1  ;;  %v3722_v23 = vld [vmem:[%s8113_s19 + $0x60] sm:$0xff] }
 0x5e5   : > { %v4713_v30 = vadd.f32 %v4601_v26, %v3715_v24  ;;  %v6635_v31 = vadd.f32 %v6634_v29, %v6633_v25  ;;  %v6524_v32 = vpop.f32.mrf.mxu0 }
 0x5e6   : > { %v6636_v34 = vpop.f32.mrf.mxu1 }
 0x5e7   : > { %4745 = vst [vmem:[%s8113_s19 + $0x28] sm:$0xff] %v4713_v30  ;;  %v4606_v35 = vadd.f32 %v6635_v31, %v6523_v28  ;;  %v6525_v36 = vpop.f32.mrf.mxu0 }
 0x5e8   : > { %v6526_v37 = vadd.f32 %v6525_v36, %v6524_v32  ;;  %v6637_v38 = vpop.f32.mrf.mxu1  ;;  %v3723_v32 = vld [vmem:[%s8113_s19 + $0x68] sm:$0xff] }
 0x5e9   : > { %v4714_v39 = vadd.f32 %v4606_v35, %v3716_v33  ;;  %v6638_v40 = vadd.f32 %v6637_v38, %v6636_v34  ;;  %v6527_v41 = vpop.f32.mrf.mxu0 }
 0x5ea   : > { %v6639_v43 = vpop.f32.mrf.mxu1 }
 0x5eb   : > { %4746 = vst [vmem:[%s8113_s19 + $0x30] sm:$0xff] %v4714_v39  ;;  %v4609_v44 = vadd.f32 %v6638_v40, %v6526_v37  ;;  %v6528_v45 = vpop.f32.mrf.mxu0 }
 0x5ec   : > { %v6529_v46 = vadd.f32 %v6528_v45, %v6527_v41  ;;  %v6640_v47 = vpop.f32.mrf.mxu1  ;;  %v3724_v41 = vld [vmem:[%s8113_s19 + $0x70] sm:$0xff] }
 0x5ed   : > { %v4715_v48 = vadd.f32 %v4609_v44, %v3717_v42  ;;  %v6641_v49 = vadd.f32 %v6640_v47, %v6639_v43  ;;  %v6530_v50 = vpop.f32.mrf.mxu0 }
 0x5ee   : > { %v6642_v52 = vpop.f32.mrf.mxu1 }
 0x5ef   : > { %4747 = vst [vmem:[%s8113_s19 + $0x38] sm:$0xff] %v4715_v48  ;;  %v4614_v53 = vadd.f32 %v6641_v49, %v6529_v46  ;;  %v6531_v54 = vpop.f32.mrf.mxu0 }
 0x5f0   : > { %v6532_v55 = vadd.f32 %v6531_v54, %v6530_v50  ;;  %v6643_v56 = vpop.f32.mrf.mxu1  ;;  %v3725_v50 = vld [vmem:[%s8113_s19 + $0x78] sm:$0xff] }
 0x5f1   : > { %v4716_v57 = vadd.f32 %v4614_v53, %v3718_v51  ;;  %v6644_v58 = vadd.f32 %v6643_v56, %v6642_v52  ;;  %v6533_v11 = vpop.f32.mrf.mxu0 }
 0x5f2   : > { %v6645_v60 = vpop.f32.mrf.mxu1 }
 0x5f3   : > { %4748 = vst [vmem:[%s8113_s19 + $0x40] sm:$0xff] %v4716_v57  ;;  %v4617_v61 = vadd.f32 %v6644_v58, %v6532_v55  ;;  %v6534_v62 = vpop.f32.mrf.mxu0 }
 0x5f4   : > { %v6535_v63 = vadd.f32 %v6534_v62, %v6533_v11  ;;  %v6646_v0 = vpop.f32.mrf.mxu1  ;;  %v3726_v11 = vld [vmem:[%s8113_s19 + $0x80] sm:$0xff] }
 0x5f5   : > { %v4717_v1 = vadd.f32 %v4617_v61, %v3719_v59  ;;  %v6647_v2 = vadd.f32 %v6646_v0, %v6645_v60  ;;  %v6536_v3 = vpop.f32.mrf.mxu0 }
 0x5f6   : > { %v6648_v5 = vpop.f32.mrf.mxu1 }
 0x5f7   : > { %4749 = vst [vmem:[%s8113_s19 + $0x48] sm:$0xff] %v4717_v1  ;;  %v4622_v6 = vadd.f32 %v6647_v2, %v6535_v63  ;;  %v6537_v7 = vpop.f32.mrf.mxu0 }
 0x5f8   : > { %v6538_v8 = vadd.f32 %v6537_v7, %v6536_v3  ;;  %v6649_v9 = vpop.f32.mrf.mxu1  ;;  %v3727_v3 = vld [vmem:[%s8113_s19 + $0x88] sm:$0xff] }
 0x5f9   : > { %v4718_v10 = vadd.f32 %v4622_v6, %v3720_v4  ;;  %v6650_v12 = vadd.f32 %v6649_v9, %v6648_v5  ;;  %v6539_v13 = vpop.f32.mrf.mxu0 }
 0x5fa   : > { %v6651_v15 = vpop.f32.mrf.mxu1 }
 0x5fb   : > { %4750 = vst [vmem:[%s8113_s19 + $0x50] sm:$0xff] %v4718_v10  ;;  %v4625_v16 = vadd.f32 %v6650_v12, %v6538_v8  ;;  %v6540_v17 = vpop.f32.mrf.mxu0 }
 0x5fc   : > { %v6541_v18 = vadd.f32 %v6540_v17, %v6539_v13  ;;  %v6652_v19 = vpop.f32.mrf.mxu1  ;;  %v3728_v13 = vld [vmem:[%s8113_s19 + $0x90] sm:$0xff] }
 0x5fd   : > { %v4719_v20 = vadd.f32 %v4625_v16, %v3721_v14  ;;  %v6653_v21 = vadd.f32 %v6652_v19, %v6651_v15  ;;  %v6542_v22 = vpop.f32.mrf.mxu0 }
 0x5fe   : > { %v6654_v24 = vpop.f32.mrf.mxu1 }
 0x5ff   : > { %4751 = vst [vmem:[%s8113_s19 + $0x58] sm:$0xff] %v4719_v20  ;;  %v4630_v25 = vadd.f32 %v6653_v21, %v6541_v18  ;;  %v6543_v26 = vpop.f32.mrf.mxu0 }
 0x600   : > { %v6544_v27 = vadd.f32 %v6543_v26, %v6542_v22  ;;  %v6655_v28 = vpop.f32.mrf.mxu1  ;;  %v3729_v22 = vld [vmem:[%s8113_s19 + $0x98] sm:$0xff] }
 0x601   : > { %v4720_v29 = vadd.f32 %v4630_v25, %v3722_v23  ;;  %v6656_v30 = vadd.f32 %v6655_v28, %v6654_v24  ;;  %v6545_v31 = vpop.f32.mrf.mxu0 }
 0x602   : > { %v6657_v33 = vpop.f32.mrf.mxu1 }
 0x603   : > { %4752 = vst [vmem:[%s8113_s19 + $0x60] sm:$0xff] %v4720_v29  ;;  %v4633_v34 = vadd.f32 %v6656_v30, %v6544_v27  ;;  %v6546_v35 = vpop.f32.mrf.mxu0 }
 0x604   : > { %v6547_v36 = vadd.f32 %v6546_v35, %v6545_v31  ;;  %v6658_v37 = vpop.f32.mrf.mxu1  ;;  %v3730_v31 = vld [vmem:[%s8113_s19 + $0xa0] sm:$0xff] }
 0x605   : > { %v4721_v38 = vadd.f32 %v4633_v34, %v3723_v32  ;;  %v6659_v39 = vadd.f32 %v6658_v37, %v6657_v33  ;;  %v6548_v40 = vpop.f32.mrf.mxu0 }
 0x606   : > { %v6660_v42 = vpop.f32.mrf.mxu1 }
 0x607   : > { %4753 = vst [vmem:[%s8113_s19 + $0x68] sm:$0xff] %v4721_v38  ;;  %v4638_v43 = vadd.f32 %v6659_v39, %v6547_v36  ;;  %v6549_v44 = vpop.f32.mrf.mxu0 }
 0x608   : > { %v6550_v45 = vadd.f32 %v6549_v44, %v6548_v40  ;;  %v6661_v46 = vpop.f32.mrf.mxu1  ;;  %v3731_v40 = vld [vmem:[%s8113_s19 + $0xa8] sm:$0xff] }
 0x609   : > { %v4722_v47 = vadd.f32 %v4638_v43, %v3724_v41  ;;  %v6662_v48 = vadd.f32 %v6661_v46, %v6660_v42  ;;  %v6551_v49 = vpop.f32.mrf.mxu0 }
 0x60a   : > { %v6663_v51 = vpop.f32.mrf.mxu1 }
 0x60b   : > { %4754 = vst [vmem:[%s8113_s19 + $0x70] sm:$0xff] %v4722_v47  ;;  %v4641_v52 = vadd.f32 %v6662_v48, %v6550_v45  ;;  %v6552_v53 = vpop.f32.mrf.mxu0 }
 0x60c   : > { %v6553_v54 = vadd.f32 %v6552_v53, %v6551_v49  ;;  %v6664_v55 = vpop.f32.mrf.mxu1  ;;  %v3732_v49 = vld [vmem:[%s8113_s19 + $0xb0] sm:$0xff] }
 0x60d   : > { %v4723_v56 = vadd.f32 %v4641_v52, %v3725_v50  ;;  %v6665_v57 = vadd.f32 %v6664_v55, %v6663_v51  ;;  %v6554_v58 = vpop.f32.mrf.mxu0 }
 0x60e   : > { %v6666_v59 = vpop.f32.mrf.mxu1 }
 0x60f   : > { %4755 = vst [vmem:[%s8113_s19 + $0x78] sm:$0xff] %v4723_v56  ;;  %v4646_v60 = vadd.f32 %v6665_v57, %v6553_v54  ;;  %v6555_v61 = vpop.f32.mrf.mxu0 }
 0x610   : > { %v6556_v62 = vadd.f32 %v6555_v61, %v6554_v58  ;;  %v6667_v63 = vpop.f32.mrf.mxu1  ;;  %v3733_v58 = vld [vmem:[%s8113_s19 + $0xb8] sm:$0xff] }
 0x611   : > { %v4724_v0 = vadd.f32 %v4646_v60, %v3726_v11  ;;  %v6668_v1 = vadd.f32 %v6667_v63, %v6666_v59  ;;  %v6557_v2 = vpop.f32.mrf.mxu0 }
 0x612   : > { %v6669_v4 = vpop.f32.mrf.mxu1 }
 0x613   : > { %4756 = vst [vmem:[%s8113_s19 + $0x80] sm:$0xff] %v4724_v0  ;;  %v4649_v5 = vadd.f32 %v6668_v1, %v6556_v62  ;;  %v6558_v6 = vpop.f32.mrf.mxu0 }
 0x614   : > { %v6559_v7 = vadd.f32 %v6558_v6, %v6557_v2  ;;  %v6670_v8 = vpop.f32.mrf.mxu1  ;;  %v3734_v2 = vld [vmem:[%s8113_s19 + $0xc0] sm:$0xff] }
 0x615   : > { %v4725_v9 = vadd.f32 %v4649_v5, %v3727_v3  ;;  %v6671_v10 = vadd.f32 %v6670_v8, %v6669_v4  ;;  %v6560_v12 = vpop.f32.mrf.mxu0 }
 0x616   : > { %v6672_v14 = vpop.f32.mrf.mxu1 }
 0x617   : > { %4757 = vst [vmem:[%s8113_s19 + $0x88] sm:$0xff] %v4725_v9  ;;  %v4654_v15 = vadd.f32 %v6671_v10, %v6559_v7  ;;  %v6561_v16 = vpop.f32.mrf.mxu0 }
 0x618   : > { %v6562_v17 = vadd.f32 %v6561_v16, %v6560_v12  ;;  %v6673_v18 = vpop.f32.mrf.mxu1  ;;  %v3735_v12 = vld [vmem:[%s8113_s19 + $0xc8] sm:$0xff] }
 0x619   : > { %v4726_v19 = vadd.f32 %v4654_v15, %v3728_v13  ;;  %v6674_v20 = vadd.f32 %v6673_v18, %v6672_v14  ;;  %v6563_v21 = vpop.f32.mrf.mxu0 }
 0x61a   : > { %v6675_v23 = vpop.f32.mrf.mxu1 }
 0x61b   : > { %4758 = vst [vmem:[%s8113_s19 + $0x90] sm:$0xff] %v4726_v19  ;;  %v4657_v24 = vadd.f32 %v6674_v20, %v6562_v17  ;;  %v6564_v25 = vpop.f32.mrf.mxu0 }
 0x61c   : > { %v6565_v26 = vadd.f32 %v6564_v25, %v6563_v21  ;;  %v6676_v27 = vpop.f32.mrf.mxu1  ;;  %v3736_v21 = vld [vmem:[%s8113_s19 + $0xd0] sm:$0xff] }
 0x61d   : > { %v4727_v28 = vadd.f32 %v4657_v24, %v3729_v22  ;;  %v6677_v29 = vadd.f32 %v6676_v27, %v6675_v23  ;;  %v6566_v30 = vpop.f32.mrf.mxu0 }
 0x61e   : > { %v6678_v32 = vpop.f32.mrf.mxu1 }
 0x61f   : > { %4759 = vst [vmem:[%s8113_s19 + $0x98] sm:$0xff] %v4727_v28  ;;  %v4662_v33 = vadd.f32 %v6677_v29, %v6565_v26  ;;  %v6567_v34 = vpop.f32.mrf.mxu0 }
 0x620   : > { %v6568_v35 = vadd.f32 %v6567_v34, %v6566_v30  ;;  %v6679_v36 = vpop.f32.mrf.mxu1  ;;  %v3737_v30 = vld [vmem:[%s8113_s19 + $0xd8] sm:$0xff] }
 0x621   : > { %v4728_v37 = vadd.f32 %v4662_v33, %v3730_v31  ;;  %v6680_v38 = vadd.f32 %v6679_v36, %v6678_v32  ;;  %v6569_v39 = vpop.f32.mrf.mxu0 }
 0x622   : > { %v6681_v41 = vpop.f32.mrf.mxu1 }
 0x623   : > { %4760 = vst [vmem:[%s8113_s19 + $0xa0] sm:$0xff] %v4728_v37  ;;  %v4665_v42 = vadd.f32 %v6680_v38, %v6568_v35  ;;  %v6570_v43 = vpop.f32.mrf.mxu0 }
 0x624   : > { %v6571_v44 = vadd.f32 %v6570_v43, %v6569_v39  ;;  %v6682_v45 = vpop.f32.mrf.mxu1  ;;  %v3738_v39 = vld [vmem:[%s8113_s19 + $0xe0] sm:$0xff] }
 0x625   : > { %v4729_v46 = vadd.f32 %v4665_v42, %v3731_v40  ;;  %v6683_v47 = vadd.f32 %v6682_v45, %v6681_v41  ;;  %v6572_v48 = vpop.f32.mrf.mxu0 }
 0x626   : > { %v6684_v50 = vpop.f32.mrf.mxu1 }
 0x627   : > { %4761 = vst [vmem:[%s8113_s19 + $0xa8] sm:$0xff] %v4729_v46  ;;  %v4670_v51 = vadd.f32 %v6683_v47, %v6571_v44  ;;  %v6573_v52 = vpop.f32.mrf.mxu0 }
 0x628   : > { %v6574_v53 = vadd.f32 %v6573_v52, %v6572_v48  ;;  %v6685_v54 = vpop.f32.mrf.mxu1  ;;  %v3739_v48 = vld [vmem:[%s8113_s19 + $0xe8] sm:$0xff] }
 0x629   : > { %v4730_v55 = vadd.f32 %v4670_v51, %v3732_v49  ;;  %v6686_v56 = vadd.f32 %v6685_v54, %v6684_v50  ;;  %v6575_v57 = vpop.f32.mrf.mxu0 }
 0x62a   : > { %v6687_v11 = vpop.f32.mrf.mxu1 }
 0x62b   : > { %4762 = vst [vmem:[%s8113_s19 + $0xb0] sm:$0xff] %v4730_v55  ;;  %v4673_v59 = vadd.f32 %v6686_v56, %v6574_v53  ;;  %v6576_v60 = vpop.f32.mrf.mxu0 }
 0x62c   : > { %v6577_v61 = vadd.f32 %v6576_v60, %v6575_v57  ;;  %v6688_v62 = vpop.f32.mrf.mxu1  ;;  %v3740_v57 = vld [vmem:[%s8113_s19 + $0xf0] sm:$0xff] }
 0x62d   : > { %v4731_v63 = vadd.f32 %v4673_v59, %v3733_v58  ;;  %v6689_v0 = vadd.f32 %v6688_v62, %v6687_v11  ;;  %v6578_v1 = vpop.f32.mrf.mxu0 }
 0x62e   : > { %v6690_v3 = vpop.f32.mrf.mxu1 }
 0x62f   : > { %4763 = vst [vmem:[%s8113_s19 + $0xb8] sm:$0xff] %v4731_v63  ;;  %v4678_v4 = vadd.f32 %v6689_v0, %v6577_v61  ;;  %v6579_v5 = vpop.f32.mrf.mxu0  ;;  %v3741_v0 = vld [vmem:[%s8113_s19 + $0xf8] sm:$0xff] }
 0x630   : > { %v6580_v6 = vadd.f32 %v6579_v5, %v6578_v1  ;;  %v6691_v7 = vpop.f32.mrf.mxu1 }
 0x631   : > { %v4732_v8 = vadd.f32 %v4678_v4, %v3734_v2  ;;  %v6692_v9 = vadd.f32 %v6691_v7, %v6690_v3  ;;  %v6581_v10 = vpop.f32.mrf.mxu0 }
 0x632   : > { %v6693_v13 = vpop.f32.mrf.mxu1 }
 0x633   : > { %4764 = vst [vmem:[%s8113_s19 + $0xc0] sm:$0xff] %v4732_v8  ;;  %v4681_v14 = vadd.f32 %v6692_v9, %v6580_v6  ;;  %v6582_v15 = vpop.f32.mrf.mxu0 }
 0x634   : > { %v6583_v16 = vadd.f32 %v6582_v15, %v6581_v10  ;;  %v6694_v17 = vpop.f32.mrf.mxu1 }
 0x635   : > { %v4733_v18 = vadd.f32 %v4681_v14, %v3735_v12  ;;  %v6695_v19 = vadd.f32 %v6694_v17, %v6693_v13  ;;  %v6584_v20 = vpop.f32.mrf.mxu0 }
 0x636   : > { %v6696_v22 = vpop.f32.mrf.mxu1 }
 0x637   : > { %4765 = vst [vmem:[%s8113_s19 + $0xc8] sm:$0xff] %v4733_v18  ;;  %v4686_v23 = vadd.f32 %v6695_v19, %v6583_v16  ;;  %v6585_v24 = vpop.f32.mrf.mxu0 }
 0x638   : > { %v6586_v25 = vadd.f32 %v6585_v24, %v6584_v20  ;;  %v6697_v26 = vpop.f32.mrf.mxu1 }
 0x639   : > { %v4734_v27 = vadd.f32 %v4686_v23, %v3736_v21  ;;  %v6698_v28 = vadd.f32 %v6697_v26, %v6696_v22  ;;  %v6587_v29 = vpop.f32.mrf.mxu0 }
 0x63a   : > { %v6699_v31 = vpop.f32.mrf.mxu1 }
 0x63b   : > { %4766 = vst [vmem:[%s8113_s19 + $0xd0] sm:$0xff] %v4734_v27  ;;  %v4689_v32 = vadd.f32 %v6698_v28, %v6586_v25  ;;  %v6588_v33 = vpop.f32.mrf.mxu0 }
 0x63c   : > { %v6589_v34 = vadd.f32 %v6588_v33, %v6587_v29  ;;  %v6700_v35 = vpop.f32.mrf.mxu1 }
 0x63d   : > { %v4735_v36 = vadd.f32 %v4689_v32, %v3737_v30  ;;  %v6701_v37 = vadd.f32 %v6700_v35, %v6699_v31  ;;  %v6590_v38 = vpop.f32.mrf.mxu0 }
 0x63e   : > { %v6702_v40 = vpop.f32.mrf.mxu1 }
 0x63f   : > { %4767 = vst [vmem:[%s8113_s19 + $0xd8] sm:$0xff] %v4735_v36  ;;  %v4694_v41 = vadd.f32 %v6701_v37, %v6589_v34  ;;  %v6591_v42 = vpop.f32.mrf.mxu0 }
 0x640   : > { %v6592_v43 = vadd.f32 %v6591_v42, %v6590_v38  ;;  %v6703_v44 = vpop.f32.mrf.mxu1 }
 0x641   : > { %v4736_v45 = vadd.f32 %v4694_v41, %v3738_v39  ;;  %v6704_v46 = vadd.f32 %v6703_v44, %v6702_v40  ;;  %v6593_v47 = vpop.f32.mrf.mxu0 }
 0x642   : > { %v6705_v49 = vpop.f32.mrf.mxu1 }
 0x643   : > { %4768 = vst [vmem:[%s8113_s19 + $0xe0] sm:$0xff] %v4736_v45  ;;  %v4697_v50 = vadd.f32 %v6704_v46, %v6592_v43  ;;  %v6594_v51 = vpop.f32.mrf.mxu0 }
 0x644   : > { %v6595_v52 = vadd.f32 %v6594_v51, %v6593_v47  ;;  %v6706_v53 = vpop.f32.mrf.mxu1 }
 0x645   : > { %v4737_v54 = vadd.f32 %v4697_v50, %v3739_v48  ;;  %v6707_v55 = vadd.f32 %v6706_v53, %v6705_v49  ;;  %v6596_v56 = vpop.f32.mrf.mxu0 }
 0x646   : > { %v6708_v58 = vpop.f32.mrf.mxu1 }
 0x647   : > { %4769 = vst [vmem:[%s8113_s19 + $0xe8] sm:$0xff] %v4737_v54  ;;  %v4702_v11 = vadd.f32 %v6707_v55, %v6595_v52  ;;  %v6597_v59 = vpop.f32.mrf.mxu0 }
 0x648   : > { %v6598_v60 = vadd.f32 %v6597_v59, %v6596_v56  ;;  %v6709_v61 = vpop.f32.mrf.mxu1 }
 0x649   : > { %v4738_v62 = vadd.f32 %v4702_v11, %v3740_v57  ;;  %v6710_v63 = vadd.f32 %v6709_v61, %v6708_v58 }
 0x64b   : > { %4770 = vst [vmem:[%s8113_s19 + $0xf0] sm:$0xff] %v4738_v62  ;;  %v4705_v1 = vadd.f32 %v6710_v63, %v6598_v60  ;;  %4775 = sbr.rel (%p5536_p13) target bundleno = 1635 (0x663), region = 100 }
 0x64d   : > { %v4739_v2 = vadd.f32 %v4705_v1, %v3741_v0 }
 0x64f   : > { %4771 = vst [vmem:[%s8113_s19 + $0xf8] sm:$0xff] %v4739_v2 }
 0x650   : > { %v4776_v3 = vld [vmem:[%s8113_s19] sm:$0xff]  ;;  %v8616_v4 = vld [vmem:[#allocation15] ss:$0 sm:$0xff]  ;;  %v4777_v5 = vld [vmem:[%s8113_s19 + $0x8] sm:$0xff] }
 0x651   : > { %v4815_v6 = vadd.f32 %v8616_v4, %v4776_v3  ;;  %v4816_v7 = vadd.f32 %v8616_v4, %v4777_v5  ;;  %v4778_v8 = vld [vmem:[%s8113_s19 + $0x10] sm:$0xff]  ;;  %v4779_v9 = vld [vmem:[%s8113_s19 + $0x18] sm:$0xff]  ;;  %v4780_v10 = vld [vmem:[%s8113_s19 + $0x20] sm:$0xff] }
 0x652   : > { %v4817_v12 = vadd.f32 %v8616_v4, %v4778_v8  ;;  %v4818_v13 = vadd.f32 %v8616_v4, %v4779_v9  ;;  %v4819_v14 = vadd.f32 %v8616_v4, %v4780_v10  ;;  %v4781_v15 = vld [vmem:[%s8113_s19 + $0x28] sm:$0xff]  ;;  %v4782_v16 = vld [vmem:[%s8113_s19 + $0x30] sm:$0xff]  ;;  %v4783_v17 = vld [vmem:[%s8113_s19 + $0x38] sm:$0xff] }
 0x653   : > { %4847 = vst [vmem:[%s8113_s19] sm:$0xff] %v4815_v6  ;;  %4848 = vst [vmem:[%s8113_s19 + $0x8] sm:$0xff] %v4816_v7  ;;  %v4820_v18 = vadd.f32 %v8616_v4, %v4781_v15  ;;  %v4821_v19 = vadd.f32 %v8616_v4, %v4782_v16  ;;  %v4822_v20 = vadd.f32 %v8616_v4, %v4783_v17  ;;  %v4784_v21 = vld [vmem:[%s8113_s19 + $0x40] sm:$0xff]  ;;  %v4785_v22 = vld [vmem:[%s8113_s19 + $0x48] sm:$0xff] }
 0x654   : > { %v4786_v23 = vld [vmem:[%s8113_s19 + $0x50] sm:$0xff]  ;;  %4849 = vst [vmem:[%s8113_s19 + $0x10] sm:$0xff] %v4817_v12  ;;  %4850 = vst [vmem:[%s8113_s19 + $0x18] sm:$0xff] %v4818_v13  ;;  %v4823_v24 = vadd.f32 %v8616_v4, %v4784_v21  ;;  %v4824_v25 = vadd.f32 %v8616_v4, %v4785_v22  ;;  %v4787_v27 = vld [vmem:[%s8113_s19 + $0x58] sm:$0xff] }
 0x655   : > { %4851 = vst [vmem:[%s8113_s19 + $0x20] sm:$0xff] %v4819_v14  ;;  %v4825_v26 = vadd.f32 %v8616_v4, %v4786_v23  ;;  %v4788_v28 = vld [vmem:[%s8113_s19 + $0x60] sm:$0xff]  ;;  %v4789_v29 = vld [vmem:[%s8113_s19 + $0x68] sm:$0xff]  ;;  %4852 = vst [vmem:[%s8113_s19 + $0x28] sm:$0xff] %v4820_v18  ;;  %v4826_v30 = vadd.f32 %v8616_v4, %v4787_v27 }
 0x656   : > { %4853 = vst [vmem:[%s8113_s19 + $0x30] sm:$0xff] %v4821_v19  ;;  %4854 = vst [vmem:[%s8113_s19 + $0x38] sm:$0xff] %v4822_v20  ;;  %v4827_v31 = vadd.f32 %v8616_v4, %v4788_v28  ;;  %v4828_v32 = vadd.f32 %v8616_v4, %v4789_v29  ;;  %v4790_v33 = vld [vmem:[%s8113_s19 + $0x70] sm:$0xff]  ;;  %v4791_v34 = vld [vmem:[%s8113_s19 + $0x78] sm:$0xff] }
 0x657   : > { %v4792_v35 = vld [vmem:[%s8113_s19 + $0x80] sm:$0xff]  ;;  %4855 = vst [vmem:[%s8113_s19 + $0x40] sm:$0xff] %v4823_v24  ;;  %4856 = vst [vmem:[%s8113_s19 + $0x48] sm:$0xff] %v4824_v25  ;;  %v4829_v36 = vadd.f32 %v8616_v4, %v4790_v33  ;;  %v4830_v37 = vadd.f32 %v8616_v4, %v4791_v34  ;;  %v4793_v39 = vld [vmem:[%s8113_s19 + $0x88] sm:$0xff] }
 0x658   : > { %4857 = vst [vmem:[%s8113_s19 + $0x50] sm:$0xff] %v4825_v26  ;;  %v4831_v38 = vadd.f32 %v8616_v4, %v4792_v35  ;;  %v4794_v40 = vld [vmem:[%s8113_s19 + $0x90] sm:$0xff]  ;;  %v4795_v41 = vld [vmem:[%s8113_s19 + $0x98] sm:$0xff]  ;;  %4858 = vst [vmem:[%s8113_s19 + $0x58] sm:$0xff] %v4826_v30  ;;  %v4832_v42 = vadd.f32 %v8616_v4, %v4793_v39 }
 0x659   : > { %4859 = vst [vmem:[%s8113_s19 + $0x60] sm:$0xff] %v4827_v31  ;;  %4860 = vst [vmem:[%s8113_s19 + $0x68] sm:$0xff] %v4828_v32  ;;  %v4833_v43 = vadd.f32 %v8616_v4, %v4794_v40  ;;  %v4834_v44 = vadd.f32 %v8616_v4, %v4795_v41  ;;  %v4796_v45 = vld [vmem:[%s8113_s19 + $0xa0] sm:$0xff]  ;;  %v4797_v46 = vld [vmem:[%s8113_s19 + $0xa8] sm:$0xff] }
 0x65a   : > { %v4798_v47 = vld [vmem:[%s8113_s19 + $0xb0] sm:$0xff]  ;;  %4861 = vst [vmem:[%s8113_s19 + $0x70] sm:$0xff] %v4829_v36  ;;  %4862 = vst [vmem:[%s8113_s19 + $0x78] sm:$0xff] %v4830_v37  ;;  %v4835_v48 = vadd.f32 %v8616_v4, %v4796_v45  ;;  %v4836_v49 = vadd.f32 %v8616_v4, %v4797_v46  ;;  %v4799_v51 = vld [vmem:[%s8113_s19 + $0xb8] sm:$0xff] }
 0x65b   : > { %4863 = vst [vmem:[%s8113_s19 + $0x80] sm:$0xff] %v4831_v38  ;;  %v4837_v50 = vadd.f32 %v8616_v4, %v4798_v47  ;;  %v4800_v52 = vld [vmem:[%s8113_s19 + $0xc0] sm:$0xff]  ;;  %v4801_v53 = vld [vmem:[%s8113_s19 + $0xc8] sm:$0xff]  ;;  %4864 = vst [vmem:[%s8113_s19 + $0x88] sm:$0xff] %v4832_v42  ;;  %v4838_v54 = vadd.f32 %v8616_v4, %v4799_v51 }
 0x65c   : > { %4865 = vst [vmem:[%s8113_s19 + $0x90] sm:$0xff] %v4833_v43  ;;  %4866 = vst [vmem:[%s8113_s19 + $0x98] sm:$0xff] %v4834_v44  ;;  %v4839_v55 = vadd.f32 %v8616_v4, %v4800_v52  ;;  %v4840_v56 = vadd.f32 %v8616_v4, %v4801_v53  ;;  %v4802_v57 = vld [vmem:[%s8113_s19 + $0xd0] sm:$0xff]  ;;  %v4803_v58 = vld [vmem:[%s8113_s19 + $0xd8] sm:$0xff] }
 0x65d   : > { %v4804_v11 = vld [vmem:[%s8113_s19 + $0xe0] sm:$0xff]  ;;  %4867 = vst [vmem:[%s8113_s19 + $0xa0] sm:$0xff] %v4835_v48  ;;  %4868 = vst [vmem:[%s8113_s19 + $0xa8] sm:$0xff] %v4836_v49  ;;  %v4841_v59 = vadd.f32 %v8616_v4, %v4802_v57  ;;  %v4842_v60 = vadd.f32 %v8616_v4, %v4803_v58  ;;  %v4805_v62 = vld [vmem:[%s8113_s19 + $0xe8] sm:$0xff] }
 0x65e   : > { %4869 = vst [vmem:[%s8113_s19 + $0xb0] sm:$0xff] %v4837_v50  ;;  %v4843_v61 = vadd.f32 %v8616_v4, %v4804_v11  ;;  %v4806_v63 = vld [vmem:[%s8113_s19 + $0xf0] sm:$0xff]  ;;  %v4807_v0 = vld [vmem:[%s8113_s19 + $0xf8] sm:$0xff]  ;;  %4870 = vst [vmem:[%s8113_s19 + $0xb8] sm:$0xff] %v4838_v54  ;;  %v4844_v1 = vadd.f32 %v8616_v4, %v4805_v62 }
 0x65f   : > { %4871 = vst [vmem:[%s8113_s19 + $0xc0] sm:$0xff] %v4839_v55  ;;  %4872 = vst [vmem:[%s8113_s19 + $0xc8] sm:$0xff] %v4840_v56  ;;  %v4845_v2 = vadd.f32 %v8616_v4, %v4806_v63  ;;  %v4846_v3 = vadd.f32 %v8616_v4, %v4807_v0 }
 0x660   : > { %4873 = vst [vmem:[%s8113_s19 + $0xd0] sm:$0xff] %v4841_v59  ;;  %4874 = vst [vmem:[%s8113_s19 + $0xd8] sm:$0xff] %v4842_v60 }
 0x661   : > { %4875 = vst [vmem:[%s8113_s19 + $0xe0] sm:$0xff] %v4843_v61  ;;  %4876 = vst [vmem:[%s8113_s19 + $0xe8] sm:$0xff] %v4844_v1 }
 0x662   : > { %4877 = vst [vmem:[%s8113_s19 + $0xf0] sm:$0xff] %v4845_v2  ;;  %4878 = vst [vmem:[%s8113_s19 + $0xf8] sm:$0xff] %v4846_v3 }
 0x663 PF: > { %s8891_s0 = sld [smem:[#allocation29_spill]]  ;;  %s4895_s17 = sshll.u32 %s8113_s19, 4  ;;  %s8716_s17 = int_to_ptr.vmem [resolvable:$true] %s4895_s17 }
 0x664   : > { %s8892_s18 = sld [smem:[#allocation28_spill]]  ;;  %s8725_s21 = scalar_lea.sflag [#allocation8], %s404_s22 }
 0x665   : > { %s8894_s10 = sld [smem:[#allocation34_spill]]  ;;  %s7596_s11 = scalar_lea.vmem %s8716_s17, 4096 }
 0x666   : > { %s8895_s14 = sld [smem:[#allocation43_spill]]  ;;  %p7597_p0 = scmp.ne.s32.totalorder %s8716_s17, %s7596_s11 }
 0x667   : > { %s7787_s19 = smov [#allocation17]  }
 0x668   : > { %s7600_s13 = sshll.u32 %s7787_s19, 4  ;;  %s7601_s13 = int_to_ptr.vmem [resolvable:$false] %s7600_s13 }
 0x669   : > { %p4887_p8 = scmp.eq.s32.totalorder %s8891_s0, 1  ;;  %s7602_s29 = scalar_lea.vmem %s7601_s13, 8192 }
 0x66a   : > { %p7603_p3 = scmp.lt.s32.totalorder %s8716_s17, %s7601_s13  ;;  %p7604_p9 = scmp.lt.s32.totalorder %s7602_s29, %s7596_s11 }
 0x66b   : > { %s8931_s18 = smov (!%p4887_p8, %s8892_s18), 0  ;;  %p8896_p11 = scmp.ne.s32.totalorder %s8894_s10, 0 }
 0x66c   : > { %s5705_s20 = sshll.u32 %s8931_s18, 12  ;;  %p7605_p10 = por %p7604_p9, %p7603_p3 }
 0x66d   : > { %s8721_s5 = scalar_lea.hbm %s8895_s14, %s5705_s20  ;;  %p7598_p2 = pnand %p7597_p0, %p8896_p11 }
 0x66f   : > { %p7599_p5 = pneg %p7598_p2 }
 0x671   : > { %p7606_p12 = pnand %p7605_p10, %p7599_p5 }
 0x673   : > { %7609 = shalt.err (!%p7606_p12)
}
 0x674   : > { %s7610_s22 = scalar_lea.hbm %s8721_s5, 4096  ;;  %s7614_s8 = scalar_lea.hbm %s8895_s14, 16384 }
 0x675   : > { %p7611_p4 = scmp.ne.s32.totalorder %s8721_s5, %s7610_s22  ;;  %p7615_p6 = scmp.lt.s32.totalorder %s8721_s5, %s8895_s14 }
 0x676   : > { %p7616_p13 = scmp.lt.s32.totalorder %s7614_s8, %s7610_s22 }
 0x677   : > { %p7612_p7 = pnand %p7611_p4, %p8896_p11 }
 0x678   : > { %p7617_p8 = por %p7616_p13, %p7615_p6 }
 0x679   : > { %p7613_p1 = pneg %p7612_p7 }
 0x67b   : > { %p7618_p0 = pnand %p7617_p8, %p7613_p1 }
 0x67d   : > { %7621 = shalt.err (!%p7618_p0)
}
 0x67e   : > { %s7788_s0 = smov 128   ;;  %s7789_s18 = smov 8  }
 0x67f   : > { %6923 = dma.vmem_to_hbm [thread:$0]  (%p8896_p11), %s8716_s17, 4096, %s8721_s5, %s8725_s21, %s7788_s0, %s7788_s0, %s7789_s18  }
 0x680 PF: > { %s8897_s2 = sld [smem:[#allocation24_spill]]  ;;  %p6958_p2 = scmp.ge.s32.totalorder %s7772_s12, 2 }
 0x681   : > { %s8898_s20 = sld [smem:[#allocation35_spill]] }
 0x686   : > { %s4910_s6 = sand.u32 1, %s8897_s2  }
 0x687   : > { %p8899_p5 = scmp.ne.s32.totalorder %s8898_s20, 0  ;;  %s4911_s16 = scalar_lea.sflag [#allocation8], %s4910_s6 }
 0x689   : > { %p6946_p3 = pnand %p6958_p2, %p8899_p5 }
 0x68b   : > { %p6947_p9 = pneg %p6946_p3 }
 0x68d   : > { %7707 = dma.done.wait (%p6947_p9), %s4911_s16, 4096  }
 0x68e   : > { %7709 = vsyncadd (%p6947_p9), %s4911_s16, 4294963200  ;;  %s27_s12 = sadd.s32 1, %s7772_s12   ;;  %s8901_s21 = sld [smem:[#allocation25_spill]] }
 0x68f   : > { %p8753_p10 = scmp.ge.s32.totalorder %s27_s12, 18   ;;  %s8902_s10 = sld [smem:[#allocation26_spill]] }
 0x690   : > { %s8903_s29 = sld [smem:[#allocation37_spill]]  ;;  %s8907_s17 = smov %s8925_s27 }
 0x691   : > { %s8904_s30 = sld [smem:[#allocation30_spill]]  ;;  %s8910_s22 = smov %s7720_s23 }
 0x692   : > { %s8905_s7 = sld [smem:[#allocation31_spill]]  ;;  %s8911_s23 = smov %s8058_s9 }
 0x693   : > { %s8906_s8 = sld [smem:[#allocation32_spill]]  ;;  %s8912_s24 = smov %s7728_s25 }
 0x694   : > { %s8908_s5 = sld [smem:[#allocation36_spill]]  ;;  %s8913_s25 = smov %s7732_s26 }
 0x695   : > { %s8914_s26 = smov %s8053_s4  ;;  %s8915_s27 = smov %s7740_s28 }
 0x696   : > { %s8916_s28 = smov %s8902_s10  ;;  %s8917_s9 = smov %s8921_s3 }
 0x697   : > { %s8918_s10 = smov %s8907_s17  ;;  %26 = sbr.rel (!%p8753_p10) target bundleno = 22 (0x16), region = 156 }
 0x69a   : > { %s8919_s11 = smov %s8908_s5 }
 0x69c   :  { %4916 = vsyncpa [#allocation7], 1 }
 0x69d   :  { %4918 = vsyncpa [#allocation7 + $0x1], 1 }
 0x69e   :  { %4919 = vsyncpa [#allocation10], 1 }
 0x69f   :  { %4921 = vsyncpa [#allocation10 + $0x1], 1 }
 0x6a0   :  { %4922 = vsyncpa [#allocation13], 1 }
 0x6a1   :  { %4923 = vsyncpa [#allocation16], 1 }
 0x6a2   :  { %4924 = vsyncpa [#allocation8], 1 }
 0x6a3   :  { %4926 = vsyncpa [#allocation8 + $0x1], 1 }

</bundles_post_ra>
